<compile_context>
chip_gen: v7x
topology: tpu7x:2x2x1
jax: 0.10.0
libtpu: 0.0.40
codegen_flags: <defaults>
</compile_context>

<pallas_src>
import functools
import math

import jax
import jax.numpy as jnp
from jax.experimental import pallas as pl
from jax.experimental.pallas import tpu as pltpu

N_CMRF = 8          # CMRF "number" parameter
E_CMRF = 0.5        # CMRF expansion
BN_EPS = 1e-3       # matches nn.BatchNorm2d(eps=0.001)
_INV_SQRT2 = 0.7071067811865476


# ---------------------------------------------------------------------------
# in-kernel helpers
# ---------------------------------------------------------------------------
def _erf(x):
    # Abramowitz & Stegun 7.1.26 rational approximation of erf (|err| ~ 1e-7),
    # with the divide moved to the EUP via the approximate reciprocal.
    a1, a2, a3, a4, a5 = 0.254829592, -0.284496736, 1.421413741, -1.453152027, 1.061405429
    p = 0.3275911
    sgn = jnp.where(x >= 0.0, 1.0, -1.0)
    ax = jnp.abs(x)
    t = pl.reciprocal(1.0 + p * ax, approx=True)
    poly = t * (a1 + t * (a2 + t * (a3 + t * (a4 + t * a5))))
    return sgn * (1.0 - poly * jnp.exp(-ax * ax))


def _gelu(x):
    return 0.5 * x * (1.0 + _erf(x * _INV_SQRT2))


# ---------------------------------------------------------------------------
# fused CMRF + MaxPool2d(2,2) kernel.  One grid step == one batch tile (Bt images).
# Activation layout: (Bt * channels, H*W)  -- batch*channels on sublanes, space on lanes.
# ---------------------------------------------------------------------------
def _cmrf_pool_kernel(x_ref, w1_ref, b1_ref, dww_ref, dwb_ref,
                      w2_ref, b2_ref, sel_ref,
                      full_ref, pool_ref, scr_ref,
                      *, H, W, Bt, c, n_dw, add, pad):
    HW = H * W
    Btc = Bt * c
    BtC2 = full_ref.shape[0]
    halo = W + 1

    # ---- zero only the halo columns ever touched by shifted reads (tiny, per step) ----
    zcols = jnp.zeros((scr_ref.shape[0], halo), jnp.float32)
    scr_ref[:, pad - halo:pad] = zcols
    scr_ref[:, pad + HW:pad + HW + halo] = zcols

    x = x_ref[...].astype(jnp.float32)                     # (Bt*Cin, HW)

    # ---- pwconv1 (BN scale folded into weights) on the MXU + shift + exact-erf GELU ----
    y1 = jnp.dot(w1_ref[...], x, preferred_element_type=jnp.float32) + b1_ref[...]
    y1 = _gelu(y1)                                         # (2*Btc, HW), even rows first
    f_even = y1[0:Btc, :]                                  # torch x[:, 0::2]
    f_odd = y1[Btc:2 * Btc, :]                             # torch x[:, 1::2]

    # scratch layout:
    #   rows [0, Btc)                    : stage-0 input (f_odd) with halo
    #   rows [Btc, Btc + (n_dw+1)*Btc)   : pwconv2 concat buffer (branch-major)
    cat0 = Btc
    scr_ref[0:Btc, pad:pad + HW] = f_odd
    scr_ref[cat0:cat0 + Btc, pad:pad + HW] = f_even + f_odd     # branch 0

    # horizontal boundary masks, shared by all stages (2 mask muls per stage total)
    wcol = jax.lax.broadcasted_iota(jnp.int32, (1, HW), 1) % W
    mask_l = (wcol >= 1).astype(jnp.float32)               # column 0 invalid for dw = -1
    mask_r = (wcol <= W - 2).astype(jnp.float32)           # column W-1 invalid for dw = +1

    dww = dww_ref[...]                                     # (Btc, n_dw*9), BN folded
    dwb = dwb_ref[...]                                     # (Btc, n_dw), BN shift

    # ---- depthwise 3x3 chain (stride 1, pad 1, BN folded, no activation) ----
    for s in range(n_dw):
        src = 0 if s == 0 else cat0 + s * Btc              # rows holding the stage input
        groups = []
        for dwx in (-1, 0, 1):
            g = None
            for dh in (-1, 0, 1):
                d = dh * W + dwx
                k = s * 9 + (dh + 1) * 3 + (dwx + 1)
                term = scr_ref[src:src + Btc, pad + d:pad + d + HW] * dww[:, k:k + 1]
                g = term if g is None else g + term
            groups.append(g)
        out = groups[1] + groups[0] * mask_l + groups[2] * mask_r + dwb[:, s:s + 1]
        scr_ref[cat0 + (s + 1) * Btc:cat0 + (s + 2) * Btc, pad:pad + HW] = out

    # ---- pwconv2 (BN folded) as ONE MXU matmul over the concat buffer + GELU ----
    cat = scr_ref[cat0:cat0 + (n_dw + 1) * Btc, pad:pad + HW]    # (Bt*c2in, HW)
    y2 = jnp.dot(w2_ref[...], cat, preferred_element_type=jnp.float32) + b2_ref[...]
    y2 = _gelu(y2)                                         # (Bt*C2, HW)
    if add:
        y2 = y2 + x                                        # residual (only when Cin == C2)
    full_ref[...] = y2.astype(full_ref.dtype)

    # ---- fused MaxPool2d(2,2): two shifted maxes + hoisted 0/1 selection matmul ----
    scr_ref[0:BtC2, pad:pad + HW] = y2
    mw = jnp.maximum(y2, scr_ref[0:BtC2, pad + 1:pad + 1 + HW])        # max over (w, w+1)
    scr_ref[0:BtC2, pad:pad + HW] = mw
    mhw = jnp.maximum(mw, scr_ref[0:BtC2, pad + W:pad + W + HW])       # max over 2x2
    pool = jnp.dot(mhw, sel_ref[...], preferred_element_type=jnp.float32)
    pool_ref[...] = pool.astype(pool_ref.dtype)


# ---------------------------------------------------------------------------
# wrapper: NCHW in / NCHW out, channels-first kept end to end (no transposes)
# ---------------------------------------------------------------------------
def unet_encoder_forward(x_nchw, params, *, add):
    B, Cin, H, W = x_nchw.shape
    HW = H * W
    Hh, Wh = H // 2, W // 2
    HWq = Hh * Wh

    w1, s1, b1 = params["w1"], params["s1"], params["b1"]
    dww, dws, dwb = params["dww"], params["dws"], params["dwb"]
    w2, s2, b2 = params["w2"], params["s2"], params["b2"]
    cmid = w1.shape[0]
    n_dw, c, _ = dww.shape
    C2, c2in = w2.shape
    assert cmid == 2 * c and c2in == (n_dw + 1) * c

    # Batch tile stacked on sublanes so the c-channel DW chain fills vregs.
    Bt = math.gcd(B, max(1, 8 // c))
    n_steps = B // Bt
    eye = jnp.eye(Bt, dtype=jnp.float32)

    # pwconv1: fold BN scale into weights, permute even channels first,
    # block-diagonal over the batch tile (rows ordered [even|odd] x image x channel).
    w1f = w1 * s1[:, None]
    perm = jnp.concatenate([jnp.arange(0, cmid, 2), jnp.arange(1, cmid, 2)])
    w1g = w1f[perm].reshape(2, c, Cin)
    w1_big = jnp.einsum("ab,gjc->gajbc", eye, w1g).reshape(2 * Bt * c, Bt * Cin)
    b1_big = jnp.broadcast_to(b1[perm].reshape(2, 1, c), (2, Bt, c)).reshape(-1, 1)

    # depthwise stages: fold BN scale into the 9 taps, tile rows per image in the tile.
    dwwf = (dww * dws[:, :, None]).transpose(1, 0, 2).reshape(c, n_dw * 9)
    dww_t = jnp.tile(dwwf, (Bt, 1))                        # (Bt*c, n_dw*9)
    dwb_t = jnp.tile(dwb.T, (Bt, 1))                       # (Bt*c, n_dw)

    # pwconv2: fold BN scale, block-diagonal over the batch tile,
    # K ordered branch-major (k, image, channel) to match the concat scratch layout.
    w2f = (w2 * s2[:, None]).reshape(C2, n_dw + 1, c)
    w2_big = jnp.einsum("ab,okj->aokbj", eye, w2f).reshape(Bt * C2, (n_dw + 1) * Bt * c)
    b2_big = jnp.broadcast_to(b2[None, :], (Bt, C2)).reshape(-1, 1)

    # grid-invariant 0/1 selection matrix for the 2x2 max-pool (hoisted out of kernel)
    kq = jnp.arange(HWq)
    anchor = (kq // Wh) * (2 * W) + (kq % Wh) * 2
    sel = (jnp.arange(HW)[:, None] == anchor[None, :]).astype(jnp.float32)

    x2 = x_nchw.reshape(B * Cin, HW)                       # free dim-merge reshape

    pad = ((W + 1 + 127) // 128) * 128                     # lane-aligned data window
    scr_rows = max(Bt * C2, Bt * c * (n_dw + 2))
    scr_rows = ((scr_rows + 7) // 8) * 8
    scr_w = 2 * pad + HW

    kern = functools.partial(_cmrf_pool_kernel, H=H, W=W, Bt=Bt, c=c, n_dw=n_dw,
                             add=add, pad=pad)

    full2, pool2 = pl.pallas_call(
        kern,
        out_shape=(jax.ShapeDtypeStruct((B * C2, HW), jnp.float32),
                   jax.ShapeDtypeStruct((B * C2, HWq), jnp.float32)),
        grid=(n_steps,),
        in_specs=[
            pl.BlockSpec((Bt * Cin, HW), lambda g: (g, 0)),                   # x tile
            pl.BlockSpec((2 * Bt * c, Bt * Cin), lambda g: (0, 0)),           # pwconv1 W
            pl.BlockSpec((2 * Bt * c, 1), lambda g: (0, 0)),                  # pwconv1 shift
            pl.BlockSpec((Bt * c, n_dw * 9), lambda g: (0, 0)),               # DW taps
            pl.BlockSpec((Bt * c, n_dw), lambda g: (0, 0)),                   # DW shift
            pl.BlockSpec((Bt * C2, (n_dw + 1) * Bt * c), lambda g: (0, 0)),   # pwconv2 W
            pl.BlockSpec((Bt * C2, 1), lambda g: (0, 0)),                     # pwconv2 shift
            pl.BlockSpec((HW, HWq), lambda g: (0, 0)),                        # pool select
        ],
        out_specs=(
            pl.BlockSpec((Bt * C2, HW), lambda g: (g, 0)),                    # CMRF out
            pl.BlockSpec((Bt * C2, HWq), lambda g: (g, 0)),                   # pooled out
        ),
        scratch_shapes=[pltpu.VMEM((scr_rows, scr_w), jnp.float32)],          # halo scratch
        compiler_params=pltpu.CompilerParams(
            dimension_semantics=("parallel",),
            vmem_limit_bytes=32 * 1024 * 1024),
    )(x2, w1_big, b1_big, dww_t, dwb_t, w2_big, b2_big, sel)

    full = full2.reshape(B, C2, H, W)
    down = pool2.reshape(B, C2, Hh, Wh)
    return down, full                                      # matches (downsample(x), x)


# ---------------------------------------------------------------------------
# parameter construction (deterministic, synthetic), BN folded to scale/shift
# ---------------------------------------------------------------------------
def init_params(key, c1, c2, N=N_CMRF, e=E_CMRF):
    c = int(c2 * e / N)          # per-branch channels of the DW chain
    cmid = c2 // N               # pwconv1 output channels
    c2in = c2 // 2               # pwconv2 input channels (== c * N)
    n_dw = N - 1
    keys = iter(jax.random.split(key, 64))

    def nrm(shape, std=0.1):
        return std * jax.random.normal(next(keys), shape, jnp.float32)

    def bn(ch):
        gamma = 1.0 + nrm((ch,), 0.05)
        beta = nrm((ch,), 0.05)
        mean = nrm((ch,), 0.05)
        var = 1.0 + jnp.abs(nrm((ch,), 0.05))
        scale = gamma / jnp.sqrt(var + BN_EPS)
        return scale, beta - mean * scale

    w1 = nrm((cmid, c1))                  # torch (cmid, c1, 1, 1) squeezed
    s1, b1 = bn(cmid)

    dww = nrm((n_dw, c, 9))               # torch (c, 1, 3, 3) per stage, tap order kh*3+kw
    dws_l, dwb_l = [], []
    for _ in range(n_dw):
        s, b = bn(c)
        dws_l.append(s)
        dwb_l.append(b)
    dws = jnp.stack(dws_l)                # (n_dw, c)
    dwb = jnp.stack(dwb_l)                # (n_dw, c)

    w2 = nrm((c2, c2in))                  # torch (c2, c2//2, 1, 1) squeezed
    s2, b2 = bn(c2)

    return {"w1": w1, "s1": s1, "b1": b1,
            "dww": dww, "dws": dws, "dwb": dwb,
            "w2": w2, "s2": s2, "b2": b2}


# ---------------------------------------------------------------------------
if __name__ == "__main__":
    in_channels, out_channels = 4, 32
    B, H, W = 2, 16, 16

    key = jax.random.PRNGKey(0)
    kx, kp = jax.random.split(key)
    x = jax.random.normal(kx, (B, in_channels, H, W), jnp.float32)
    params = init_params(kp, in_channels, out_channels)

    add = in_channels == out_channels     # CMRF shortcut condition (False here)
    fwd = jax.jit(functools.partial(unet_encoder_forward, add=add))
    down, full = fwd(x, params)
    jax.block_until_ready((down, full))

    assert down.shape == (B, out_channels, H // 2, W // 2), down.shape
    assert full.shape == (B, out_channels, H, W), full.shape
    assert bool(jnp.all(jnp.isfinite(down))) and bool(jnp.all(jnp.isfinite(full)))
    print("KERNEL_OK")
</pallas_src>

<mosaic_0001>
module attributes {stable_mosaic.version = 11 : i64} {
  func.func @_cmrf_pool_kernel(%arg0: i32, %arg1: memref<8x256xf32, #tpu.memory_space<vmem>>, %arg2: memref<8x8xf32, #tpu.memory_space<vmem>>, %arg3: memref<8x1xf32, #tpu.memory_space<vmem>>, %arg4: memref<4x63xf32, #tpu.memory_space<vmem>>, %arg5: memref<4x7xf32, #tpu.memory_space<vmem>>, %arg6: memref<64x32xf32, #tpu.memory_space<vmem>>, %arg7: memref<64x1xf32, #tpu.memory_space<vmem>>, %arg8: memref<256x64xf32, #tpu.memory_space<vmem>>, %arg9: memref<64x256xf32, #tpu.memory_space<vmem>>, %arg10: memref<64x64xf32, #tpu.memory_space<vmem>>, %arg11: memref<64x512xf32, #tpu.memory_space<vmem>>) attributes {dimension_semantics = [#tpu.dimension_semantics<parallel>], iteration_bounds = array<i64: 1>, scalar_prefetch = 0 : i64, scratch_operands = 1 : i64, tpu.core_type = #tpu.core_type<tc>, window_params = [{transform_indices = @transform_0, window_bounds = array<i64: 8, 256>}, {pipeline_mode = #tpu.pipeline_mode<synchronous>, transform_indices = @transform_1, window_bounds = array<i64: 8, 8>}, {pipeline_mode = #tpu.pipeline_mode<synchronous>, transform_indices = @transform_2, window_bounds = array<i64: 8, 1>}, {pipeline_mode = #tpu.pipeline_mode<synchronous>, transform_indices = @transform_3, window_bounds = array<i64: 4, 63>}, {pipeline_mode = #tpu.pipeline_mode<synchronous>, transform_indices = @transform_4, window_bounds = array<i64: 4, 7>}, {pipeline_mode = #tpu.pipeline_mode<synchronous>, transform_indices = @transform_5, window_bounds = array<i64: 64, 32>}, {pipeline_mode = #tpu.pipeline_mode<synchronous>, transform_indices = @transform_6, window_bounds = array<i64: 64, 1>}, {pipeline_mode = #tpu.pipeline_mode<synchronous>, transform_indices = @transform_7, window_bounds = array<i64: 256, 64>}, {transform_indices = @transform_8, window_bounds = array<i64: 64, 256>}, {transform_indices = @transform_9, window_bounds = array<i64: 64, 64>}]} {
    %cst = arith.constant 0.000000e+00 : f32
    %0 = vector.broadcast %cst : f32 to vector<64x17xf32>
    %c0 = arith.constant 0 : index
    %c111 = arith.constant 111 : index
    %1 = vector.load %arg11[%c0, %c111] : memref<64x512xf32, #tpu.memory_space<vmem>>, vector<64x17xf32>
    tpu.vector_store %arg11[%c0, %c111], %0 {strides = array<i32>} : memref<64x512xf32, #tpu.memory_space<vmem>>, vector<64x17xf32>,
    %c0_0 = arith.constant 0 : index
    %c384 = arith.constant 384 : index
    %2 = vector.load %arg11[%c0_0, %c384] : memref<64x512xf32, #tpu.memory_space<vmem>>, vector<64x17xf32>
    tpu.vector_store %arg11[%c0_0, %c384], %0 {strides = array<i32>} : memref<64x512xf32, #tpu.memory_space<vmem>>, vector<64x17xf32>,
    %c0_1 = arith.constant 0 : index
    %c0_2 = arith.constant 0 : index
    %3 = vector.load %arg1[%c0_1, %c0_2] : memref<8x256xf32, #tpu.memory_space<vmem>>, vector<8x256xf32>
    %c0_3 = arith.constant 0 : index
    %c0_4 = arith.constant 0 : index
    %4 = vector.load %arg2[%c0_3, %c0_4] : memref<8x8xf32, #tpu.memory_space<vmem>>, vector<8x8xf32>
    %cst_5 = arith.constant dense<0.000000e+00> : vector<8x256xf32>
    %5 = tpu.matmul %4, %3, %cst_5 {dimension_numbers = #tpu.dot_dimension_numbers<[1], [0], [0], [1], [0, 0, 1, 1], [], []>} : vector<8x8xf32>, vector<8x256xf32>, vector<8x256xf32> -> vector<8x256xf32>
    %c0_6 = arith.constant 0 : index
    %c0_7 = arith.constant 0 : index
    %6 = vector.load %arg3[%c0_6, %c0_7] : memref<8x1xf32, #tpu.memory_space<vmem>>, vector<8x1xf32>
    %7 = vector.broadcast %6 : vector<8x1xf32> to vector<8x256xf32>
    %8 = arith.addf %5, %7 : vector<8x256xf32>
    %cst_8 = arith.constant 5.000000e-01 : f32
    %9 = vector.broadcast %cst_8 : f32 to vector<8x256xf32>
    %10 = arith.mulf %9, %8 : vector<8x256xf32>
    %cst_9 = arith.constant 0.707106769 : f32
    %11 = vector.broadcast %cst_9 : f32 to vector<8x256xf32>
    %12 = arith.mulf %8, %11 : vector<8x256xf32>
    %cst_10 = arith.constant 0.000000e+00 : f32
    %13 = vector.broadcast %cst_10 : f32 to vector<8x256xf32>
    %14 = arith.cmpf oge, %12, %13 : vector<8x256xf32>
    %cst_11 = arith.constant 1.000000e+00 : f32
    %cst_12 = arith.constant -1.000000e+00 : f32
    %15 = vector.broadcast %cst_11 : f32 to vector<8x256xf32>
    %16 = vector.broadcast %cst_12 : f32 to vector<8x256xf32>
    %17 = arith.select %14, %15, %16 : vector<8x256xi1>, vector<8x256xf32>
    %18 = math.absf %12 : vector<8x256xf32>
    %cst_13 = arith.constant 0.327591091 : f32
    %19 = vector.broadcast %cst_13 : f32 to vector<8x256xf32>
    %20 = arith.mulf %19, %18 : vector<8x256xf32>
    %cst_14 = arith.constant 1.000000e+00 : f32
    %21 = vector.broadcast %cst_14 : f32 to vector<8x256xf32>
    %22 = arith.addf %21, %20 : vector<8x256xf32>
    %23 = tpu.reciprocal %22 {approx = true} : vector<8x256xf32> -> vector<8x256xf32>
    %cst_15 = arith.constant 1.06140542 : f32
    %24 = vector.broadcast %cst_15 : f32 to vector<8x256xf32>
    %25 = arith.mulf %23, %24 : vector<8x256xf32>
    %cst_16 = arith.constant -1.45315206 : f32
    %26 = vector.broadcast %cst_16 : f32 to vector<8x256xf32>
    %27 = arith.addf %26, %25 : vector<8x256xf32>
    %28 = arith.mulf %23, %27 : vector<8x256xf32>
    %cst_17 = arith.constant 1.42141378 : f32
    %29 = vector.broadcast %cst_17 : f32 to vector<8x256xf32>
    %30 = arith.addf %29, %28 : vector<8x256xf32>
    %31 = arith.mulf %23, %30 : vector<8x256xf32>
    %cst_18 = arith.constant -0.284496725 : f32
    %32 = vector.broadcast %cst_18 : f32 to vector<8x256xf32>
    %33 = arith.addf %32, %31 : vector<8x256xf32>
    %34 = arith.mulf %23, %33 : vector<8x256xf32>
    %cst_19 = arith.constant 0.254829586 : f32
    %35 = vector.broadcast %cst_19 : f32 to vector<8x256xf32>
    %36 = arith.addf %35, %34 : vector<8x256xf32>
    %37 = arith.mulf %23, %36 : vector<8x256xf32>
    %cst_20 = arith.constant 0.000000e+00 : f32
    %38 = vector.broadcast %cst_20 : f32 to vector<8x256xf32>
    %39 = arith.subf %38, %18 : vector<8x256xf32>
    %40 = arith.mulf %39, %18 : vector<8x256xf32>
    %41 = math.exp %40 : vector<8x256xf32>
    %42 = arith.mulf %37, %41 : vector<8x256xf32>
    %cst_21 = arith.constant 1.000000e+00 : f32
    %43 = vector.broadcast %cst_21 : f32 to vector<8x256xf32>
    %44 = arith.subf %43, %42 : vector<8x256xf32>
    %45 = arith.mulf %17, %44 : vector<8x256xf32>
    %cst_22 = arith.constant 1.000000e+00 : f32
    %46 = vector.broadcast %cst_22 : f32 to vector<8x256xf32>
    %47 = arith.addf %46, %45 : vector<8x256xf32>
    %48 = arith.mulf %10, %47 : vector<8x256xf32>
    %49 = vector.extract_strided_slice %48 {offsets = [0, 0], sizes = [4, 256], strides = [1, 1]} : vector<8x256xf32> to vector<4x256xf32>
    %50 = vector.extract_strided_slice %48 {offsets = [4, 0], sizes = [4, 256], strides = [1, 1]} : vector<8x256xf32> to vector<4x256xf32>
    %c0_23 = arith.constant 0 : index
    %c128 = arith.constant 128 : index
    %51 = vector.load %arg11[%c0_23, %c128] : memref<64x512xf32, #tpu.memory_space<vmem>>, vector<4x256xf32>
    tpu.vector_store %arg11[%c0_23, %c128], %50 {strides = array<i32>} : memref<64x512xf32, #tpu.memory_space<vmem>>, vector<4x256xf32>,
    %52 = arith.addf %49, %50 : vector<4x256xf32>
    %c4 = arith.constant 4 : index
    %c128_24 = arith.constant 128 : index
    %53 = vector.load %arg11[%c4, %c128_24] : memref<64x512xf32, #tpu.memory_space<vmem>>, vector<4x256xf32>
    tpu.vector_store %arg11[%c4, %c128_24], %52 {strides = array<i32>} : memref<64x512xf32, #tpu.memory_space<vmem>>, vector<4x256xf32>,
    %54 = tpu.iota {dimensions = array<i32: 1>} : vector<1x256xi32>
    %c16_i32 = arith.constant 16 : i32
    %c0_i32 = arith.constant 0 : i32
    %55 = arith.cmpi eq, %c16_i32, %c0_i32 : i32
    %c1_i32 = arith.constant 1 : i32
    %56 = arith.select %55, %c1_i32, %c16_i32 : i32
    %57 = vector.broadcast %56 : i32 to vector<1x256xi32>
    %58 = arith.remsi %54, %57 : vector<1x256xi32>
    %c0_i32_25 = arith.constant 0 : i32
    %59 = vector.broadcast %c0_i32_25 : i32 to vector<1x256xi32>
    %60 = arith.cmpi ne, %58, %59 : vector<1x256xi32>
    %c0_i32_26 = arith.constant 0 : i32
    %61 = vector.broadcast %c0_i32_26 : i32 to vector<1x256xi32>
    %62 = arith.cmpi slt, %58, %61 : vector<1x256xi32>
    %c0_i32_27 = arith.constant 0 : i32
    %63 = arith.cmpi slt, %56, %c0_i32_27 : i32
    %64 = vector.broadcast %63 : i1 to vector<1x256xi1>
    %65 = vector.broadcast %64 : vector<1x256xi1> to vector<1x256xi1>
    %66 = arith.xori %62, %65 : vector<1x256xi1>
    %67 = arith.andi %66, %60 : vector<1x256xi1>
    %68 = vector.broadcast %56 : i32 to vector<1x256xi32>
    %69 = arith.addi %58, %68 : vector<1x256xi32>
    %70 = arith.select %67, %69, %58 : vector<1x256xi1>, vector<1x256xi32>
    %c1_i32_28 = arith.constant 1 : i32
    %71 = vector.broadcast %c1_i32_28 : i32 to vector<1x256xi32>
    %72 = arith.cmpi sge, %70, %71 : vector<1x256xi32>
    %73 = arith.extui %72 : vector<1x256xi1> to vector<1x256xi32>
    %74 = arith.sitofp %73 : vector<1x256xi32> to vector<1x256xf32>
    %c14_i32 = arith.constant 14 : i32
    %75 = vector.broadcast %c14_i32 : i32 to vector<1x256xi32>
    %76 = arith.cmpi sle, %70, %75 : vector<1x256xi32>
    %77 = arith.extui %76 : vector<1x256xi1> to vector<1x256xi32>
    %78 = arith.sitofp %77 : vector<1x256xi32> to vector<1x256xf32>
    %c0_29 = arith.constant 0 : index
    %c0_30 = arith.constant 0 : index
    %79 = vector.load %arg4[%c0_29, %c0_30] : memref<4x63xf32, #tpu.memory_space<vmem>>, vector<4x63xf32>
    %c0_31 = arith.constant 0 : index
    %c0_32 = arith.constant 0 : index
    %80 = vector.load %arg5[%c0_31, %c0_32] : memref<4x7xf32, #tpu.memory_space<vmem>>, vector<4x7xf32>
    %c0_33 = arith.constant 0 : index
    %c111_34 = arith.constant 111 : index
    %81 = vector.load %arg11[%c0_33, %c111_34] : memref<64x512xf32, #tpu.memory_space<vmem>>, vector<4x256xf32>
    %82 = vector.extract_strided_slice %79 {offsets = [0, 0], sizes = [4, 1], strides = [1, 1]} : vector<4x63xf32> to vector<4x1xf32>
    %83 = vector.broadcast %82 : vector<4x1xf32> to vector<4x256xf32>
    %84 = arith.mulf %81, %83 : vector<4x256xf32>
    %c0_35 = arith.constant 0 : index
    %c127 = arith.constant 127 : index
    %85 = vector.load %arg11[%c0_35, %c127] : memref<64x512xf32, #tpu.memory_space<vmem>>, vector<4x256xf32>
    %86 = vector.extract_strided_slice %79 {offsets = [0, 3], sizes = [4, 1], strides = [1, 1]} : vector<4x63xf32> to vector<4x1xf32>
    %87 = vector.broadcast %86 : vector<4x1xf32> to vector<4x256xf32>
    %88 = arith.mulf %85, %87 : vector<4x256xf32>
    %89 = arith.addf %84, %88 : vector<4x256xf32>
    %c0_36 = arith.constant 0 : index
    %c143 = arith.constant 143 : index
    %90 = vector.load %arg11[%c0_36, %c143] : memref<64x512xf32, #tpu.memory_space<vmem>>, vector<4x256xf32>
    %91 = vector.extract_strided_slice %79 {offsets = [0, 6], sizes = [4, 1], strides = [1, 1]} : vector<4x63xf32> to vector<4x1xf32>
    %92 = vector.broadcast %91 : vector<4x1xf32> to vector<4x256xf32>
    %93 = arith.mulf %90, %92 : vector<4x256xf32>
    %94 = arith.addf %89, %93 : vector<4x256xf32>
    %c0_37 = arith.constant 0 : index
    %c112 = arith.constant 112 : index
    %95 = vector.load %arg11[%c0_37, %c112] : memref<64x512xf32, #tpu.memory_space<vmem>>, vector<4x256xf32>
    %96 = vector.extract_strided_slice %79 {offsets = [0, 1], sizes = [4, 1], strides = [1, 1]} : vector<4x63xf32> to vector<4x1xf32>
    %97 = vector.broadcast %96 : vector<4x1xf32> to vector<4x256xf32>
    %98 = arith.mulf %95, %97 : vector<4x256xf32>
    %c0_38 = arith.constant 0 : index
    %c128_39 = arith.constant 128 : index
    %99 = vector.load %arg11[%c0_38, %c128_39] : memref<64x512xf32, #tpu.memory_space<vmem>>, vector<4x256xf32>
    %100 = vector.extract_strided_slice %79 {offsets = [0, 4], sizes = [4, 1], strides = [1, 1]} : vector<4x63xf32> to vector<4x1xf32>
    %101 = vector.broadcast %100 : vector<4x1xf32> to vector<4x256xf32>
    %102 = arith.mulf %99, %101 : vector<4x256xf32>
    %103 = arith.addf %98, %102 : vector<4x256xf32>
    %c0_40 = arith.constant 0 : index
    %c144 = arith.constant 144 : index
    %104 = vector.load %arg11[%c0_40, %c144] : memref<64x512xf32, #tpu.memory_space<vmem>>, vector<4x256xf32>
    %105 = vector.extract_strided_slice %79 {offsets = [0, 7], sizes = [4, 1], strides = [1, 1]} : vector<4x63xf32> to vector<4x1xf32>
    %106 = vector.broadcast %105 : vector<4x1xf32> to vector<4x256xf32>
    %107 = arith.mulf %104, %106 : vector<4x256xf32>
    %108 = arith.addf %103, %107 : vector<4x256xf32>
    %c0_41 = arith.constant 0 : index
    %c113 = arith.constant 113 : index
    %109 = vector.load %arg11[%c0_41, %c113] : memref<64x512xf32, #tpu.memory_space<vmem>>, vector<4x256xf32>
    %110 = vector.extract_strided_slice %79 {offsets = [0, 2], sizes = [4, 1], strides = [1, 1]} : vector<4x63xf32> to vector<4x1xf32>
    %111 = vector.broadcast %110 : vector<4x1xf32> to vector<4x256xf32>
    %112 = arith.mulf %109, %111 : vector<4x256xf32>
    %c0_42 = arith.constant 0 : index
    %c129 = arith.constant 129 : index
    %113 = vector.load %arg11[%c0_42, %c129] : memref<64x512xf32, #tpu.memory_space<vmem>>, vector<4x256xf32>
    %114 = vector.extract_strided_slice %79 {offsets = [0, 5], sizes = [4, 1], strides = [1, 1]} : vector<4x63xf32> to vector<4x1xf32>
    %115 = vector.broadcast %114 : vector<4x1xf32> to vector<4x256xf32>
    %116 = arith.mulf %113, %115 : vector<4x256xf32>
    %117 = arith.addf %112, %116 : vector<4x256xf32>
    %c0_43 = arith.constant 0 : index
    %c145 = arith.constant 145 : index
    %118 = vector.load %arg11[%c0_43, %c145] : memref<64x512xf32, #tpu.memory_space<vmem>>, vector<4x256xf32>
    %119 = vector.extract_strided_slice %79 {offsets = [0, 8], sizes = [4, 1], strides = [1, 1]} : vector<4x63xf32> to vector<4x1xf32>
    %120 = vector.broadcast %119 : vector<4x1xf32> to vector<4x256xf32>
    %121 = arith.mulf %118, %120 : vector<4x256xf32>
    %122 = arith.addf %117, %121 : vector<4x256xf32>
    %123 = vector.broadcast %74 : vector<1x256xf32> to vector<4x256xf32>
    %124 = arith.mulf %94, %123 : vector<4x256xf32>
    %125 = arith.addf %108, %124 : vector<4x256xf32>
    %126 = vector.broadcast %78 : vector<1x256xf32> to vector<4x256xf32>
    %127 = arith.mulf %122, %126 : vector<4x256xf32>
    %128 = arith.addf %125, %127 : vector<4x256xf32>
    %129 = vector.extract_strided_slice %80 {offsets = [0, 0], sizes = [4, 1], strides = [1, 1]} : vector<4x7xf32> to vector<4x1xf32>
    %130 = vector.broadcast %129 : vector<4x1xf32> to vector<4x256xf32>
    %131 = arith.addf %128, %130 : vector<4x256xf32>
    %c8 = arith.constant 8 : index
    %c128_44 = arith.constant 128 : index
    %132 = vector.load %arg11[%c8, %c128_44] : memref<64x512xf32, #tpu.memory_space<vmem>>, vector<4x256xf32>
    tpu.vector_store %arg11[%c8, %c128_44], %131 {strides = array<i32>} : memref<64x512xf32, #tpu.memory_space<vmem>>, vector<4x256xf32>,
    %c8_45 = arith.constant 8 : index
    %c111_46 = arith.constant 111 : index
    %133 = vector.load %arg11[%c8_45, %c111_46] : memref<64x512xf32, #tpu.memory_space<vmem>>, vector<4x256xf32>
    %134 = vector.extract_strided_slice %79 {offsets = [0, 9], sizes = [4, 1], strides = [1, 1]} : vector<4x63xf32> to vector<4x1xf32>
    %135 = vector.broadcast %134 : vector<4x1xf32> to vector<4x256xf32>
    %136 = arith.mulf %133, %135 : vector<4x256xf32>
    %c8_47 = arith.constant 8 : index
    %c127_48 = arith.constant 127 : index
    %137 = vector.load %arg11[%c8_47, %c127_48] : memref<64x512xf32, #tpu.memory_space<vmem>>, vector<4x256xf32>
    %138 = vector.extract_strided_slice %79 {offsets = [0, 12], sizes = [4, 1], strides = [1, 1]} : vector<4x63xf32> to vector<4x1xf32>
    %139 = vector.broadcast %138 : vector<4x1xf32> to vector<4x256xf32>
    %140 = arith.mulf %137, %139 : vector<4x256xf32>
    %141 = arith.addf %136, %140 : vector<4x256xf32>
    %c8_49 = arith.constant 8 : index
    %c143_50 = arith.constant 143 : index
    %142 = vector.load %arg11[%c8_49, %c143_50] : memref<64x512xf32, #tpu.memory_space<vmem>>, vector<4x256xf32>
    %143 = vector.extract_strided_slice %79 {offsets = [0, 15], sizes = [4, 1], strides = [1, 1]} : vector<4x63xf32> to vector<4x1xf32>
    %144 = vector.broadcast %143 : vector<4x1xf32> to vector<4x256xf32>
    %145 = arith.mulf %142, %144 : vector<4x256xf32>
    %146 = arith.addf %141, %145 : vector<4x256xf32>
    %c8_51 = arith.constant 8 : index
    %c112_52 = arith.constant 112 : index
    %147 = vector.load %arg11[%c8_51, %c112_52] : memref<64x512xf32, #tpu.memory_space<vmem>>, vector<4x256xf32>
    %148 = vector.extract_strided_slice %79 {offsets = [0, 10], sizes = [4, 1], strides = [1, 1]} : vector<4x63xf32> to vector<4x1xf32>
    %149 = vector.broadcast %148 : vector<4x1xf32> to vector<4x256xf32>
    %150 = arith.mulf %147, %149 : vector<4x256xf32>
    %c8_53 = arith.constant 8 : index
    %c128_54 = arith.constant 128 : index
    %151 = vector.load %arg11[%c8_53, %c128_54] : memref<64x512xf32, #tpu.memory_space<vmem>>, vector<4x256xf32>
    %152 = vector.extract_strided_slice %79 {offsets = [0, 13], sizes = [4, 1], strides = [1, 1]} : vector<4x63xf32> to vector<4x1xf32>
    %153 = vector.broadcast %152 : vector<4x1xf32> to vector<4x256xf32>
    %154 = arith.mulf %151, %153 : vector<4x256xf32>
    %155 = arith.addf %150, %154 : vector<4x256xf32>
    %c8_55 = arith.constant 8 : index
    %c144_56 = arith.constant 144 : index
    %156 = vector.load %arg11[%c8_55, %c144_56] : memref<64x512xf32, #tpu.memory_space<vmem>>, vector<4x256xf32>
    %157 = vector.extract_strided_slice %79 {offsets = [0, 16], sizes = [4, 1], strides = [1, 1]} : vector<4x63xf32> to vector<4x1xf32>
    %158 = vector.broadcast %157 : vector<4x1xf32> to vector<4x256xf32>
    %159 = arith.mulf %156, %158 : vector<4x256xf32>
    %160 = arith.addf %155, %159 : vector<4x256xf32>
    %c8_57 = arith.constant 8 : index
    %c113_58 = arith.constant 113 : index
    %161 = vector.load %arg11[%c8_57, %c113_58] : memref<64x512xf32, #tpu.memory_space<vmem>>, vector<4x256xf32>
    %162 = vector.extract_strided_slice %79 {offsets = [0, 11], sizes = [4, 1], strides = [1, 1]} : vector<4x63xf32> to vector<4x1xf32>
    %163 = vector.broadcast %162 : vector<4x1xf32> to vector<4x256xf32>
    %164 = arith.mulf %161, %163 : vector<4x256xf32>
    %c8_59 = arith.constant 8 : index
    %c129_60 = arith.constant 129 : index
    %165 = vector.load %arg11[%c8_59, %c129_60] : memref<64x512xf32, #tpu.memory_space<vmem>>, vector<4x256xf32>
    %166 = vector.extract_strided_slice %79 {offsets = [0, 14], sizes = [4, 1], strides = [1, 1]} : vector<4x63xf32> to vector<4x1xf32>
    %167 = vector.broadcast %166 : vector<4x1xf32> to vector<4x256xf32>
    %168 = arith.mulf %165, %167 : vector<4x256xf32>
    %169 = arith.addf %164, %168 : vector<4x256xf32>
    %c8_61 = arith.constant 8 : index
    %c145_62 = arith.constant 145 : index
    %170 = vector.load %arg11[%c8_61, %c145_62] : memref<64x512xf32, #tpu.memory_space<vmem>>, vector<4x256xf32>
    %171 = vector.extract_strided_slice %79 {offsets = [0, 17], sizes = [4, 1], strides = [1, 1]} : vector<4x63xf32> to vector<4x1xf32>
    %172 = vector.broadcast %171 : vector<4x1xf32> to vector<4x256xf32>
    %173 = arith.mulf %170, %172 : vector<4x256xf32>
    %174 = arith.addf %169, %173 : vector<4x256xf32>
    %175 = vector.broadcast %74 : vector<1x256xf32> to vector<4x256xf32>
    %176 = arith.mulf %146, %175 : vector<4x256xf32>
    %177 = arith.addf %160, %176 : vector<4x256xf32>
    %178 = vector.broadcast %78 : vector<1x256xf32> to vector<4x256xf32>
    %179 = arith.mulf %174, %178 : vector<4x256xf32>
    %180 = arith.addf %177, %179 : vector<4x256xf32>
    %181 = vector.extract_strided_slice %80 {offsets = [0, 1], sizes = [4, 1], strides = [1, 1]} : vector<4x7xf32> to vector<4x1xf32>
    %182 = vector.broadcast %181 : vector<4x1xf32> to vector<4x256xf32>
    %183 = arith.addf %180, %182 : vector<4x256xf32>
    %c12 = arith.constant 12 : index
    %c128_63 = arith.constant 128 : index
    %184 = vector.load %arg11[%c12, %c128_63] : memref<64x512xf32, #tpu.memory_space<vmem>>, vector<4x256xf32>
    tpu.vector_store %arg11[%c12, %c128_63], %183 {strides = array<i32>} : memref<64x512xf32, #tpu.memory_space<vmem>>, vector<4x256xf32>,
    %c12_64 = arith.constant 12 : index
    %c111_65 = arith.constant 111 : index
    %185 = vector.load %arg11[%c12_64, %c111_65] : memref<64x512xf32, #tpu.memory_space<vmem>>, vector<4x256xf32>
    %186 = vector.extract_strided_slice %79 {offsets = [0, 18], sizes = [4, 1], strides = [1, 1]} : vector<4x63xf32> to vector<4x1xf32>
    %187 = vector.broadcast %186 : vector<4x1xf32> to vector<4x256xf32>
    %188 = arith.mulf %185, %187 : vector<4x256xf32>
    %c12_66 = arith.constant 12 : index
    %c127_67 = arith.constant 127 : index
    %189 = vector.load %arg11[%c12_66, %c127_67] : memref<64x512xf32, #tpu.memory_space<vmem>>, vector<4x256xf32>
    %190 = vector.extract_strided_slice %79 {offsets = [0, 21], sizes = [4, 1], strides = [1, 1]} : vector<4x63xf32> to vector<4x1xf32>
    %191 = vector.broadcast %190 : vector<4x1xf32> to vector<4x256xf32>
    %192 = arith.mulf %189, %191 : vector<4x256xf32>
    %193 = arith.addf %188, %192 : vector<4x256xf32>
    %c12_68 = arith.constant 12 : index
    %c143_69 = arith.constant 143 : index
    %194 = vector.load %arg11[%c12_68, %c143_69] : memref<64x512xf32, #tpu.memory_space<vmem>>, vector<4x256xf32>
    %195 = vector.extract_strided_slice %79 {offsets = [0, 24], sizes = [4, 1], strides = [1, 1]} : vector<4x63xf32> to vector<4x1xf32>
    %196 = vector.broadcast %195 : vector<4x1xf32> to vector<4x256xf32>
    %197 = arith.mulf %194, %196 : vector<4x256xf32>
    %198 = arith.addf %193, %197 : vector<4x256xf32>
    %c12_70 = arith.constant 12 : index
    %c112_71 = arith.constant 112 : index
    %199 = vector.load %arg11[%c12_70, %c112_71] : memref<64x512xf32, #tpu.memory_space<vmem>>, vector<4x256xf32>
    %200 = vector.extract_strided_slice %79 {offsets = [0, 19], sizes = [4, 1], strides = [1, 1]} : vector<4x63xf32> to vector<4x1xf32>
    %201 = vector.broadcast %200 : vector<4x1xf32> to vector<4x256xf32>
    %202 = arith.mulf %199, %201 : vector<4x256xf32>
    %c12_72 = arith.constant 12 : index
    %c128_73 = arith.constant 128 : index
    %203 = vector.load %arg11[%c12_72, %c128_73] : memref<64x512xf32, #tpu.memory_space<vmem>>, vector<4x256xf32>
    %204 = vector.extract_strided_slice %79 {offsets = [0, 22], sizes = [4, 1], strides = [1, 1]} : vector<4x63xf32> to vector<4x1xf32>
    %205 = vector.broadcast %204 : vector<4x1xf32> to vector<4x256xf32>
    %206 = arith.mulf %203, %205 : vector<4x256xf32>
    %207 = arith.addf %202, %206 : vector<4x256xf32>
    %c12_74 = arith.constant 12 : index
    %c144_75 = arith.constant 144 : index
    %208 = vector.load %arg11[%c12_74, %c144_75] : memref<64x512xf32, #tpu.memory_space<vmem>>, vector<4x256xf32>
    %209 = vector.extract_strided_slice %79 {offsets = [0, 25], sizes = [4, 1], strides = [1, 1]} : vector<4x63xf32> to vector<4x1xf32>
    %210 = vector.broadcast %209 : vector<4x1xf32> to vector<4x256xf32>
    %211 = arith.mulf %208, %210 : vector<4x256xf32>
    %212 = arith.addf %207, %211 : vector<4x256xf32>
    %c12_76 = arith.constant 12 : index
    %c113_77 = arith.constant 113 : index
    %213 = vector.load %arg11[%c12_76, %c113_77] : memref<64x512xf32, #tpu.memory_space<vmem>>, vector<4x256xf32>
    %214 = vector.extract_strided_slice %79 {offsets = [0, 20], sizes = [4, 1], strides = [1, 1]} : vector<4x63xf32> to vector<4x1xf32>
    %215 = vector.broadcast %214 : vector<4x1xf32> to vector<4x256xf32>
    %216 = arith.mulf %213, %215 : vector<4x256xf32>
    %c12_78 = arith.constant 12 : index
    %c129_79 = arith.constant 129 : index
    %217 = vector.load %arg11[%c12_78, %c129_79] : memref<64x512xf32, #tpu.memory_space<vmem>>, vector<4x256xf32>
    %218 = vector.extract_strided_slice %79 {offsets = [0, 23], sizes = [4, 1], strides = [1, 1]} : vector<4x63xf32> to vector<4x1xf32>
    %219 = vector.broadcast %218 : vector<4x1xf32> to vector<4x256xf32>
    %220 = arith.mulf %217, %219 : vector<4x256xf32>
    %221 = arith.addf %216, %220 : vector<4x256xf32>
    %c12_80 = arith.constant 12 : index
    %c145_81 = arith.constant 145 : index
    %222 = vector.load %arg11[%c12_80, %c145_81] : memref<64x512xf32, #tpu.memory_space<vmem>>, vector<4x256xf32>
    %223 = vector.extract_strided_slice %79 {offsets = [0, 26], sizes = [4, 1], strides = [1, 1]} : vector<4x63xf32> to vector<4x1xf32>
    %224 = vector.broadcast %223 : vector<4x1xf32> to vector<4x256xf32>
    %225 = arith.mulf %222, %224 : vector<4x256xf32>
    %226 = arith.addf %221, %225 : vector<4x256xf32>
    %227 = vector.broadcast %74 : vector<1x256xf32> to vector<4x256xf32>
    %228 = arith.mulf %198, %227 : vector<4x256xf32>
    %229 = arith.addf %212, %228 : vector<4x256xf32>
    %230 = vector.broadcast %78 : vector<1x256xf32> to vector<4x256xf32>
    %231 = arith.mulf %226, %230 : vector<4x256xf32>
    %232 = arith.addf %229, %231 : vector<4x256xf32>
    %233 = vector.extract_strided_slice %80 {offsets = [0, 2], sizes = [4, 1], strides = [1, 1]} : vector<4x7xf32> to vector<4x1xf32>
    %234 = vector.broadcast %233 : vector<4x1xf32> to vector<4x256xf32>
    %235 = arith.addf %232, %234 : vector<4x256xf32>
    %c16 = arith.constant 16 : index
    %c128_82 = arith.constant 128 : index
    %236 = vector.load %arg11[%c16, %c128_82] : memref<64x512xf32, #tpu.memory_space<vmem>>, vector<4x256xf32>
    tpu.vector_store %arg11[%c16, %c128_82], %235 {strides = array<i32>} : memref<64x512xf32, #tpu.memory_space<vmem>>, vector<4x256xf32>,
    %c16_83 = arith.constant 16 : index
    %c111_84 = arith.constant 111 : index
    %237 = vector.load %arg11[%c16_83, %c111_84] : memref<64x512xf32, #tpu.memory_space<vmem>>, vector<4x256xf32>
    %238 = vector.extract_strided_slice %79 {offsets = [0, 27], sizes = [4, 1], strides = [1, 1]} : vector<4x63xf32> to vector<4x1xf32>
    %239 = vector.broadcast %238 : vector<4x1xf32> to vector<4x256xf32>
    %240 = arith.mulf %237, %239 : vector<4x256xf32>
    %c16_85 = arith.constant 16 : index
    %c127_86 = arith.constant 127 : index
    %241 = vector.load %arg11[%c16_85, %c127_86] : memref<64x512xf32, #tpu.memory_space<vmem>>, vector<4x256xf32>
    %242 = vector.extract_strided_slice %79 {offsets = [0, 30], sizes = [4, 1], strides = [1, 1]} : vector<4x63xf32> to vector<4x1xf32>
    %243 = vector.broadcast %242 : vector<4x1xf32> to vector<4x256xf32>
    %244 = arith.mulf %241, %243 : vector<4x256xf32>
    %245 = arith.addf %240, %244 : vector<4x256xf32>
    %c16_87 = arith.constant 16 : index
    %c143_88 = arith.constant 143 : index
    %246 = vector.load %arg11[%c16_87, %c143_88] : memref<64x512xf32, #tpu.memory_space<vmem>>, vector<4x256xf32>
    %247 = vector.extract_strided_slice %79 {offsets = [0, 33], sizes = [4, 1], strides = [1, 1]} : vector<4x63xf32> to vector<4x1xf32>
    %248 = vector.broadcast %247 : vector<4x1xf32> to vector<4x256xf32>
    %249 = arith.mulf %246, %248 : vector<4x256xf32>
    %250 = arith.addf %245, %249 : vector<4x256xf32>
    %c16_89 = arith.constant 16 : index
    %c112_90 = arith.constant 112 : index
    %251 = vector.load %arg11[%c16_89, %c112_90] : memref<64x512xf32, #tpu.memory_space<vmem>>, vector<4x256xf32>
    %252 = vector.extract_strided_slice %79 {offsets = [0, 28], sizes = [4, 1], strides = [1, 1]} : vector<4x63xf32> to vector<4x1xf32>
    %253 = vector.broadcast %252 : vector<4x1xf32> to vector<4x256xf32>
    %254 = arith.mulf %251, %253 : vector<4x256xf32>
    %c16_91 = arith.constant 16 : index
    %c128_92 = arith.constant 128 : index
    %255 = vector.load %arg11[%c16_91, %c128_92] : memref<64x512xf32, #tpu.memory_space<vmem>>, vector<4x256xf32>
    %256 = vector.extract_strided_slice %79 {offsets = [0, 31], sizes = [4, 1], strides = [1, 1]} : vector<4x63xf32> to vector<4x1xf32>
    %257 = vector.broadcast %256 : vector<4x1xf32> to vector<4x256xf32>
    %258 = arith.mulf %255, %257 : vector<4x256xf32>
    %259 = arith.addf %254, %258 : vector<4x256xf32>
    %c16_93 = arith.constant 16 : index
    %c144_94 = arith.constant 144 : index
    %260 = vector.load %arg11[%c16_93, %c144_94] : memref<64x512xf32, #tpu.memory_space<vmem>>, vector<4x256xf32>
    %261 = vector.extract_strided_slice %79 {offsets = [0, 34], sizes = [4, 1], strides = [1, 1]} : vector<4x63xf32> to vector<4x1xf32>
    %262 = vector.broadcast %261 : vector<4x1xf32> to vector<4x256xf32>
    %263 = arith.mulf %260, %262 : vector<4x256xf32>
    %264 = arith.addf %259, %263 : vector<4x256xf32>
    %c16_95 = arith.constant 16 : index
    %c113_96 = arith.constant 113 : index
    %265 = vector.load %arg11[%c16_95, %c113_96] : memref<64x512xf32, #tpu.memory_space<vmem>>, vector<4x256xf32>
    %266 = vector.extract_strided_slice %79 {offsets = [0, 29], sizes = [4, 1], strides = [1, 1]} : vector<4x63xf32> to vector<4x1xf32>
    %267 = vector.broadcast %266 : vector<4x1xf32> to vector<4x256xf32>
    %268 = arith.mulf %265, %267 : vector<4x256xf32>
    %c16_97 = arith.constant 16 : index
    %c129_98 = arith.constant 129 : index
    %269 = vector.load %arg11[%c16_97, %c129_98] : memref<64x512xf32, #tpu.memory_space<vmem>>, vector<4x256xf32>
    %270 = vector.extract_strided_slice %79 {offsets = [0, 32], sizes = [4, 1], strides = [1, 1]} : vector<4x63xf32> to vector<4x1xf32>
    %271 = vector.broadcast %270 : vector<4x1xf32> to vector<4x256xf32>
    %272 = arith.mulf %269, %271 : vector<4x256xf32>
    %273 = arith.addf %268, %272 : vector<4x256xf32>
    %c16_99 = arith.constant 16 : index
    %c145_100 = arith.constant 145 : index
    %274 = vector.load %arg11[%c16_99, %c145_100] : memref<64x512xf32, #tpu.memory_space<vmem>>, vector<4x256xf32>
    %275 = vector.extract_strided_slice %79 {offsets = [0, 35], sizes = [4, 1], strides = [1, 1]} : vector<4x63xf32> to vector<4x1xf32>
    %276 = vector.broadcast %275 : vector<4x1xf32> to vector<4x256xf32>
    %277 = arith.mulf %274, %276 : vector<4x256xf32>
    %278 = arith.addf %273, %277 : vector<4x256xf32>
    %279 = vector.broadcast %74 : vector<1x256xf32> to vector<4x256xf32>
    %280 = arith.mulf %250, %279 : vector<4x256xf32>
    %281 = arith.addf %264, %280 : vector<4x256xf32>
    %282 = vector.broadcast %78 : vector<1x256xf32> to vector<4x256xf32>
    %283 = arith.mulf %278, %282 : vector<4x256xf32>
    %284 = arith.addf %281, %283 : vector<4x256xf32>
    %285 = vector.extract_strided_slice %80 {offsets = [0, 3], sizes = [4, 1], strides = [1, 1]} : vector<4x7xf32> to vector<4x1xf32>
    %286 = vector.broadcast %285 : vector<4x1xf32> to vector<4x256xf32>
    %287 = arith.addf %284, %286 : vector<4x256xf32>
    %c20 = arith.constant 20 : index
    %c128_101 = arith.constant 128 : index
    %288 = vector.load %arg11[%c20, %c128_101] : memref<64x512xf32, #tpu.memory_space<vmem>>, vector<4x256xf32>
    tpu.vector_store %arg11[%c20, %c128_101], %287 {strides = array<i32>} : memref<64x512xf32, #tpu.memory_space<vmem>>, vector<4x256xf32>,
    %c20_102 = arith.constant 20 : index
    %c111_103 = arith.constant 111 : index
    %289 = vector.load %arg11[%c20_102, %c111_103] : memref<64x512xf32, #tpu.memory_space<vmem>>, vector<4x256xf32>
    %290 = vector.extract_strided_slice %79 {offsets = [0, 36], sizes = [4, 1], strides = [1, 1]} : vector<4x63xf32> to vector<4x1xf32>
    %291 = vector.broadcast %290 : vector<4x1xf32> to vector<4x256xf32>
    %292 = arith.mulf %289, %291 : vector<4x256xf32>
    %c20_104 = arith.constant 20 : index
    %c127_105 = arith.constant 127 : index
    %293 = vector.load %arg11[%c20_104, %c127_105] : memref<64x512xf32, #tpu.memory_space<vmem>>, vector<4x256xf32>
    %294 = vector.extract_strided_slice %79 {offsets = [0, 39], sizes = [4, 1], strides = [1, 1]} : vector<4x63xf32> to vector<4x1xf32>
    %295 = vector.broadcast %294 : vector<4x1xf32> to vector<4x256xf32>
    %296 = arith.mulf %293, %295 : vector<4x256xf32>
    %297 = arith.addf %292, %296 : vector<4x256xf32>
    %c20_106 = arith.constant 20 : index
    %c143_107 = arith.constant 143 : index
    %298 = vector.load %arg11[%c20_106, %c143_107] : memref<64x512xf32, #tpu.memory_space<vmem>>, vector<4x256xf32>
    %299 = vector.extract_strided_slice %79 {offsets = [0, 42], sizes = [4, 1], strides = [1, 1]} : vector<4x63xf32> to vector<4x1xf32>
    %300 = vector.broadcast %299 : vector<4x1xf32> to vector<4x256xf32>
    %301 = arith.mulf %298, %300 : vector<4x256xf32>
    %302 = arith.addf %297, %301 : vector<4x256xf32>
    %c20_108 = arith.constant 20 : index
    %c112_109 = arith.constant 112 : index
    %303 = vector.load %arg11[%c20_108, %c112_109] : memref<64x512xf32, #tpu.memory_space<vmem>>, vector<4x256xf32>
    %304 = vector.extract_strided_slice %79 {offsets = [0, 37], sizes = [4, 1], strides = [1, 1]} : vector<4x63xf32> to vector<4x1xf32>
    %305 = vector.broadcast %304 : vector<4x1xf32> to vector<4x256xf32>
    %306 = arith.mulf %303, %305 : vector<4x256xf32>
    %c20_110 = arith.constant 20 : index
    %c128_111 = arith.constant 128 : index
    %307 = vector.load %arg11[%c20_110, %c128_111] : memref<64x512xf32, #tpu.memory_space<vmem>>, vector<4x256xf32>
    %308 = vector.extract_strided_slice %79 {offsets = [0, 40], sizes = [4, 1], strides = [1, 1]} : vector<4x63xf32> to vector<4x1xf32>
    %309 = vector.broadcast %308 : vector<4x1xf32> to vector<4x256xf32>
    %310 = arith.mulf %307, %309 : vector<4x256xf32>
    %311 = arith.addf %306, %310 : vector<4x256xf32>
    %c20_112 = arith.constant 20 : index
    %c144_113 = arith.constant 144 : index
    %312 = vector.load %arg11[%c20_112, %c144_113] : memref<64x512xf32, #tpu.memory_space<vmem>>, vector<4x256xf32>
    %313 = vector.extract_strided_slice %79 {offsets = [0, 43], sizes = [4, 1], strides = [1, 1]} : vector<4x63xf32> to vector<4x1xf32>
    %314 = vector.broadcast %313 : vector<4x1xf32> to vector<4x256xf32>
    %315 = arith.mulf %312, %314 : vector<4x256xf32>
    %316 = arith.addf %311, %315 : vector<4x256xf32>
    %c20_114 = arith.constant 20 : index
    %c113_115 = arith.constant 113 : index
    %317 = vector.load %arg11[%c20_114, %c113_115] : memref<64x512xf32, #tpu.memory_space<vmem>>, vector<4x256xf32>
    %318 = vector.extract_strided_slice %79 {offsets = [0, 38], sizes = [4, 1], strides = [1, 1]} : vector<4x63xf32> to vector<4x1xf32>
    %319 = vector.broadcast %318 : vector<4x1xf32> to vector<4x256xf32>
    %320 = arith.mulf %317, %319 : vector<4x256xf32>
    %c20_116 = arith.constant 20 : index
    %c129_117 = arith.constant 129 : index
    %321 = vector.load %arg11[%c20_116, %c129_117] : memref<64x512xf32, #tpu.memory_space<vmem>>, vector<4x256xf32>
    %322 = vector.extract_strided_slice %79 {offsets = [0, 41], sizes = [4, 1], strides = [1, 1]} : vector<4x63xf32> to vector<4x1xf32>
    %323 = vector.broadcast %322 : vector<4x1xf32> to vector<4x256xf32>
    %324 = arith.mulf %321, %323 : vector<4x256xf32>
    %325 = arith.addf %320, %324 : vector<4x256xf32>
    %c20_118 = arith.constant 20 : index
    %c145_119 = arith.constant 145 : index
    %326 = vector.load %arg11[%c20_118, %c145_119] : memref<64x512xf32, #tpu.memory_space<vmem>>, vector<4x256xf32>
    %327 = vector.extract_strided_slice %79 {offsets = [0, 44], sizes = [4, 1], strides = [1, 1]} : vector<4x63xf32> to vector<4x1xf32>
    %328 = vector.broadcast %327 : vector<4x1xf32> to vector<4x256xf32>
    %329 = arith.mulf %326, %328 : vector<4x256xf32>
    %330 = arith.addf %325, %329 : vector<4x256xf32>
    %331 = vector.broadcast %74 : vector<1x256xf32> to vector<4x256xf32>
    %332 = arith.mulf %302, %331 : vector<4x256xf32>
    %333 = arith.addf %316, %332 : vector<4x256xf32>
    %334 = vector.broadcast %78 : vector<1x256xf32> to vector<4x256xf32>
    %335 = arith.mulf %330, %334 : vector<4x256xf32>
    %336 = arith.addf %333, %335 : vector<4x256xf32>
    %337 = vector.extract_strided_slice %80 {offsets = [0, 4], sizes = [4, 1], strides = [1, 1]} : vector<4x7xf32> to vector<4x1xf32>
    %338 = vector.broadcast %337 : vector<4x1xf32> to vector<4x256xf32>
    %339 = arith.addf %336, %338 : vector<4x256xf32>
    %c24 = arith.constant 24 : index
    %c128_120 = arith.constant 128 : index
    %340 = vector.load %arg11[%c24, %c128_120] : memref<64x512xf32, #tpu.memory_space<vmem>>, vector<4x256xf32>
    tpu.vector_store %arg11[%c24, %c128_120], %339 {strides = array<i32>} : memref<64x512xf32, #tpu.memory_space<vmem>>, vector<4x256xf32>,
    %c24_121 = arith.constant 24 : index
    %c111_122 = arith.constant 111 : index
    %341 = vector.load %arg11[%c24_121, %c111_122] : memref<64x512xf32, #tpu.memory_space<vmem>>, vector<4x256xf32>
    %342 = vector.extract_strided_slice %79 {offsets = [0, 45], sizes = [4, 1], strides = [1, 1]} : vector<4x63xf32> to vector<4x1xf32>
    %343 = vector.broadcast %342 : vector<4x1xf32> to vector<4x256xf32>
    %344 = arith.mulf %341, %343 : vector<4x256xf32>
    %c24_123 = arith.constant 24 : index
    %c127_124 = arith.constant 127 : index
    %345 = vector.load %arg11[%c24_123, %c127_124] : memref<64x512xf32, #tpu.memory_space<vmem>>, vector<4x256xf32>
    %346 = vector.extract_strided_slice %79 {offsets = [0, 48], sizes = [4, 1], strides = [1, 1]} : vector<4x63xf32> to vector<4x1xf32>
    %347 = vector.broadcast %346 : vector<4x1xf32> to vector<4x256xf32>
    %348 = arith.mulf %345, %347 : vector<4x256xf32>
    %349 = arith.addf %344, %348 : vector<4x256xf32>
    %c24_125 = arith.constant 24 : index
    %c143_126 = arith.constant 143 : index
    %350 = vector.load %arg11[%c24_125, %c143_126] : memref<64x512xf32, #tpu.memory_space<vmem>>, vector<4x256xf32>
    %351 = vector.extract_strided_slice %79 {offsets = [0, 51], sizes = [4, 1], strides = [1, 1]} : vector<4x63xf32> to vector<4x1xf32>
    %352 = vector.broadcast %351 : vector<4x1xf32> to vector<4x256xf32>
    %353 = arith.mulf %350, %352 : vector<4x256xf32>
    %354 = arith.addf %349, %353 : vector<4x256xf32>
    %c24_127 = arith.constant 24 : index
    %c112_128 = arith.constant 112 : index
    %355 = vector.load %arg11[%c24_127, %c112_128] : memref<64x512xf32, #tpu.memory_space<vmem>>, vector<4x256xf32>
    %356 = vector.extract_strided_slice %79 {offsets = [0, 46], sizes = [4, 1], strides = [1, 1]} : vector<4x63xf32> to vector<4x1xf32>
    %357 = vector.broadcast %356 : vector<4x1xf32> to vector<4x256xf32>
    %358 = arith.mulf %355, %357 : vector<4x256xf32>
    %c24_129 = arith.constant 24 : index
    %c128_130 = arith.constant 128 : index
    %359 = vector.load %arg11[%c24_129, %c128_130] : memref<64x512xf32, #tpu.memory_space<vmem>>, vector<4x256xf32>
    %360 = vector.extract_strided_slice %79 {offsets = [0, 49], sizes = [4, 1], strides = [1, 1]} : vector<4x63xf32> to vector<4x1xf32>
    %361 = vector.broadcast %360 : vector<4x1xf32> to vector<4x256xf32>
    %362 = arith.mulf %359, %361 : vector<4x256xf32>
    %363 = arith.addf %358, %362 : vector<4x256xf32>
    %c24_131 = arith.constant 24 : index
    %c144_132 = arith.constant 144 : index
    %364 = vector.load %arg11[%c24_131, %c144_132] : memref<64x512xf32, #tpu.memory_space<vmem>>, vector<4x256xf32>
    %365 = vector.extract_strided_slice %79 {offsets = [0, 52], sizes = [4, 1], strides = [1, 1]} : vector<4x63xf32> to vector<4x1xf32>
    %366 = vector.broadcast %365 : vector<4x1xf32> to vector<4x256xf32>
    %367 = arith.mulf %364, %366 : vector<4x256xf32>
    %368 = arith.addf %363, %367 : vector<4x256xf32>
    %c24_133 = arith.constant 24 : index
    %c113_134 = arith.constant 113 : index
    %369 = vector.load %arg11[%c24_133, %c113_134] : memref<64x512xf32, #tpu.memory_space<vmem>>, vector<4x256xf32>
    %370 = vector.extract_strided_slice %79 {offsets = [0, 47], sizes = [4, 1], strides = [1, 1]} : vector<4x63xf32> to vector<4x1xf32>
    %371 = vector.broadcast %370 : vector<4x1xf32> to vector<4x256xf32>
    %372 = arith.mulf %369, %371 : vector<4x256xf32>
    %c24_135 = arith.constant 24 : index
    %c129_136 = arith.constant 129 : index
    %373 = vector.load %arg11[%c24_135, %c129_136] : memref<64x512xf32, #tpu.memory_space<vmem>>, vector<4x256xf32>
    %374 = vector.extract_strided_slice %79 {offsets = [0, 50], sizes = [4, 1], strides = [1, 1]} : vector<4x63xf32> to vector<4x1xf32>
    %375 = vector.broadcast %374 : vector<4x1xf32> to vector<4x256xf32>
    %376 = arith.mulf %373, %375 : vector<4x256xf32>
    %377 = arith.addf %372, %376 : vector<4x256xf32>
    %c24_137 = arith.constant 24 : index
    %c145_138 = arith.constant 145 : index
    %378 = vector.load %arg11[%c24_137, %c145_138] : memref<64x512xf32, #tpu.memory_space<vmem>>, vector<4x256xf32>
    %379 = vector.extract_strided_slice %79 {offsets = [0, 53], sizes = [4, 1], strides = [1, 1]} : vector<4x63xf32> to vector<4x1xf32>
    %380 = vector.broadcast %379 : vector<4x1xf32> to vector<4x256xf32>
    %381 = arith.mulf %378, %380 : vector<4x256xf32>
    %382 = arith.addf %377, %381 : vector<4x256xf32>
    %383 = vector.broadcast %74 : vector<1x256xf32> to vector<4x256xf32>
    %384 = arith.mulf %354, %383 : vector<4x256xf32>
    %385 = arith.addf %368, %384 : vector<4x256xf32>
    %386 = vector.broadcast %78 : vector<1x256xf32> to vector<4x256xf32>
    %387 = arith.mulf %382, %386 : vector<4x256xf32>
    %388 = arith.addf %385, %387 : vector<4x256xf32>
    %389 = vector.extract_strided_slice %80 {offsets = [0, 5], sizes = [4, 1], strides = [1, 1]} : vector<4x7xf32> to vector<4x1xf32>
    %390 = vector.broadcast %389 : vector<4x1xf32> to vector<4x256xf32>
    %391 = arith.addf %388, %390 : vector<4x256xf32>
    %c28 = arith.constant 28 : index
    %c128_139 = arith.constant 128 : index
    %392 = vector.load %arg11[%c28, %c128_139] : memref<64x512xf32, #tpu.memory_space<vmem>>, vector<4x256xf32>
    tpu.vector_store %arg11[%c28, %c128_139], %391 {strides = array<i32>} : memref<64x512xf32, #tpu.memory_space<vmem>>, vector<4x256xf32>,
    %c28_140 = arith.constant 28 : index
    %c111_141 = arith.constant 111 : index
    %393 = vector.load %arg11[%c28_140, %c111_141] : memref<64x512xf32, #tpu.memory_space<vmem>>, vector<4x256xf32>
    %394 = vector.extract_strided_slice %79 {offsets = [0, 54], sizes = [4, 1], strides = [1, 1]} : vector<4x63xf32> to vector<4x1xf32>
    %395 = vector.broadcast %394 : vector<4x1xf32> to vector<4x256xf32>
    %396 = arith.mulf %393, %395 : vector<4x256xf32>
    %c28_142 = arith.constant 28 : index
    %c127_143 = arith.constant 127 : index
    %397 = vector.load %arg11[%c28_142, %c127_143] : memref<64x512xf32, #tpu.memory_space<vmem>>, vector<4x256xf32>
    %398 = vector.extract_strided_slice %79 {offsets = [0, 57], sizes = [4, 1], strides = [1, 1]} : vector<4x63xf32> to vector<4x1xf32>
    %399 = vector.broadcast %398 : vector<4x1xf32> to vector<4x256xf32>
    %400 = arith.mulf %397, %399 : vector<4x256xf32>
    %401 = arith.addf %396, %400 : vector<4x256xf32>
    %c28_144 = arith.constant 28 : index
    %c143_145 = arith.constant 143 : index
    %402 = vector.load %arg11[%c28_144, %c143_145] : memref<64x512xf32, #tpu.memory_space<vmem>>, vector<4x256xf32>
    %403 = vector.extract_strided_slice %79 {offsets = [0, 60], sizes = [4, 1], strides = [1, 1]} : vector<4x63xf32> to vector<4x1xf32>
    %404 = vector.broadcast %403 : vector<4x1xf32> to vector<4x256xf32>
    %405 = arith.mulf %402, %404 : vector<4x256xf32>
    %406 = arith.addf %401, %405 : vector<4x256xf32>
    %c28_146 = arith.constant 28 : index
    %c112_147 = arith.constant 112 : index
    %407 = vector.load %arg11[%c28_146, %c112_147] : memref<64x512xf32, #tpu.memory_space<vmem>>, vector<4x256xf32>
    %408 = vector.extract_strided_slice %79 {offsets = [0, 55], sizes = [4, 1], strides = [1, 1]} : vector<4x63xf32> to vector<4x1xf32>
    %409 = vector.broadcast %408 : vector<4x1xf32> to vector<4x256xf32>
    %410 = arith.mulf %407, %409 : vector<4x256xf32>
    %c28_148 = arith.constant 28 : index
    %c128_149 = arith.constant 128 : index
    %411 = vector.load %arg11[%c28_148, %c128_149] : memref<64x512xf32, #tpu.memory_space<vmem>>, vector<4x256xf32>
    %412 = vector.extract_strided_slice %79 {offsets = [0, 58], sizes = [4, 1], strides = [1, 1]} : vector<4x63xf32> to vector<4x1xf32>
    %413 = vector.broadcast %412 : vector<4x1xf32> to vector<4x256xf32>
    %414 = arith.mulf %411, %413 : vector<4x256xf32>
    %415 = arith.addf %410, %414 : vector<4x256xf32>
    %c28_150 = arith.constant 28 : index
    %c144_151 = arith.constant 144 : index
    %416 = vector.load %arg11[%c28_150, %c144_151] : memref<64x512xf32, #tpu.memory_space<vmem>>, vector<4x256xf32>
    %417 = vector.extract_strided_slice %79 {offsets = [0, 61], sizes = [4, 1], strides = [1, 1]} : vector<4x63xf32> to vector<4x1xf32>
    %418 = vector.broadcast %417 : vector<4x1xf32> to vector<4x256xf32>
    %419 = arith.mulf %416, %418 : vector<4x256xf32>
    %420 = arith.addf %415, %419 : vector<4x256xf32>
    %c28_152 = arith.constant 28 : index
    %c113_153 = arith.constant 113 : index
    %421 = vector.load %arg11[%c28_152, %c113_153] : memref<64x512xf32, #tpu.memory_space<vmem>>, vector<4x256xf32>
    %422 = vector.extract_strided_slice %79 {offsets = [0, 56], sizes = [4, 1], strides = [1, 1]} : vector<4x63xf32> to vector<4x1xf32>
    %423 = vector.broadcast %422 : vector<4x1xf32> to vector<4x256xf32>
    %424 = arith.mulf %421, %423 : vector<4x256xf32>
    %c28_154 = arith.constant 28 : index
    %c129_155 = arith.constant 129 : index
    %425 = vector.load %arg11[%c28_154, %c129_155] : memref<64x512xf32, #tpu.memory_space<vmem>>, vector<4x256xf32>
    %426 = vector.extract_strided_slice %79 {offsets = [0, 59], sizes = [4, 1], strides = [1, 1]} : vector<4x63xf32> to vector<4x1xf32>
    %427 = vector.broadcast %426 : vector<4x1xf32> to vector<4x256xf32>
    %428 = arith.mulf %425, %427 : vector<4x256xf32>
    %429 = arith.addf %424, %428 : vector<4x256xf32>
    %c28_156 = arith.constant 28 : index
    %c145_157 = arith.constant 145 : index
    %430 = vector.load %arg11[%c28_156, %c145_157] : memref<64x512xf32, #tpu.memory_space<vmem>>, vector<4x256xf32>
    %431 = vector.extract_strided_slice %79 {offsets = [0, 62], sizes = [4, 1], strides = [1, 1]} : vector<4x63xf32> to vector<4x1xf32>
    %432 = vector.broadcast %431 : vector<4x1xf32> to vector<4x256xf32>
    %433 = arith.mulf %430, %432 : vector<4x256xf32>
    %434 = arith.addf %429, %433 : vector<4x256xf32>
    %435 = vector.broadcast %74 : vector<1x256xf32> to vector<4x256xf32>
    %436 = arith.mulf %406, %435 : vector<4x256xf32>
    %437 = arith.addf %420, %436 : vector<4x256xf32>
    %438 = vector.broadcast %78 : vector<1x256xf32> to vector<4x256xf32>
    %439 = arith.mulf %434, %438 : vector<4x256xf32>
    %440 = arith.addf %437, %439 : vector<4x256xf32>
    %441 = vector.extract_strided_slice %80 {offsets = [0, 6], sizes = [4, 1], strides = [1, 1]} : vector<4x7xf32> to vector<4x1xf32>
    %442 = vector.broadcast %441 : vector<4x1xf32> to vector<4x256xf32>
    %443 = arith.addf %440, %442 : vector<4x256xf32>
    %c32 = arith.constant 32 : index
    %c128_158 = arith.constant 128 : index
    %444 = vector.load %arg11[%c32, %c128_158] : memref<64x512xf32, #tpu.memory_space<vmem>>, vector<4x256xf32>
    tpu.vector_store %arg11[%c32, %c128_158], %443 {strides = array<i32>} : memref<64x512xf32, #tpu.memory_space<vmem>>, vector<4x256xf32>,
    %c4_159 = arith.constant 4 : index
    %c128_160 = arith.constant 128 : index
    %445 = vector.load %arg11[%c4_159, %c128_160] : memref<64x512xf32, #tpu.memory_space<vmem>>, vector<32x256xf32>
    %c0_161 = arith.constant 0 : index
    %c0_162 = arith.constant 0 : index
    %446 = vector.load %arg6[%c0_161, %c0_162] : memref<64x32xf32, #tpu.memory_space<vmem>>, vector<64x32xf32>
    %cst_163 = arith.constant dense<0.000000e+00> : vector<64x256xf32>
    %447 = tpu.matmul %446, %445, %cst_163 {dimension_numbers = #tpu.dot_dimension_numbers<[1], [0], [0], [1], [0, 0, 1, 1], [], []>} : vector<64x32xf32>, vector<32x256xf32>, vector<64x256xf32> -> vector<64x256xf32>
    %c0_164 = arith.constant 0 : index
    %c0_165 = arith.constant 0 : index
    %448 = vector.load %arg7[%c0_164, %c0_165] : memref<64x1xf32, #tpu.memory_space<vmem>>, vector<64x1xf32>
    %449 = vector.broadcast %448 : vector<64x1xf32> to vector<64x256xf32>
    %450 = arith.addf %447, %449 : vector<64x256xf32>
    %cst_166 = arith.constant 5.000000e-01 : f32
    %451 = vector.broadcast %cst_166 : f32 to vector<64x256xf32>
    %452 = arith.mulf %451, %450 : vector<64x256xf32>
    %cst_167 = arith.constant 0.707106769 : f32
    %453 = vector.broadcast %cst_167 : f32 to vector<64x256xf32>
    %454 = arith.mulf %450, %453 : vector<64x256xf32>
    %cst_168 = arith.constant 0.000000e+00 : f32
    %455 = vector.broadcast %cst_168 : f32 to vector<64x256xf32>
    %456 = arith.cmpf oge, %454, %455 : vector<64x256xf32>
    %cst_169 = arith.constant 1.000000e+00 : f32
    %cst_170 = arith.constant -1.000000e+00 : f32
    %457 = vector.broadcast %cst_169 : f32 to vector<64x256xf32>
    %458 = vector.broadcast %cst_170 : f32 to vector<64x256xf32>
    %459 = arith.select %456, %457, %458 : vector<64x256xi1>, vector<64x256xf32>
    %460 = math.absf %454 : vector<64x256xf32>
    %cst_171 = arith.constant 0.327591091 : f32
    %461 = vector.broadcast %cst_171 : f32 to vector<64x256xf32>
    %462 = arith.mulf %461, %460 : vector<64x256xf32>
    %cst_172 = arith.constant 1.000000e+00 : f32
    %463 = vector.broadcast %cst_172 : f32 to vector<64x256xf32>
    %464 = arith.addf %463, %462 : vector<64x256xf32>
    %465 = tpu.reciprocal %464 {approx = true} : vector<64x256xf32> -> vector<64x256xf32>
    %cst_173 = arith.constant 1.06140542 : f32
    %466 = vector.broadcast %cst_173 : f32 to vector<64x256xf32>
    %467 = arith.mulf %465, %466 : vector<64x256xf32>
    %cst_174 = arith.constant -1.45315206 : f32
    %468 = vector.broadcast %cst_174 : f32 to vector<64x256xf32>
    %469 = arith.addf %468, %467 : vector<64x256xf32>
    %470 = arith.mulf %465, %469 : vector<64x256xf32>
    %cst_175 = arith.constant 1.42141378 : f32
    %471 = vector.broadcast %cst_175 : f32 to vector<64x256xf32>
    %472 = arith.addf %471, %470 : vector<64x256xf32>
    %473 = arith.mulf %465, %472 : vector<64x256xf32>
    %cst_176 = arith.constant -0.284496725 : f32
    %474 = vector.broadcast %cst_176 : f32 to vector<64x256xf32>
    %475 = arith.addf %474, %473 : vector<64x256xf32>
    %476 = arith.mulf %465, %475 : vector<64x256xf32>
    %cst_177 = arith.constant 0.254829586 : f32
    %477 = vector.broadcast %cst_177 : f32 to vector<64x256xf32>
    %478 = arith.addf %477, %476 : vector<64x256xf32>
    %479 = arith.mulf %465, %478 : vector<64x256xf32>
    %cst_178 = arith.constant 0.000000e+00 : f32
    %480 = vector.broadcast %cst_178 : f32 to vector<64x256xf32>
    %481 = arith.subf %480, %460 : vector<64x256xf32>
    %482 = arith.mulf %481, %460 : vector<64x256xf32>
    %483 = math.exp %482 : vector<64x256xf32>
    %484 = arith.mulf %479, %483 : vector<64x256xf32>
    %cst_179 = arith.constant 1.000000e+00 : f32
    %485 = vector.broadcast %cst_179 : f32 to vector<64x256xf32>
    %486 = arith.subf %485, %484 : vector<64x256xf32>
    %487 = arith.mulf %459, %486 : vector<64x256xf32>
    %cst_180 = arith.constant 1.000000e+00 : f32
    %488 = vector.broadcast %cst_180 : f32 to vector<64x256xf32>
    %489 = arith.addf %488, %487 : vector<64x256xf32>
    %490 = arith.mulf %452, %489 : vector<64x256xf32>
    %c0_181 = arith.constant 0 : index
    %c0_182 = arith.constant 0 : index
    %491 = vector.load %arg9[%c0_181, %c0_182] : memref<64x256xf32, #tpu.memory_space<vmem>>, vector<64x256xf32>
    tpu.vector_store %arg9[%c0_181, %c0_182], %490 {strides = array<i32>} : memref<64x256xf32, #tpu.memory_space<vmem>>, vector<64x256xf32>,
    %c0_183 = arith.constant 0 : index
    %c128_184 = arith.constant 128 : index
    %492 = vector.load %arg11[%c0_183, %c128_184] : memref<64x512xf32, #tpu.memory_space<vmem>>, vector<64x256xf32>
    tpu.vector_store %arg11[%c0_183, %c128_184], %490 {strides = array<i32>} : memref<64x512xf32, #tpu.memory_space<vmem>>, vector<64x256xf32>,
    %c0_185 = arith.constant 0 : index
    %c129_186 = arith.constant 129 : index
    %493 = vector.load %arg11[%c0_185, %c129_186] : memref<64x512xf32, #tpu.memory_space<vmem>>, vector<64x256xf32>
    %494 = arith.maximumf %490, %493 : vector<64x256xf32>
    %c0_187 = arith.constant 0 : index
    %c128_188 = arith.constant 128 : index
    %495 = vector.load %arg11[%c0_187, %c128_188] : memref<64x512xf32, #tpu.memory_space<vmem>>, vector<64x256xf32>
    tpu.vector_store %arg11[%c0_187, %c128_188], %494 {strides = array<i32>} : memref<64x512xf32, #tpu.memory_space<vmem>>, vector<64x256xf32>,
    %c0_189 = arith.constant 0 : index
    %c144_190 = arith.constant 144 : index
    %496 = vector.load %arg11[%c0_189, %c144_190] : memref<64x512xf32, #tpu.memory_space<vmem>>, vector<64x256xf32>
    %497 = arith.maximumf %494, %496 : vector<64x256xf32>
    %c0_191 = arith.constant 0 : index
    %c0_192 = arith.constant 0 : index
    %498 = vector.load %arg8[%c0_191, %c0_192] : memref<256x64xf32, #tpu.memory_space<vmem>>, vector<256x64xf32>
    %cst_193 = arith.constant dense<0.000000e+00> : vector<64x64xf32>
    %499 = tpu.matmul %497, %498, %cst_193 {dimension_numbers = #tpu.dot_dimension_numbers<[1], [0], [0], [1], [0, 0, 1, 1], [], []>} : vector<64x256xf32>, vector<256x64xf32>, vector<64x64xf32> -> vector<64x64xf32>
    %c0_194 = arith.constant 0 : index
    %c0_195 = arith.constant 0 : index
    %500 = vector.load %arg10[%c0_194, %c0_195] : memref<64x64xf32, #tpu.memory_space<vmem>>, vector<64x64xf32>
    tpu.vector_store %arg10[%c0_194, %c0_195], %499 {strides = array<i32>} : memref<64x64xf32, #tpu.memory_space<vmem>>, vector<64x64xf32>,
    return
  }
  func.func @transform_0(%arg0: i32) -> (i32, i32) {
    %c0_i32 = arith.constant 0 : i32
    %c0_i32_0 = arith.constant 0 : i32
    return %arg0, %c0_i32 : i32, i32
  }
  func.func @transform_1(%arg0: i32) -> (i32, i32) {
    %c0_i32 = arith.constant 0 : i32
    %c0_i32_0 = arith.constant 0 : i32
    %c0_i32_1 = arith.constant 0 : i32
    return %c0_i32, %c0_i32_0 : i32, i32
  }
  func.func @transform_2(%arg0: i32) -> (i32, i32) {
    %c0_i32 = arith.constant 0 : i32
    %c0_i32_0 = arith.constant 0 : i32
    %c0_i32_1 = arith.constant 0 : i32
    return %c0_i32, %c0_i32_0 : i32, i32
  }
  func.func @transform_3(%arg0: i32) -> (i32, i32) {
    %c0_i32 = arith.constant 0 : i32
    %c0_i32_0 = arith.constant 0 : i32
    %c0_i32_1 = arith.constant 0 : i32
    return %c0_i32, %c0_i32_0 : i32, i32
  }
  func.func @transform_4(%arg0: i32) -> (i32, i32) {
    %c0_i32 = arith.constant 0 : i32
    %c0_i32_0 = arith.constant 0 : i32
    %c0_i32_1 = arith.constant 0 : i32
    return %c0_i32, %c0_i32_0 : i32, i32
  }
  func.func @transform_5(%arg0: i32) -> (i32, i32) {
    %c0_i32 = arith.constant 0 : i32
    %c0_i32_0 = arith.constant 0 : i32
    %c0_i32_1 = arith.constant 0 : i32
    return %c0_i32, %c0_i32_0 : i32, i32
  }
  func.func @transform_6(%arg0: i32) -> (i32, i32) {
    %c0_i32 = arith.constant 0 : i32
    %c0_i32_0 = arith.constant 0 : i32
    %c0_i32_1 = arith.constant 0 : i32
    return %c0_i32, %c0_i32_0 : i32, i32
  }
  func.func @transform_7(%arg0: i32) -> (i32, i32) {
    %c0_i32 = arith.constant 0 : i32
    %c0_i32_0 = arith.constant 0 : i32
    %c0_i32_1 = arith.constant 0 : i32
    return %c0_i32, %c0_i32_0 : i32, i32
  }
  func.func @transform_8(%arg0: i32) -> (i32, i32) {
    %c0_i32 = arith.constant 0 : i32
    %c0_i32_0 = arith.constant 0 : i32
    return %arg0, %c0_i32 : i32, i32
  }
  func.func @transform_9(%arg0: i32) -> (i32, i32) {
    %c0_i32 = arith.constant 0 : i32
    %c0_i32_0 = arith.constant 0 : i32
    return %arg0, %c0_i32 : i32, i32
  }
}

</mosaic_0001>

<bundles_post_ra>
// kernel: unet_encoder_forward.1
= control target key start
LH: loop header
LB: loop body
LE: loop exit
PB: predicated region body
PF: predicated region fallthrough
CT: control target
= control target key end

     0   :  { %v3487_v2 = vmov 0.0   ;;  %vm58_vm0 = vcmask 64512   ;;  %v3488_v4 = vmov 0   ;;  %v3489_v6 = vmov 6   ;;  %s3500_s18 = smov 111   ;;  %s3501_s19 = smov 113   ;;  %s5084_s0 = inlined_call_operand.vmem [shape: f32[8,256], index: 0, kind: input, shape index: {}]   ;;  %s5085_s1 = inlined_call_operand.vmem [shape: f32[8,8], index: 1, kind: input, shape index: {}]   ;;  %s5086_s2 = inlined_call_operand.vmem [shape: f32[8,1], index: 2, kind: input, shape index: {}]   ;;  %s5087_s3 = inlined_call_operand.vmem [shape: f32[4,63], index: 3, kind: input, shape index: {}]   ;;  %s5088_s4 = inlined_call_operand.vmem [shape: f32[4,7], index: 4, kind: input, shape index: {}]   ;;  %s5089_s6 = inlined_call_operand.vmem [shape: f32[64,1], index: 6, kind: input, shape index: {}]   ;;  %s5090_s5 = inlined_call_operand.vmem [shape: f32[64,32], index: 5, kind: input, shape index: {}]   ;;  %s5091_s8 = inlined_call_operand.vmem [shape: f32[64,256], index: 8, kind: output, shape index: {0}]   ;;  %s5092_s7 = inlined_call_operand.vmem [shape: f32[256,64], index: 7, kind: input, shape index: {}]   ;;  %s5093_s9 = inlined_call_operand.vmem [shape: f32[64,64], index: 9, kind: output, shape index: {1}]  }
   0x1   :  { %v50_v0 = vld [vmem:[%s5084_s0 + $0x8] sm:$0xff]  ;;  %v49_v1 = vld [vmem:[%s5084_s0] sm:$0xff]  ;;  %126 = vmatprep.mubr.f32.mxu0 %v3487_v2  ;;  %3261 = vset.pattern.permute.xlu0 %v3488_v4  ;;  %v3490_v8 = vmov 3   ;;  %v3491_v9 = vmov 5   ;;  %v3492_v10 = vmov 8   ;;  %v3493_v11 = vmov 7  }
   0x2   :  { %v51_v3 = vld [vmem:[%s5085_s1] sm:$0xff]  ;;  %62 = vmatprep.subr.mxu0 %v50_v0  ;;  %3263 = vset.pattern.permute.xlu1 %v3489_v6  ;;  %v3494_v12 = vmov 4   ;;  %v3495_v13 = vmov 2   ;;  %vm31_vm1 = vcmask 1048440   ;;  %vm40_vm2 = vcmask 138240   ;;  %s3496_s1 = smov 112  }
   0x3   :  { %v52_v5 = vld [vmem:[%s5086_s2] sm:$0xff]  ;;  %63 = vmatpush1.msra.mxu0 %v49_v1  ;;  %2109 = vmatprep.mubr.f32.mxu1 %v3487_v2  ;;  %32 = vst.msk [vmem:[#allocation2] sm:$0xff] %vm31_vm1, %v3487_v2  ;;  %33 = vst.msk [vmem:[#allocation2 + $0x20] sm:$0xff] %vm31_vm1, %v3487_v2  ;;  %s3497_s2 = smov 96   ;;  %v3498_v25 = vmov 1   ;;  %vm271_vm9 = vcmask 916480  }
   0x4   :  { %v3627_v7 = vld [vmem:[%s5087_s3] sm:$0xf]  ;;  %55 = vperm.xlu0 %3261, %v52_v5   ;;  %3064 = vmatmul.mubr.msk.f32.vlgmr.msra.gmra.mrb[0].mxu0 %vm58_vm0, %v51_v3  ;;  %34 = vst.msk [vmem:[#allocation2 + $0x40] sm:$0xff] %vm31_vm1, %v3487_v2  ;;  %35 = vst.msk [vmem:[#allocation2 + $0x60] sm:$0xff] %vm31_vm1, %v3487_v2  ;;  %vm299_vm10 = vcmask 785408   ;;  %vm419_vm11 = vcmask 908288  }
   0x5   :  { %284 = vperm.xlu1 %3263, %v3627_v7   ;;  %41 = vst.msk [vmem:[#allocation2 + $0x18] sm:$0xff] %vm40_vm2, %v3487_v2  ;;  %42 = vst.msk [vmem:[#allocation2 + $0x38] sm:$0xff] %vm40_vm2, %v3487_v2  ;;  %s3503_s22 = smov 1   ;;  %vm451_vm12 = vcmask 924672   ;;  %s3504_s23 = smov 127   ;;  %vm436_vm13 = vcmask 7168  }
   0x6   :  { %43 = vst.msk [vmem:[#allocation2 + $0x58] sm:$0xff] %vm40_vm2, %v3487_v2  ;;  %44 = vst.msk [vmem:[#allocation2 + $0x78] sm:$0xff] %vm40_vm2, %v3487_v2  ;;  %vm468_vm14 = vcmask 1039360   ;;  %s3507_s24 = smov 16   ;;  %vm494_vm15 = vcmask 130048   ;;  %vm1993_vm0 = vcmask 1043456  }
   0x7   :  { %45 = vst.msk [vmem:[#allocation2 + $0x98] sm:$0xff] %vm40_vm2, %v3487_v2  ;;  %46 = vst.msk [vmem:[#allocation2 + $0xb8] sm:$0xff] %vm40_vm2, %v3487_v2  ;;  %vm2020_vm1 = vcmask 261120  }
   0x8   :  { %3262 = vset.pattern.permute.xlu0 %v3490_v8  ;;  %47 = vst.msk [vmem:[#allocation2 + $0xd8] sm:$0xff] %vm40_vm2, %v3487_v2  ;;  %48 = vst.msk [vmem:[#allocation2 + $0xf8] sm:$0xff] %vm40_vm2, %v3487_v2 }
   0x9   :  { %3264 = vset.pattern.permute.xlu1 %v3491_v9  ;;  %256 = vperm.xlu0 %3262, %v3627_v7  }
   0xa   :  { %366 = vperm.xlu1 %3264, %v3627_v7   ;;  %v3658_v16 = vld [vmem:[#allocation2] sm:$0xf] }
   0xc   :  { %v3666_v20 = vld [vmem:[#allocation2 + $0x18] sm:$0xf] }
   0xd   :  { %3266 = vset.pattern.permute.xlu0 %v3488_v4 }
   0xe   :  { %3265 = vset.pattern.permute.xlu1 %v3492_v10  ;;  %249 = vperm.xlu0 %3266, %v3627_v7  }
   0xf   :  { %390 = vperm.xlu1 %3265, %v3627_v7  }
  0x12   :  { %3269 = vset.pattern.permute.xlu0 %v3493_v11  ;;  %v3499_v11 = vmov -1.0  }
  0x13   :  { %3267 = vset.pattern.permute.xlu1 %v3494_v12  ;;  %335 = vperm.xlu0 %3269, %v3627_v7  }
  0x14   :  { %316 = vperm.xlu1 %3267, %v3627_v7  }
  0x17   :  { %3280 = vset.pattern.permute.xlu0 %v3498_v25 }
  0x18   :  { %3268 = vset.pattern.permute.xlu1 %v3495_v13 }
  0x19   :  { %359 = vperm.xlu1 %3268, %v3627_v7  }
  0x1d   :  { %3281 = vset.pattern.permute.xlu1 %v3488_v4 }
  0x83   :  { %v56_v14 = vpop.permute.xlu0 %55 }
  0x84   :  { %v3656_v15 = vpop.permute.xlu1 %284 }
  0x85   :  { %v289_v21 = vmul.f32 %v3656_v15, %v3666_v20 }
  0x88   :  { %v3660_v17 = vpop.permute.xlu0 %256 }
  0x89   :  { %v3662_v18 = vpop.permute.xlu1 %366  ;;  %v259_v19 = vmul.f32 %v3660_v17, %v3658_v16 }
  0x8a   :  { %v371_v23 = vmul.f32 %v3662_v18, %v3666_v20 }
  0x8b   :  { %265 = vrot.lane.b32.xlu1 %v259_v19, %s3496_s1 }
  0x8c   :  { %379 = vrot.lane.b32.xlu0 %v371_v23, %s3496_s1 }
  0x8e   :  { %v3671_v22 = vpop.permute.xlu1 %390 }
  0x8f   :  { %297 = vrot.lane.b32.xlu1 %v289_v21, %s3497_s2  ;;  %v395_v24 = vmul.f32 %v3671_v22, %v3666_v20 }
  0x93   :  { %403 = vrot.lane.b32.xlu1 %v395_v24, %s3497_s2 }
  0xd7   :  { %v128_v26 = vpop.f32.mrb[0].mxu0 }
  0xd8   :  { %v129_v27 = vadd.f32 %v128_v26, %v56_v14  ;;  %v130_v28 = vpop.f32.mrb[1].mxu0 }
  0xd9   :  { %v131_v29 = vadd.f32 %v130_v28, %v56_v14 }
  0xda   :  { %v135_v30 = vmul.f32 0.70710677, %v129_v27  ;;  %v133_v26 = vmul.f32 0.5, %v129_v27 }
  0xdb   :  { %v136_v31 = vmul.f32 0.70710677, %v131_v29 }
  0xdc   :  { %v141_v32 = vand.u32 2147483647, %v135_v30  ;;  %vm137_vm3 = vcmp.ge.f32.partialorder %v135_v30, 0.0 }
  0xdd   :  { %v142_v33 = vand.u32 2147483647, %v136_v31  ;;  %vm138_vm4 = vcmp.ge.f32.partialorder %v136_v31, 0.0  ;;  %v139_v14 = vsel %vm137_vm3, 1.0, %v3499_v11 }
  0xde   :  { %v143_v34 = vmul.f32 0.3275911, %v141_v32  ;;  %v167_v38 = vsub.f32 0.0, %v141_v32  ;;  %v140_v23 = vsel %vm138_vm4, 1.0, %v3499_v11 }
  0xdf   :  { %v144_v35 = vmul.f32 0.3275911, %v142_v33  ;;  %v168_v39 = vsub.f32 0.0, %v142_v33 }
  0xe0   :  { %v145_v36 = vadd.f32 1.0, %v143_v34  ;;  %v169_v41 = vmul.f32 %v167_v38, %v141_v32  ;;  %v134_v32 = vmul.f32 0.5, %v131_v29 }
  0xe1   :  { %v146_v37 = vadd.f32 1.0, %v144_v35  ;;  %v170_v44 = vmul.f32 %v168_v39, %v142_v33 }
  0xe2   :  { %3404 = vrcp.f32 %v145_v36  ;;  %v171_v47 = vmul.f32 1.442695, %v169_v41 }
  0xe3   :  { %3406 = vrcp.f32 %v146_v37  ;;  %v173_v50 = vmul.f32 1.442695, %v170_v44  ;;  %v203_v37 = vlaneseq }
  0xe4   :  { %3408 = vpow2.f32 %v171_v47 }
  0xe5   :  { %3410 = vpow2.f32 %v173_v50  ;;  %v204_v41 = vand.u32 127, %v203_v37 }
  0xe7   :  { %v210_v47 = vand.u32 15, %v204_v41 }
  0xe9   :  { %vm230_vm5 = vcmp.ge.s32.totalorder %v210_v47, 1  ;;  %vm236_vm7 = vcmp.le.s32.totalorder %v210_v47, 14 }
  0xec   :  { %v3405_v40 = vpop.eup %3404 }
  0xed   :  { %v3407_v42 = vpop.eup %3406  ;;  %v149_v43 = vmul.f32 1.0614054, %v3405_v40 }
  0xee   :  { %v150_v45 = vmul.f32 1.0614054, %v3407_v42  ;;  %v3409_v63 = vpop.eup %3408 }
  0xef   :  { %v151_v46 = vadd.f32 -1.4531521, %v149_v43  ;;  %v3411_v1 = vpop.eup %3410  ;;  %v205_v43 = vadd.s32 128, %v204_v41 }
  0xf0   :  { %v152_v48 = vadd.f32 -1.4531521, %v150_v45 }
  0xf1   :  { %v153_v49 = vmul.f32 %v3405_v40, %v151_v46 }
  0xf2   :  { %v154_v51 = vmul.f32 %v3407_v42, %v152_v48  ;;  %v217_v48 = vand.u32 15, %v205_v43 }
  0xf3   :  { %v155_v52 = vadd.f32 1.4214138, %v153_v49 }
  0xf4   :  { %v156_v53 = vadd.f32 1.4214138, %v154_v51  ;;  %vm231_vm6 = vcmp.ge.s32.totalorder %v217_v48, 1  ;;  %vm237_vm8 = vcmp.le.s32.totalorder %v217_v48, 14 }
  0xf5   :  { %v157_v54 = vmul.f32 %v3405_v40, %v155_v52 }
  0xf6   :  { %v158_v55 = vmul.f32 %v3407_v42, %v156_v53  ;;  %v3066_v53 = vsel %vm231_vm6, 1.0, %v3487_v2 }
  0xf7   :  { %v159_v56 = vadd.f32 -0.28449672, %v157_v54 }
  0xf8   :  { %v160_v57 = vadd.f32 -0.28449672, %v158_v55  ;;  %v3067_v55 = vsel %vm236_vm7, 1.0, %v3487_v2 }
  0xf9   :  { %v161_v58 = vmul.f32 %v3405_v40, %v159_v56 }
  0xfa   :  { %v162_v59 = vmul.f32 %v3407_v42, %v160_v57 }
  0xfb   :  { %v163_v60 = vadd.f32 0.2548296, %v161_v58  ;;  %v250_v58 = vpop.permute.xlu0 %249 }
  0xfc   :  { %v164_v61 = vadd.f32 0.2548296, %v162_v59 }
  0xfd   :  { %v165_v62 = vmul.f32 %v3405_v40, %v163_v60  ;;  %v317_v60 = vpop.permute.xlu1 %316 }
  0xfe   :  { %v166_v0 = vmul.f32 %v3407_v42, %v164_v61 }
  0xff   :  { %v175_v3 = vmul.f32 %v3409_v63, %v165_v62  ;;  %v336_v61 = vpop.permute.xlu0 %335  ;;  %v3715_v62 = vld [vmem:[%s5088_s4] sm:$0xf] }
 0x100   :  { %v176_v5 = vmul.f32 %v3411_v1, %v166_v0  ;;  %v340_v63 = vmul.f32 %v336_v61, %v3666_v20 }
 0x101   :  { %v177_v10 = vsub.f32 1.0, %v175_v3  ;;  %v3502_v3 = vmov 12  }
 0x102   :  { %v178_v19 = vsub.f32 1.0, %v176_v5  ;;  %v360_v5 = vpop.permute.xlu1 %359 }
 0x103   :  { %v179_v21 = vmul.f32 %v177_v10, %v139_v14 }
 0x104   :  { %v180_v24 = vmul.f32 %v178_v19, %v140_v23  ;;  %v380_v19 = vpop.permute.xlu0 %379 }
 0x105   :  { %v181_v28 = vadd.f32 1.0, %v179_v21 }
 0x106   :  { %v182_v33 = vadd.f32 1.0, %v180_v24  ;;  %v266_v10 = vpop.permute.xlu1 %265 }
 0x107   :  { %v183_v34 = vmul.f32 %v181_v28, %v133_v26 }
 0x108   :  { %v184_v35 = vmul.f32 %v182_v33, %v134_v32 }
 0x109   :  { %v187_v36 = vrot.slane %v183_v34, 4 }
 0x10a   :  { %v188_v30 = vrot.slane %v184_v35, 4  ;;  %v298_v14 = vpop.permute.xlu1 %297 }
 0x10b   :  { %191 = vst [vmem:[#allocation2 + $0x8] sm:$0xf] %v187_v36  ;;  %v193_v31 = vadd.f32 %v187_v36, %v183_v34  ;;  %v252_v34 = vmul.f32 %v250_v58, %v3658_v16 }
 0x10c   :  { %192 = vst [vmem:[#allocation2 + $0x10] sm:$0xf] %v188_v30  ;;  %v194_v38 = vadd.f32 %v188_v30, %v184_v35 }
 0x10d   :  { %v197_v39 = vrot.slane %v193_v31, 4  ;;  %v362_v31 = vmul.f32 %v360_v5, %v3658_v16 }
 0x10e   :  { %v198_v40 = vrot.slane %v194_v38, 4  ;;  %v404_v21 = vpop.permute.xlu1 %403 }
 0x10f   :  { %201 = vst [vmem:[#allocation2 + $0x8] sm:$0xf0] %v197_v39 }
 0x110   :  { %202 = vst [vmem:[#allocation2 + $0x10] sm:$0xf0] %v198_v40 }
 0x112   :  { %v3683_v42 = vld [vmem:[#allocation2 + $0x8] sm:$0xf] }
 0x113   :  { %v280_v27 = vld [vmem:[#allocation2 + $0x8] sm:$0xf]  ;;  %v3686_v44 = vld [vmem:[#allocation2 + $0x10] sm:$0xf]  ;;  %v260_v45 = vmul.f32 %v3660_v17, %v3683_v42  ;;  %v253_v37 = vmul.f32 %v250_v58, %v3683_v42 }
 0x114   :  { %v369_v29 = vmul.f32 %v3662_v18, %v280_v27  ;;  %v261_v46 = vmul.f32 %v3660_v17, %v3686_v44  ;;  %v287_v49 = vmul.f32 %v3656_v15, %v280_v27  ;;  %v281_v50 = vld [vmem:[#allocation2 + $0x10] sm:$0xf]  ;;  %v393_v52 = vmul.f32 %v3671_v22, %v280_v27 }
 0x115   :  { %267 = vrot.lane.b32.xlu1 %v260_v45, %s3496_s1  ;;  %v288_v51 = vmul.f32 %v3656_v15, %v281_v50  ;;  %v3065_v17 = vsel %vm230_vm5, 1.0, %v3487_v2  ;;  %v394_v54 = vmul.f32 %v3671_v22, %v281_v50  ;;  %v3068_v15 = vsel %vm237_vm8, 1.0, %v3487_v2 }
 0x116   :  { %375 = vrot.lane.b32.xlu0 %v369_v29, %s3496_s1  ;;  %v370_v56 = vmul.f32 %v3662_v18, %v281_v50  ;;  %v3270_v57 = vpack.i.bf16 %v3066_v53, %v3065_v17  ;;  %v3275_v59 = vpack.i.bf16 %v3068_v15, %v3067_v55  ;;  %v319_v22 = vmul.f32 %v317_v60, %v3683_v42 }
 0x117   :  { %v338_v18 = vmul.f32 %v336_v61, %v280_v27  ;;  %v320_v0 = vmul.f32 %v317_v60, %v3686_v44  ;;  %v339_v1 = vmul.f32 %v336_v61, %v281_v50  ;;  %v364_v38 = vmul.f32 %v360_v5, %v3686_v44 }
 0x118   :  { %v254_v40 = vmul.f32 %v250_v58, %v3686_v44 }
 0x119   :  { %293 = vrot.lane.b32.xlu1 %v287_v49, %s3497_s2 }
 0x11a   :  { %269 = vrot.lane.b32.xlu0 %v261_v46, %s3496_s1 }
 0x11d   :  { %399 = vrot.lane.b32.xlu1 %v393_v52, %s3497_s2  ;;  %v363_v52 = vmul.f32 %v360_v5, %v3683_v42 }
 0x11e   :  { %295 = vrot.lane.b32.xlu0 %v288_v51, %s3497_s2 }
 0x121   :  { %377 = vrot.lane.b32.xlu1 %v370_v56, %s3496_s1 }
 0x122   :  { %401 = vrot.lane.b32.xlu0 %v394_v54, %s3497_s2 }
 0x125   :  { %3276 = vrot.lane.b32.xlu1 %v3275_v59, %s3501_s19 }
 0x126   :  { %3271 = vrot.lane.b32.xlu0 %v3270_v57, %s3500_s18 }
 0x129   :  { %323 = vrot.lane.b32.xlu1 %v319_v22, %s3496_s1 }
 0x12a   :  { %309 = vperm.xlu0 %3280, %v3627_v7  }
 0x12d   :  { %479 = vperm.xlu1 %3281, %v3715_v62  }
 0x12e   :  { %344 = vrot.lane.b32.xlu0 %v338_v18, %s3497_s2 }
 0x131   :  { %325 = vrot.lane.b32.xlu1 %v320_v0, %s3496_s1 }
 0x132   :  { %348 = vrot.lane.b32.xlu0 %v340_v63, %s3497_s2  ;;  %3282 = vset.pattern.permute.xlu1 %v3502_v3 }
 0x135   :  { %346 = vrot.lane.b32.xlu1 %v339_v1, %s3497_s2 }
 0x187   :  { %v268_v20 = vpop.permute.xlu1 %267 }
 0x188   :  { %v376_v23 = vpop.permute.xlu0 %375  ;;  %v272_v33 = vsel %vm271_vm9, %v266_v10, %v268_v20 }
 0x189   :  { %v277_v36 = vadd.f32 %v272_v33, %v252_v34  ;;  %v386_v39 = vadd.f32 %v376_v23, %v362_v31 }
 0x18b   :  { %v294_v26 = vpop.permute.xlu1 %293 }
 0x18c   :  { %v270_v24 = vpop.permute.xlu0 %269  ;;  %v305_v29 = vadd.f32 %v294_v26, %v277_v36 }
 0x18d   :  { %v273_v41 = vsel %vm271_vm9, %v268_v20, %v270_v24  ;;  %v279_v17 = vadd.f32 %v270_v24, %v254_v40 }
 0x18e   :  { %v278_v55 = vadd.f32 %v273_v41, %v253_v37 }
 0x18f   :  { %v400_v32 = vpop.permute.xlu1 %399 }
 0x190   :  { %v296_v28 = vpop.permute.xlu0 %295  ;;  %v410_v49 = vadd.f32 %v400_v32, %v386_v39 }
 0x191   :  { %v301_v48 = vsel %vm299_vm10, %v296_v28, %v298_v14  ;;  %v300_v53 = vsel %vm299_vm10, %v294_v26, %v296_v28  ;;  %v3505_v14 = vmov 15  }
 0x192   :  { %v307_v58 = vadd.f32 %v301_v48, %v279_v17  ;;  %v306_v22 = vadd.f32 %v300_v53, %v278_v55  ;;  %3283 = vset.pattern.permute.xlu0 %v3505_v14 }
 0x193   :  { %v378_v30 = vpop.permute.xlu1 %377 }
 0x194   :  { %v402_v35 = vpop.permute.xlu0 %401  ;;  %v382_v43 = vsel %vm271_vm9, %v378_v30, %v380_v19  ;;  %v381_v50 = vsel %vm271_vm9, %v376_v23, %v378_v30 }
 0x195   :  { %v388_v15 = vadd.f32 %v382_v43, %v364_v38  ;;  %v387_v59 = vadd.f32 %v381_v50, %v363_v52  ;;  %v406_v61 = vsel %vm299_vm10, %v402_v35, %v404_v21  ;;  %v405_v63 = vsel %vm299_vm10, %v400_v32, %v402_v35 }
 0x196   :  { %v3506_v21 = vmov 14  }
 0x197   :  { %v3277_v47 = vpop.permute.xlu1 %3276  ;;  %v412_v3 = vadd.f32 %v406_v61, %v388_v15  ;;  %v411_v5 = vadd.f32 %v405_v63, %v387_v59  ;;  %v3509_v63 = vmov 9  }
 0x198   :  { %v3272_v27 = vpop.permute.xlu0 %3271  ;;  %v3738_v51 = vunpack.i.l.bf16 %v3277_v47  ;;  %v3743_v56 = vunpack.i.h.bf16 %v3277_v47 }
 0x199   :  { %v3732_v45 = vunpack.i.h.bf16 %v3272_v27  ;;  %v3734_v46 = vunpack.i.l.bf16 %v3272_v27 }
 0x19a   :  { %v456_v57 = vmul.f32 %v3738_v51, %v410_v49  ;;  %v3759_v1 = vsel %vm451_vm12, %v3738_v51, %v3743_v56  ;;  %v458_v19 = vmul.f32 %v3743_v56, %v412_v3  ;;  %v3511_v3 = vmov 16  }
 0x19b   :  { %v424_v54 = vmul.f32 %v3734_v46, %v305_v29  ;;  %v3750_v60 = vsel %vm419_vm11, %v3734_v46, %v3732_v45  ;;  %v426_v18 = vmul.f32 %v3732_v45, %v307_v58  ;;  %v457_v10 = vmul.f32 %v3759_v1, %v411_v5  ;;  %v324_v23 = vpop.permute.xlu1 %323  ;;  %v3786_v5 = vld [vmem:[#allocation2 + $0x20] sm:$0xf] }
 0x19c   :  { %462 = vrot.lane.b32.xlu1 %v456_v57, %s3504_s23  ;;  %v425_v0 = vmul.f32 %v3750_v60, %v306_v22 }
 0x19d   :  { %430 = vrot.lane.b32.xlu0 %v424_v54, %s3503_s22 }
 0x1a0   :  { %432 = vrot.lane.b32.xlu1 %v425_v0, %s3503_s22  ;;  %v3510_v0 = vmov 13  }
 0x1a1   :  { %434 = vrot.lane.b32.xlu0 %v426_v18, %s3503_s22  ;;  %v3508_v18 = vmov 17  }
 0x1a4   :  { %466 = vrot.lane.b32.xlu1 %v458_v19, %s3504_s23 }
 0x1a5   :  { %464 = vrot.lane.b32.xlu0 %v457_v10, %s3504_s23  ;;  %v3512_v10 = vmov 11  }
 0x1a8   :  { %512 = vperm.xlu1 %3282, %v3627_v7  }
 0x1a9   :  { %v310_v24 = vpop.permute.xlu0 %309 }
 0x1aa   :  { %v312_v34 = vmul.f32 %v310_v24, %v3658_v16  ;;  %v314_v31 = vmul.f32 %v310_v24, %v3686_v44  ;;  %v313_v38 = vmul.f32 %v310_v24, %v3683_v42 }
 0x1ac   :  { %3284 = vset.pattern.permute.xlu1 %v3506_v21  ;;  %v480_v20 = vpop.permute.xlu1 %479  ;;  %v331_v30 = vadd.f32 %v324_v23, %v312_v34  ;;  %v3513_v21 = vmov 10  }
 0x1ad   :  { %v345_v28 = vpop.permute.xlu0 %344 }
 0x1ae   :  { %v355_v16 = vadd.f32 %v345_v28, %v331_v30 }
 0x1b0   :  { %v326_v26 = vpop.permute.xlu1 %325 }
 0x1b1   :  { %v349_v32 = vpop.permute.xlu0 %348  ;;  %v327_v37 = vsel %vm271_vm9, %v324_v23, %v326_v26  ;;  %v333_v40 = vadd.f32 %v326_v26, %v314_v31 }
 0x1b2   :  { %v332_v29 = vadd.f32 %v327_v37, %v313_v38 }
 0x1b4   :  { %v347_v33 = vpop.permute.xlu1 %346 }
 0x1b5   :  { %v351_v39 = vsel %vm299_vm10, %v347_v33, %v349_v32  ;;  %v350_v41 = vsel %vm299_vm10, %v345_v28, %v347_v33  ;;  %v537_v32 = vld [vmem:[#allocation2 + $0x38] sm:$0xf] }
 0x1b6   :  { %v357_v47 = vadd.f32 %v351_v39, %v333_v40  ;;  %v356_v49 = vadd.f32 %v350_v41, %v332_v29 }
 0x20e   :  { %v463_v36 = vpop.permute.xlu1 %462 }
 0x20f   :  { %v431_v35 = vpop.permute.xlu0 %430 }
 0x210   :  { %v442_v50 = vadd.f32 %v431_v35, %v355_v16 }
 0x212   :  { %v433_v43 = vpop.permute.xlu1 %432 }
 0x213   :  { %v435_v27 = vpop.permute.xlu0 %434  ;;  %v437_v48 = vsel %vm436_vm13, %v431_v35, %v433_v43 }
 0x214   :  { %v438_v44 = vsel %vm436_vm13, %v433_v43, %v435_v27  ;;  %v443_v17 = vadd.f32 %v437_v48, %v356_v49 }
 0x215   :  { %v444_v52 = vadd.f32 %v438_v44, %v357_v47 }
 0x216   :  { %v467_v54 = vpop.permute.xlu1 %466 }
 0x217   :  { %v465_v42 = vpop.permute.xlu0 %464  ;;  %v476_v58 = vadd.f32 %v467_v54, %v444_v52 }
 0x218   :  { %v469_v53 = vsel %vm468_vm14, %v463_v36, %v465_v42  ;;  %v470_v15 = vsel %vm468_vm14, %v465_v42, %v467_v54 }
 0x219   :  { %v474_v55 = vadd.f32 %v469_v53, %v442_v50  ;;  %v475_v57 = vadd.f32 %v470_v15, %v443_v17  ;;  %v484_v61 = vadd.f32 %v480_v20, %v476_v58 }
 0x21b   :  { %v482_v59 = vadd.f32 %v480_v20, %v474_v55  ;;  %v483_v22 = vadd.f32 %v480_v20, %v475_v57 }
 0x21d   :  { %488 = vrot.lane.b32.xlu0 %v482_v59, %s3507_s24  ;;  %490 = vrot.lane.b32.xlu1 %v483_v22, %s3507_s24 }
 0x221   :  { %492 = vrot.lane.b32.xlu0 %v484_v61, %s3507_s24  ;;  %620 = vperm.xlu1 %3284, %v3627_v7   ;;  %v3514_v61 = vmov 21  }
 0x225   :  { %539 = vperm.xlu0 %3283, %v3627_v7   ;;  %3285 = vset.pattern.permute.xlu1 %v3508_v18 }
 0x226   :  { %644 = vperm.xlu1 %3285, %v3627_v7  }
 0x227   :  { %v513_v14 = vpop.permute.xlu1 %512 }
 0x228   :  { %v515_v19 = vmul.f32 %v513_v14, %v3786_v5 }
 0x229   :  { %3286 = vset.pattern.permute.xlu0 %v3509_v63 }
 0x22a   :  { %505 = vperm.xlu0 %3286, %v3627_v7   ;;  %3287 = vset.pattern.permute.xlu1 %v3510_v0 }
 0x22b   :  { %570 = vperm.xlu1 %3287, %v3627_v7  }
 0x22e   :  { %3289 = vset.pattern.permute.xlu0 %v3511_v3 }
 0x22f   :  { %589 = vperm.xlu0 %3289, %v3627_v7   ;;  %3288 = vset.pattern.permute.xlu1 %v3512_v10 }
 0x230   :  { %613 = vperm.xlu1 %3288, %v3627_v7  }
 0x233   :  { %3290 = vset.pattern.permute.xlu0 %v3513_v21 }
 0x234   :  { %521 = vrot.lane.b32.xlu1 %v515_v19, %s3496_s1 }
 0x235   :  { %3291 = vset.pattern.permute.xlu1 %v3498_v25 }
 0x28f   :  { %v489_v23 = vpop.permute.xlu0 %488  ;;  %v491_v20 = vpop.permute.xlu1 %490 }
 0x290   :  { %v495_v24 = vsel %vm494_vm15, %v489_v23, %v491_v20 }
 0x291   :  { %499 = vst [vmem:[#allocation2 + $0x28] sm:$0xf] %v495_v24 }
 0x293   :  { %v493_v26 = vpop.permute.xlu0 %492 }
 0x294   :  { %v496_v28 = vsel %vm494_vm15, %v491_v20, %v493_v26 }
 0x295   :  { %500 = vst [vmem:[#allocation2 + $0x30] sm:$0xf] %v496_v28 }
 0x298   :  { %v3799_v31 = vld [vmem:[#allocation2 + $0x28] sm:$0xf] }
 0x299   :  { %v516_v37 = vmul.f32 %v513_v14, %v3799_v31  ;;  %v535_v40 = vld [vmem:[#allocation2 + $0x28] sm:$0xf] }
 0x29c   :  { %v3795_v35 = vld [vmem:[#allocation2 + $0x30] sm:$0xf] }
 0x29d   :  { %v517_v25 = vmul.f32 %v513_v14, %v3795_v35  ;;  %v536_v38 = vld [vmem:[#allocation2 + $0x30] sm:$0xf] }
 0x2a0   :  { %v621_v33 = vpop.permute.xlu1 %620 }
 0x2a1   :  { %v625_v34 = vmul.f32 %v621_v33, %v537_v32  ;;  %v623_v27 = vmul.f32 %v621_v33, %v535_v40  ;;  %v624_v16 = vmul.f32 %v621_v33, %v536_v38 }
 0x2a3   :  { %633 = vrot.lane.b32.xlu0 %v625_v34, %s3496_s1 }
 0x2a4   :  { %v540_v36 = vpop.permute.xlu0 %539 }
 0x2a5   :  { %v544_v30 = vmul.f32 %v540_v36, %v537_v32  ;;  %v543_v39 = vmul.f32 %v540_v36, %v536_v38  ;;  %v542_v41 = vmul.f32 %v540_v36, %v535_v40  ;;  %v645_v29 = vpop.permute.xlu1 %644 }
 0x2a6   :  { %v648_v47 = vmul.f32 %v645_v29, %v536_v38  ;;  %v647_v48 = vmul.f32 %v645_v29, %v535_v40  ;;  %v649_v50 = vmul.f32 %v645_v29, %v537_v32 }
 0x2a7   :  { %552 = vrot.lane.b32.xlu1 %v544_v30, %s3497_s2  ;;  %525 = vrot.lane.b32.xlu0 %v517_v25, %s3496_s1 }
 0x2a9   :  { %v506_v43 = vpop.permute.xlu0 %505 }
 0x2aa   :  { %v571_v52 = vpop.permute.xlu1 %570  ;;  %v510_v22 = vmul.f32 %v506_v43, %v3795_v35  ;;  %v508_v18 = vmul.f32 %v506_v43, %v3786_v5  ;;  %v509_v25 = vmul.f32 %v506_v43, %v3799_v31 }
 0x2ab   :  { %523 = vrot.lane.b32.xlu1 %v516_v37, %s3496_s1  ;;  %550 = vrot.lane.b32.xlu0 %v543_v39, %s3497_s2  ;;  %v573_v17 = vmul.f32 %v571_v52, %v3799_v31  ;;  %v574_v53 = vmul.f32 %v571_v52, %v3795_v35 }
 0x2ae   :  { %v590_v44 = vpop.permute.xlu0 %589 }
 0x2af   :  { %548 = vrot.lane.b32.xlu1 %v542_v41, %s3497_s2  ;;  %629 = vrot.lane.b32.xlu0 %v623_v27, %s3496_s1  ;;  %v594_v49 = vmul.f32 %v590_v44, %v537_v32  ;;  %v592_v42 = vmul.f32 %v590_v44, %v535_v40  ;;  %v593_v54 = vmul.f32 %v590_v44, %v536_v38  ;;  %v614_v55 = vpop.permute.xlu1 %613 }
 0x2b0   :  { %v616_v33 = vmul.f32 %v614_v55, %v3786_v5  ;;  %v617_v36 = vmul.f32 %v614_v55, %v3799_v31  ;;  %v618_v44 = vmul.f32 %v614_v55, %v3795_v35 }
 0x2b3   :  { %631 = vrot.lane.b32.xlu1 %v624_v16, %s3496_s1  ;;  %655 = vrot.lane.b32.xlu0 %v648_v47, %s3497_s2  ;;  %v522_v15 = vpop.permute.xlu1 %521 }
 0x2b7   :  { %653 = vrot.lane.b32.xlu1 %v647_v48, %s3497_s2  ;;  %563 = vperm.xlu0 %3290, %v3627_v7  }
 0x2bb   :  { %657 = vrot.lane.b32.xlu1 %v649_v50, %s3497_s2  ;;  %602 = vrot.lane.b32.xlu0 %v594_v49, %s3497_s2 }
 0x2bf   :  { %708 = vperm.xlu1 %3291, %v3715_v62   ;;  %598 = vrot.lane.b32.xlu0 %v592_v42, %s3497_s2 }
 0x2c3   :  { %577 = vrot.lane.b32.xlu1 %v573_v17, %s3496_s1 }
 0x2c4   :  { %3292 = vset.pattern.permute.xlu1 %v3514_v61 }
 0x2c7   :  { %579 = vrot.lane.b32.xlu1 %v574_v53, %s3496_s1 }
 0x2cb   :  { %600 = vrot.lane.b32.xlu1 %v593_v54, %s3497_s2 }
 0x315   :  { %v634_v57 = vpop.permute.xlu0 %633 }
 0x319   :  { %v553_v58 = vpop.permute.xlu1 %552  ;;  %v526_v59 = vpop.permute.xlu0 %525 }
 0x31a   :  { %v534_v0 = vadd.f32 %v526_v59, %v510_v22 }
 0x31d   :  { %v524_v63 = vpop.permute.xlu1 %523  ;;  %v551_v3 = vpop.permute.xlu0 %550 }
 0x31e   :  { %v527_v10 = vsel %vm271_vm9, %v522_v15, %v524_v63  ;;  %v555_v14 = vsel %vm299_vm10, %v551_v3, %v553_v58  ;;  %v528_v30 = vsel %vm271_vm9, %v524_v63, %v526_v59  ;;  %v3515_v15 = vmov 24  }
 0x31f   :  { %v532_v19 = vadd.f32 %v527_v10, %v508_v18  ;;  %v561_v21 = vadd.f32 %v555_v14, %v534_v0  ;;  %v533_v27 = vadd.f32 %v528_v30, %v509_v25  ;;  %3293 = vset.pattern.permute.xlu0 %v3515_v15 }
 0x321   :  { %v549_v23 = vpop.permute.xlu1 %548  ;;  %v669_v24 = vmul.f32 %v3732_v45, %v561_v21  ;;  %v630_v26 = vpop.permute.xlu0 %629 }
 0x322   :  { %v559_v20 = vadd.f32 %v549_v23, %v532_v19  ;;  %v640_v37 = vadd.f32 %v630_v26, %v616_v33  ;;  %v554_v38 = vsel %vm299_vm10, %v549_v23, %v551_v3 }
 0x323   :  { %677 = vrot.lane.b32.xlu0 %v669_v24, %s3503_s22  ;;  %v560_v49 = vadd.f32 %v554_v38, %v533_v27 }
 0x324   :  { %v667_v28 = vmul.f32 %v3734_v46, %v559_v20 }
 0x325   :  { %v632_v32 = vpop.permute.xlu1 %631  ;;  %v656_v39 = vpop.permute.xlu0 %655  ;;  %v668_v54 = vmul.f32 %v560_v49, %v3750_v60 }
 0x326   :  { %v635_v34 = vsel %vm271_vm9, %v630_v26, %v632_v32  ;;  %v636_v47 = vsel %vm271_vm9, %v632_v32, %v634_v57  ;;  %v3516_v57 = vmov 23  }
 0x327   :  { %673 = vrot.lane.b32.xlu0 %v667_v28, %s3503_s22  ;;  %v641_v40 = vadd.f32 %v635_v34, %v617_v36  ;;  %v642_v42 = vadd.f32 %v636_v47, %v618_v44 }
 0x329   :  { %v654_v41 = vpop.permute.xlu1 %653 }
 0x32a   :  { %v659_v29 = vsel %vm299_vm10, %v654_v41, %v656_v39  ;;  %v664_v16 = vadd.f32 %v654_v41, %v640_v37 }
 0x32b   :  { %v665_v48 = vadd.f32 %v659_v29, %v641_v40 }
 0x32c   :  { %v687_v43 = vmul.f32 %v3738_v51, %v664_v16 }
 0x32d   :  { %v658_v50 = vpop.permute.xlu1 %657  ;;  %v688_v52 = vmul.f32 %v665_v48, %v3759_v1 }
 0x32e   :  { %v660_v17 = vsel %vm299_vm10, %v656_v39, %v658_v50  ;;  %693 = vrot.lane.b32.xlu1 %v687_v43, %s3504_s23 }
 0x32f   :  { %695 = vrot.lane.b32.xlu0 %v688_v52, %s3504_s23  ;;  %v666_v53 = vadd.f32 %v660_v17, %v642_v42  ;;  %v3517_v42 = vmov 18   ;;  %v3518_v17 = vmov 26  }
 0x331   :  { %v689_v55 = vmul.f32 %v3743_v56, %v666_v53  ;;  %v3519_v53 = vmov 25  }
 0x332   :  { %675 = vrot.lane.b32.xlu1 %v668_v54, %s3503_s22  ;;  %v3520_v54 = vmov 22  }
 0x336   :  { %697 = vrot.lane.b32.xlu1 %v689_v55, %s3504_s23  ;;  %v564_v58 = vpop.permute.xlu0 %563  ;;  %v3867_v55 = vld [vmem:[#allocation2 + $0x20] sm:$0xf0] }
 0x337   :  { %v566_v0 = vmul.f32 %v564_v58, %v3786_v5  ;;  %v568_v23 = vmul.f32 %v564_v58, %v3795_v35  ;;  %v567_v33 = vmul.f32 %v564_v58, %v3799_v31  ;;  %v3521_v58 = vmov 20  }
 0x33a   :  { %744 = vperm.xlu1 %3292, %v3627_v7   ;;  %v603_v22 = vpop.permute.xlu0 %602 }
 0x33e   :  { %3294 = vset.pattern.permute.xlu1 %v3516_v57  ;;  %v709_v59 = vpop.permute.xlu1 %708  ;;  %v599_v18 = vpop.permute.xlu0 %598 }
 0x342   :  { %v578_v61 = vpop.permute.xlu1 %577 }
 0x343   :  { %v585_v10 = vadd.f32 %v578_v61, %v566_v0 }
 0x345   :  { %v609_v21 = vadd.f32 %v599_v18, %v585_v10 }
 0x346   :  { %v580_v63 = vpop.permute.xlu1 %579 }
 0x347   :  { %v581_v24 = vsel %vm271_vm9, %v578_v61, %v580_v63  ;;  %v587_v34 = vadd.f32 %v580_v63, %v568_v23 }
 0x348   :  { %v586_v25 = vadd.f32 %v581_v24, %v567_v33 }
 0x34a   :  { %v601_v14 = vpop.permute.xlu1 %600 }
 0x34b   :  { %v605_v26 = vsel %vm299_vm10, %v601_v14, %v603_v22  ;;  %v604_v5 = vsel %vm299_vm10, %v599_v18, %v601_v14  ;;  %v3522_v22 = vmov 19   ;;  %v770_v14 = vld [vmem:[#allocation2 + $0x38] sm:$0xf0] }
 0x34c   :  { %v611_v37 = vadd.f32 %v605_v26, %v587_v34  ;;  %v610_v41 = vadd.f32 %v604_v5, %v586_v25 }
 0x395   :  { %v678_v3 = vpop.permute.xlu0 %677 }
 0x399   :  { %v674_v19 = vpop.permute.xlu0 %673 }
 0x39a   :  { %v684_v28 = vadd.f32 %v674_v19, %v609_v21 }
 0x3a0   :  { %v694_v20 = vpop.permute.xlu1 %693 }
 0x3a1   :  { %v696_v32 = vpop.permute.xlu0 %695 }
 0x3a2   :  { %v699_v36 = vsel %vm468_vm14, %v694_v20, %v696_v32 }
 0x3a3   :  { %v704_v30 = vadd.f32 %v699_v36, %v684_v28 }
 0x3a4   :  { %v676_v38 = vpop.permute.xlu1 %675 }
 0x3a5   :  { %v679_v35 = vsel %vm436_vm13, %v674_v19, %v676_v38  ;;  %v680_v39 = vsel %vm436_vm13, %v676_v38, %v678_v3  ;;  %v711_v40 = vadd.f32 %v709_v59, %v704_v30 }
 0x3a6   :  { %v686_v27 = vadd.f32 %v680_v39, %v611_v37  ;;  %v685_v16 = vadd.f32 %v679_v35, %v610_v41 }
 0x3a7   :  { %v717_v29 = vrot.slane %v711_v40, 4 }
 0x3a8   :  { %v698_v47 = vpop.permute.xlu1 %697 }
 0x3a9   :  { %v700_v31 = vsel %vm468_vm14, %v696_v32, %v698_v47  ;;  %v706_v48 = vadd.f32 %v698_v47, %v686_v27  ;;  %720 = vrot.lane.b32.xlu0 %v717_v29, %s3507_s24  ;;  %v3894_v47 = vld [vmem:[%s5087_s3] sm:$0xf] }
 0x3aa   :  { %v705_v44 = vadd.f32 %v700_v31, %v685_v16 }
 0x3ab   :  { %v713_v49 = vadd.f32 %v709_v59, %v706_v48 }
 0x3ac   :  { %v712_v43 = vadd.f32 %v709_v59, %v705_v44 }
 0x3ad   :  { %v719_v50 = vrot.slane %v713_v49, 4 }
 0x3ae   :  { %v718_v52 = vrot.slane %v712_v43, 4 }
 0x3af   :  { %724 = vrot.lane.b32.xlu0 %v719_v50, %s3507_s24 }
 0x3b0   :  { %722 = vrot.lane.b32.xlu1 %v718_v52, %s3507_s24 }
 0x3b3   :  { %772 = vperm.xlu0 %3293, %v3627_v7  }
 0x3b4   :  { %858 = vperm.xlu1 %3294, %v3627_v7  }
 0x3b7   :  { %3296 = vset.pattern.permute.xlu0 %v3517_v42 }
 0x3b8   :  { %736 = vperm.xlu0 %3296, %v3627_v7   ;;  %3295 = vset.pattern.permute.xlu1 %v3518_v17 }
 0x3b9   :  { %883 = vperm.xlu1 %3295, %v3627_v7   ;;  %v745_v15 = vpop.permute.xlu1 %744 }
 0x3ba   :  { %v746_v57 = vrot.slane %v745_v15, 4 }
 0x3bc   :  { %3299 = vset.pattern.permute.xlu0 %v3519_v53  ;;  %v748_v59 = vmul.f32 %v746_v57, %v3867_v55 }
 0x3bd   :  { %825 = vperm.xlu0 %3299, %v3627_v7   ;;  %3297 = vset.pattern.permute.xlu1 %v3520_v54 }
 0x3be   :  { %805 = vperm.xlu1 %3297, %v3627_v7  }
 0x3c1   :  { %3300 = vset.pattern.permute.xlu0 %v3522_v22 }
 0x3c2   :  { %3298 = vset.pattern.permute.xlu1 %v3521_v58 }
 0x3c3   :  { %850 = vperm.xlu1 %3298, %v3627_v7  }
 0x3c7   :  { %754 = vrot.lane.b32.xlu1 %v748_v59, %s3496_s1 }
 0x41b   :  { %v721_v61 = vpop.permute.xlu0 %720 }
 0x421   :  { %v725_v18 = vpop.permute.xlu0 %724 }
 0x422   :  { %v723_v63 = vpop.permute.xlu1 %722 }
 0x423   :  { %v726_v0 = vsel %vm494_vm15, %v721_v61, %v723_v63  ;;  %v727_v3 = vsel %vm494_vm15, %v723_v63, %v725_v18 }
 0x424   :  { %730 = vst [vmem:[#allocation2 + $0x28] sm:$0xf0] %v726_v0  ;;  %731 = vst [vmem:[#allocation2 + $0x30] sm:$0xf0] %v727_v3 }
 0x42b   :  { %v3874_v20 = vld [vmem:[#allocation2 + $0x28] sm:$0xf0]  ;;  %v3877_v26 = vld [vmem:[#allocation2 + $0x30] sm:$0xf0] }
 0x42c   :  { %v749_v28 = vmul.f32 %v746_v57, %v3874_v20  ;;  %v750_v32 = vmul.f32 %v746_v57, %v3877_v26  ;;  %v768_v33 = vld [vmem:[#allocation2 + $0x28] sm:$0xf0]  ;;  %v769_v36 = vld [vmem:[#allocation2 + $0x30] sm:$0xf0] }
 0x432   :  { %v773_v10 = vpop.permute.xlu0 %772 }
 0x433   :  { %v774_v19 = vrot.slane %v773_v10, 4  ;;  %v859_v21 = vpop.permute.xlu1 %858 }
 0x434   :  { %v860_v7 = vrot.slane %v859_v21, 4 }
 0x435   :  { %v778_v23 = vmul.f32 %v774_v19, %v770_v14  ;;  %v776_v34 = vmul.f32 %v774_v19, %v768_v33  ;;  %v777_v30 = vmul.f32 %v774_v19, %v769_v36 }
 0x436   :  { %v864_v24 = vmul.f32 %v860_v7, %v770_v14  ;;  %v863_v25 = vmul.f32 %v860_v7, %v769_v36  ;;  %v862_v38 = vmul.f32 %v860_v7, %v768_v33 }
 0x437   :  { %786 = vrot.lane.b32.xlu1 %v778_v23, %s3497_s2  ;;  %v737_v39 = vpop.permute.xlu0 %736 }
 0x438   :  { %872 = vrot.lane.b32.xlu0 %v864_v24, %s3496_s1  ;;  %v884_v5 = vpop.permute.xlu1 %883 }
 0x439   :  { %v885_v37 = vrot.slane %v884_v5, 4 }
 0x43b   :  { %756 = vrot.lane.b32.xlu1 %v749_v28, %s3496_s1  ;;  %v887_v35 = vmul.f32 %v885_v37, %v768_v33  ;;  %v888_v41 = vmul.f32 %v885_v37, %v769_v36  ;;  %v889_v27 = vmul.f32 %v885_v37, %v770_v14 }
 0x43c   :  { %758 = vrot.lane.b32.xlu0 %v750_v32, %s3496_s1  ;;  %v826_v16 = vpop.permute.xlu0 %825 }
 0x43d   :  { %v806_v40 = vpop.permute.xlu1 %805  ;;  %v827_v48 = vrot.slane %v826_v16, 4 }
 0x43e   :  { %v807_v29 = vrot.slane %v806_v40, 4 }
 0x43f   :  { %782 = vrot.lane.b32.xlu1 %v776_v34, %s3497_s2  ;;  %v831_v49 = vmul.f32 %v827_v48, %v770_v14  ;;  %v829_v43 = vmul.f32 %v827_v48, %v768_v33  ;;  %v830_v50 = vmul.f32 %v827_v48, %v769_v36 }
 0x440   :  { %784 = vrot.lane.b32.xlu0 %v777_v30, %s3497_s2  ;;  %v809_v31 = vmul.f32 %v807_v29, %v3874_v20  ;;  %v810_v44 = vmul.f32 %v807_v29, %v3877_v26 }
 0x442   :  { %v851_v52 = vpop.permute.xlu1 %850 }
 0x443   :  { %870 = vrot.lane.b32.xlu1 %v863_v25, %s3496_s1  ;;  %v852_v63 = vrot.slane %v851_v52, 4  ;;  %v3524_v52 = vmov 30  }
 0x444   :  { %868 = vrot.lane.b32.xlu0 %v862_v38, %s3496_s1 }
 0x445   :  { %v854_v14 = vmul.f32 %v852_v63, %v3867_v55  ;;  %v855_v33 = vmul.f32 %v852_v63, %v3874_v20  ;;  %v856_v40 = vmul.f32 %v852_v63, %v3877_v26 }
 0x446   :  { %v755_v42 = vpop.permute.xlu1 %754 }
 0x447   :  { %893 = vrot.lane.b32.xlu1 %v887_v35, %s3497_s2 }
 0x448   :  { %895 = vrot.lane.b32.xlu0 %v888_v41, %s3497_s2 }
 0x44b   :  { %897 = vrot.lane.b32.xlu1 %v889_v27, %s3497_s2 }
 0x44c   :  { %797 = vperm.xlu0 %3300, %v3894_v47  }
 0x44f   :  { %813 = vrot.lane.b32.xlu1 %v809_v31, %s3496_s1 }
 0x450   :  { %3301 = vset.pattern.permute.xlu0 %v3495_v13  ;;  %v738_v13 = vrot.slane %v737_v39, 4 }
 0x451   :  { %948 = vperm.xlu0 %3301, %v3715_v62  }
 0x452   :  { %v740_v57 = vmul.f32 %v738_v13, %v3867_v55  ;;  %v742_v58 = vmul.f32 %v738_v13, %v3877_v26  ;;  %v741_v32 = vmul.f32 %v738_v13, %v3874_v20 }
 0x453   :  { %815 = vrot.lane.b32.xlu1 %v810_v44, %s3496_s1 }
 0x455   :  { %839 = vrot.lane.b32.xlu0 %v831_v49, %s3497_s2  ;;  %v3523_v49 = vmov 33  }
 0x456   :  { %3303 = vset.pattern.permute.xlu1 %v3523_v49  ;;  %3302 = vset.pattern.permute.xlu0 %v3524_v52  ;;  %v3527_v49 = vmov 27   ;;  %v3530_v52 = vmov 34  }
 0x457   :  { %835 = vrot.lane.b32.xlu1 %v829_v43, %s3497_s2 }
 0x45b   :  { %837 = vrot.lane.b32.xlu1 %v830_v50, %s3497_s2 }
 0x4a9   :  { %v787_v17 = vpop.permute.xlu1 %786 }
 0x4aa   :  { %v873_v53 = vpop.permute.xlu0 %872 }
 0x4ad   :  { %v757_v54 = vpop.permute.xlu1 %756 }
 0x4ae   :  { %v759_v15 = vpop.permute.xlu0 %758  ;;  %v760_v62 = vsel %vm271_vm9, %v755_v42, %v757_v54 }
 0x4af   :  { %v765_v22 = vadd.f32 %v760_v62, %v740_v57  ;;  %v767_v61 = vadd.f32 %v759_v15, %v742_v58  ;;  %v761_v23 = vsel %vm271_vm9, %v757_v54, %v759_v15 }
 0x4b0   :  { %v766_v5 = vadd.f32 %v761_v23, %v741_v32 }
 0x4b1   :  { %v783_v59 = vpop.permute.xlu1 %782 }
 0x4b2   :  { %v785_v18 = vpop.permute.xlu0 %784  ;;  %v793_v19 = vadd.f32 %v783_v59, %v765_v22 }
 0x4b3   :  { %v789_v0 = vsel %vm299_vm10, %v785_v18, %v787_v17  ;;  %v788_v34 = vsel %vm299_vm10, %v783_v59, %v785_v18 }
 0x4b4   :  { %v795_v3 = vadd.f32 %v789_v0, %v767_v61  ;;  %v907_v30 = vmul.f32 %v3734_v46, %v793_v19  ;;  %v794_v41 = vadd.f32 %v788_v34, %v766_v5 }
 0x4b5   :  { %v871_v10 = vpop.permute.xlu1 %870 }
 0x4b6   :  { %v909_v21 = vmul.f32 %v3732_v45, %v795_v3  ;;  %v869_v7 = vpop.permute.xlu0 %868  ;;  %v875_v35 = vsel %vm271_vm9, %v871_v10, %v873_v53  ;;  %v908_v50 = vmul.f32 %v794_v41, %v3750_v60 }
 0x4b7   :  { %v874_v24 = vsel %vm271_vm9, %v869_v7, %v871_v10  ;;  %v879_v28 = vadd.f32 %v869_v7, %v854_v14  ;;  %v881_v31 = vadd.f32 %v875_v35, %v856_v40 }
 0x4b8   :  { %917 = vrot.lane.b32.xlu1 %v909_v21, %s3503_s22  ;;  %v880_v25 = vadd.f32 %v874_v24, %v855_v33 }
 0x4b9   :  { %v894_v36 = vpop.permute.xlu1 %893 }
 0x4ba   :  { %v904_v37 = vadd.f32 %v894_v36, %v879_v28  ;;  %v896_v38 = vpop.permute.xlu0 %895 }
 0x4bb   :  { %v899_v39 = vsel %vm299_vm10, %v894_v36, %v896_v38 }
 0x4bc   :  { %v905_v27 = vadd.f32 %v899_v39, %v880_v25  ;;  %913 = vrot.lane.b32.xlu1 %v907_v30, %s3503_s22  ;;  %v927_v29 = vmul.f32 %v3738_v51, %v904_v37 }
 0x4bd   :  { %v898_v16 = vpop.permute.xlu1 %897 }
 0x4be   :  { %v928_v48 = vmul.f32 %v905_v27, %v3759_v1  ;;  %v900_v44 = vsel %vm299_vm10, %v896_v38, %v898_v16  ;;  %933 = vrot.lane.b32.xlu0 %v927_v29, %s3504_s23 }
 0x4bf   :  { %v906_v43 = vadd.f32 %v900_v44, %v881_v31  ;;  %v3526_v44 = vmov 35  }
 0x4c0   :  { %935 = vrot.lane.b32.xlu1 %v928_v48, %s3504_s23  ;;  %v3525_v48 = vmov 32  }
 0x4c1   :  { %v929_v42 = vmul.f32 %v3743_v56, %v906_v43  ;;  %v814_v17 = vpop.permute.xlu1 %813  ;;  %v3528_v43 = vmov 29  }
 0x4c2   :  { %915 = vrot.lane.b32.xlu0 %v908_v50, %s3503_s22  ;;  %v3529_v50 = vmov 31  }
 0x4c5   :  { %v816_v53 = vpop.permute.xlu1 %815 }
 0x4c6   :  { %937 = vrot.lane.b32.xlu0 %v929_v42, %s3504_s23  ;;  %v817_v14 = vsel %vm271_vm9, %v814_v17, %v816_v53  ;;  %v3531_v42 = vmov 28  }
 0x4c9   :  { %v836_v13 = vpop.permute.xlu1 %835 }
 0x4cb   :  { %v798_v54 = vpop.permute.xlu0 %797 }
 0x4cc   :  { %v799_v15 = vrot.slane %v798_v54, 4  ;;  %v1009_v54 = vld [vmem:[#allocation2 + $0x58] sm:$0xf] }
 0x4cd   :  { %v838_v62 = vpop.permute.xlu1 %837 }
 0x4ce   :  { %v801_v58 = vmul.f32 %v799_v15, %v3867_v55  ;;  %v802_v18 = vmul.f32 %v799_v15, %v3874_v20  ;;  %v803_v63 = vmul.f32 %v799_v15, %v3877_v26  ;;  %v841_v20 = vsel %vm299_vm10, %v836_v13, %v838_v62 }
 0x4d0   :  { %v949_v57 = vpop.permute.xlu0 %948  ;;  %v821_v61 = vadd.f32 %v814_v17, %v801_v58  ;;  %v822_v21 = vadd.f32 %v817_v14, %v802_v18  ;;  %v823_v7 = vadd.f32 %v816_v53, %v803_v63  ;;  %v3955_v58 = vld [vmem:[#allocation2 + $0x40] sm:$0xf] }
 0x4d1   :  { %v950_v28 = vrot.slane %v949_v57, 4 }
 0x4d2   :  { %v846_v3 = vadd.f32 %v836_v13, %v821_v61  ;;  %v847_v5 = vadd.f32 %v841_v20, %v822_v21 }
 0x4d4   :  { %v840_v22 = vpop.permute.xlu0 %839 }
 0x4d5   :  { %v842_v19 = vsel %vm299_vm10, %v838_v62, %v840_v22 }
 0x4d6   :  { %v848_v32 = vadd.f32 %v842_v19, %v823_v7 }
 0x52a   :  { %v918_v59 = vpop.permute.xlu1 %917 }
 0x52e   :  { %v914_v0 = vpop.permute.xlu1 %913 }
 0x52f   :  { %v924_v23 = vadd.f32 %v914_v0, %v846_v3 }
 0x530   :  { %v934_v10 = vpop.permute.xlu0 %933 }
 0x532   :  { %v936_v24 = vpop.permute.xlu1 %935 }
 0x533   :  { %v939_v55 = vsel %vm468_vm14, %v934_v10, %v936_v24 }
 0x534   :  { %v944_v33 = vadd.f32 %v939_v55, %v924_v23  ;;  %v916_v34 = vpop.permute.xlu0 %915 }
 0x535   :  { %v919_v26 = vsel %vm436_vm13, %v914_v0, %v916_v34  ;;  %v920_v36 = vsel %vm436_vm13, %v916_v34, %v918_v59 }
 0x536   :  { %v952_v30 = vadd.f32 %v950_v28, %v944_v33  ;;  %v926_v25 = vadd.f32 %v920_v36, %v848_v32  ;;  %v925_v38 = vadd.f32 %v919_v26, %v847_v5 }
 0x538   :  { %v958_v37 = vrot.slane %v952_v30, 4  ;;  %v938_v35 = vpop.permute.xlu0 %937 }
 0x539   :  { %v940_v39 = vsel %vm468_vm14, %v936_v24, %v938_v35  ;;  %v946_v40 = vadd.f32 %v938_v35, %v926_v25 }
 0x53a   :  { %v945_v41 = vadd.f32 %v940_v39, %v925_v38  ;;  %961 = vrot.lane.b32.xlu1 %v958_v37, %s3507_s24  ;;  %v3985_v37 = vld [vmem:[%s5088_s4] sm:$0xf] }
 0x53b   :  { %v954_v27 = vadd.f32 %v950_v28, %v946_v40 }
 0x53c   :  { %v953_v29 = vadd.f32 %v950_v28, %v945_v41 }
 0x53d   :  { %v960_v31 = vrot.slane %v954_v27, 4 }
 0x53e   :  { %1011 = vperm.xlu1 %3303, %v3894_v47   ;;  %v959_v16 = vrot.slane %v953_v29, 4 }
 0x540   :  { %963 = vrot.lane.b32.xlu0 %v959_v16, %s3507_s24  ;;  %v3532_v16 = vmov 39  }
 0x542   :  { %965 = vrot.lane.b32.xlu1 %v960_v31, %s3507_s24 }
 0x543   :  { %3304 = vset.pattern.permute.xlu1 %v3525_v48 }
 0x544   :  { %984 = vperm.xlu0 %3302, %v3894_v47  }
 0x546   :  { %1092 = vperm.xlu1 %3304, %v3894_v47  }
 0x548   :  { %3305 = vset.pattern.permute.xlu0 %v3526_v44 }
 0x549   :  { %1116 = vperm.xlu0 %3305, %v3894_v47  }
 0x54a   :  { %3306 = vset.pattern.permute.xlu1 %v3527_v49 }
 0x54b   :  { %977 = vperm.xlu1 %3306, %v3894_v47  }
 0x54d   :  { %3308 = vset.pattern.permute.xlu0 %v3528_v43 }
 0x54e   :  { %1085 = vperm.xlu0 %3308, %v3894_v47  }
 0x54f   :  { %3307 = vset.pattern.permute.xlu1 %v3529_v50 }
 0x550   :  { %1042 = vperm.xlu1 %3307, %v3894_v47  }
 0x554   :  { %3309 = vset.pattern.permute.xlu1 %v3530_v52 }
 0x555   :  { %1061 = vperm.xlu1 %3309, %v3894_v47  }
 0x559   :  { %3310 = vset.pattern.permute.xlu1 %v3531_v42 }
 0x5ac   :  { %v962_v17 = vpop.permute.xlu1 %961 }
 0x5b2   :  { %v964_v53 = vpop.permute.xlu0 %963 }
 0x5b3   :  { %v967_v13 = vsel %vm494_vm15, %v962_v17, %v964_v53 }
 0x5b4   :  { %971 = vst [vmem:[#allocation2 + $0x48] sm:$0xf] %v967_v13 }
 0x5bb   :  { %v3958_v61 = vld [vmem:[#allocation2 + $0x48] sm:$0xf] }
 0x5bc   :  { %v1007_v10 = vld [vmem:[#allocation2 + $0x48] sm:$0xf] }
 0x5bd   :  { %v1012_v15 = vpop.permute.xlu1 %1011 }
 0x5be   :  { %v1016_v62 = vmul.f32 %v1012_v15, %v1009_v54  ;;  %v1014_v14 = vmul.f32 %v1012_v15, %v1007_v10 }
 0x5c0   :  { %1024 = vrot.lane.b32.xlu0 %v1016_v62, %s3497_s2 }
 0x5c1   :  { %v966_v57 = vpop.permute.xlu1 %965 }
 0x5c2   :  { %v968_v59 = vsel %vm494_vm15, %v964_v53, %v966_v57 }
 0x5c3   :  { %972 = vst [vmem:[#allocation2 + $0x50] sm:$0xf] %v968_v59  ;;  %v985_v22 = vpop.permute.xlu0 %984 }
 0x5c4   :  { %v987_v18 = vmul.f32 %v985_v22, %v3955_v58  ;;  %v988_v63 = vmul.f32 %v985_v22, %v3958_v61 }
 0x5c5   :  { %v1093_v0 = vpop.permute.xlu1 %1092 }
 0x5c6   :  { %v1097_v3 = vmul.f32 %v1093_v0, %v1009_v54  ;;  %993 = vrot.lane.b32.xlu1 %v987_v18, %s3496_s1  ;;  %995 = vrot.lane.b32.xlu0 %v988_v63, %s3496_s1  ;;  %v1095_v20 = vmul.f32 %v1093_v0, %v1007_v10 }
 0x5c8   :  { %v1117_v55 = vpop.permute.xlu0 %1116 }
 0x5c9   :  { %v1119_v32 = vmul.f32 %v1117_v55, %v1007_v10  ;;  %v1121_v34 = vmul.f32 %v1117_v55, %v1009_v54 }
 0x5ca   :  { %v3964_v19 = vld [vmem:[#allocation2 + $0x50] sm:$0xf]  ;;  %1020 = vrot.lane.b32.xlu0 %v1014_v14, %s3497_s2  ;;  %1105 = vrot.lane.b32.xlu1 %v1097_v3, %s3496_s1  ;;  %v978_v7 = vpop.permute.xlu1 %977 }
 0x5cb   :  { %v1008_v21 = vld [vmem:[#allocation2 + $0x50] sm:$0xf]  ;;  %v989_v23 = vmul.f32 %v985_v22, %v3964_v19  ;;  %v980_v49 = vmul.f32 %v978_v7, %v3955_v58  ;;  %v982_v43 = vmul.f32 %v978_v7, %v3964_v19  ;;  %v981_v22 = vmul.f32 %v978_v7, %v3958_v61 }
 0x5cc   :  { %v1096_v24 = vmul.f32 %v1093_v0, %v1008_v21  ;;  %v1015_v33 = vmul.f32 %v1012_v15, %v1008_v21  ;;  %v1120_v5 = vmul.f32 %v1117_v55, %v1008_v21 }
 0x5cd   :  { %v1086_v39 = vpop.permute.xlu0 %1085 }
 0x5ce   :  { %997 = vrot.lane.b32.xlu1 %v989_v23, %s3496_s1  ;;  %1103 = vrot.lane.b32.xlu0 %v1096_v24, %s3496_s1  ;;  %v1089_v0 = vmul.f32 %v1086_v39, %v3958_v61 }
 0x5cf   :  { %v1043_v28 = vpop.permute.xlu1 %1042 }
 0x5d0   :  { %v1045_v30 = vmul.f32 %v1043_v28, %v3958_v61  ;;  %v1046_v38 = vmul.f32 %v1043_v28, %v3964_v19  ;;  %v1090_v28 = vmul.f32 %v1086_v39, %v3964_v19 }
 0x5d2   :  { %1022 = vrot.lane.b32.xlu1 %v1015_v33, %s3497_s2  ;;  %1125 = vrot.lane.b32.xlu0 %v1119_v32, %s3497_s2 }
 0x5d4   :  { %v1062_v26 = vpop.permute.xlu1 %1061 }
 0x5d5   :  { %v1066_v36 = vmul.f32 %v1062_v26, %v1009_v54  ;;  %v1064_v25 = vmul.f32 %v1062_v26, %v1007_v10  ;;  %v1065_v35 = vmul.f32 %v1062_v26, %v1008_v21  ;;  %v1088_v54 = vmul.f32 %v1086_v39, %v3955_v58 }
 0x5d6   :  { %1129 = vrot.lane.b32.xlu0 %v1121_v34, %s3497_s2  ;;  %1101 = vrot.lane.b32.xlu1 %v1095_v20, %s3496_s1  ;;  %v3534_v39 = vmov 41  }
 0x5da   :  { %1127 = vrot.lane.b32.xlu1 %v1120_v5, %s3497_s2  ;;  %1074 = vrot.lane.b32.xlu0 %v1066_v36, %s3497_s2 }
 0x5de   :  { %1035 = vperm.xlu1 %3310, %v3894_v47   ;;  %1049 = vrot.lane.b32.xlu0 %v1045_v30, %s3496_s1 }
 0x5e2   :  { %3311 = vset.pattern.permute.xlu1 %v3490_v8  ;;  %1070 = vrot.lane.b32.xlu0 %v1064_v25, %s3497_s2 }
 0x5e3   :  { %1180 = vperm.xlu1 %3311, %v3985_v37  }
 0x5e7   :  { %1051 = vrot.lane.b32.xlu1 %v1046_v38, %s3496_s1  ;;  %v3533_v38 = vmov 42  }
 0x5e8   :  { %3312 = vset.pattern.permute.xlu1 %v3532_v16  ;;  %3313 = vset.pattern.permute.xlu0 %v3533_v38 }
 0x5eb   :  { %1072 = vrot.lane.b32.xlu1 %v1065_v35, %s3497_s2 }
 0x632   :  { %v1025_v40 = vpop.permute.xlu0 %1024 }
 0x638   :  { %v996_v41 = vpop.permute.xlu0 %995  ;;  %v994_v8 = vpop.permute.xlu1 %993 }
 0x639   :  { %v999_v48 = vsel %vm271_vm9, %v994_v8, %v996_v41 }
 0x63a   :  { %v1004_v50 = vadd.f32 %v999_v48, %v980_v49 }
 0x63c   :  { %v1021_v27 = vpop.permute.xlu0 %1020  ;;  %v1106_v29 = vpop.permute.xlu1 %1105 }
 0x63d   :  { %v1031_v15 = vadd.f32 %v1021_v27, %v1004_v50 }
 0x63f   :  { %v1139_v21 = vmul.f32 %v3734_v46, %v1031_v15 }
 0x640   :  { %v998_v31 = vpop.permute.xlu1 %997  ;;  %v1104_v44 = vpop.permute.xlu0 %1103 }
 0x641   :  { %v1006_v52 = vadd.f32 %v998_v31, %v982_v43  ;;  %v1000_v62 = vsel %vm271_vm9, %v996_v41, %v998_v31  ;;  %v1108_v23 = vsel %vm271_vm9, %v1104_v44, %v1106_v29 }
 0x642   :  { %v1005_v10 = vadd.f32 %v1000_v62, %v981_v22  ;;  %v1114_v36 = vadd.f32 %v1108_v23, %v1090_v28 }
 0x644   :  { %v1023_v42 = vpop.permute.xlu1 %1022  ;;  %v1126_v13 = vpop.permute.xlu0 %1125 }
 0x645   :  { %v1027_v17 = vsel %vm299_vm10, %v1023_v42, %v1025_v40  ;;  %v1026_v3 = vsel %vm299_vm10, %v1021_v27, %v1023_v42 }
 0x646   :  { %v1033_v53 = vadd.f32 %v1027_v17, %v1006_v52  ;;  %v1032_v7 = vadd.f32 %v1026_v3, %v1005_v10 }
 0x648   :  { %v1141_v57 = vmul.f32 %v3732_v45, %v1033_v53  ;;  %v1102_v59 = vpop.permute.xlu1 %1101  ;;  %v1130_v32 = vpop.permute.xlu0 %1129  ;;  %v1140_v30 = vmul.f32 %v1032_v7, %v3750_v60 }
 0x649   :  { %v1107_v18 = vsel %vm271_vm9, %v1102_v59, %v1104_v44  ;;  %v1112_v63 = vadd.f32 %v1102_v59, %v1088_v54 }
 0x64a   :  { %1149 = vrot.lane.b32.xlu0 %v1141_v57, %s3503_s22  ;;  %v1113_v24 = vadd.f32 %v1107_v18, %v1089_v0 }
 0x64b   :  { %v1136_v14 = vadd.f32 %v1126_v13, %v1112_v63 }
 0x64c   :  { %v1128_v55 = vpop.permute.xlu1 %1127  ;;  %v1075_v41 = vpop.permute.xlu0 %1074 }
 0x64d   :  { %v1131_v33 = vsel %vm299_vm10, %v1126_v13, %v1128_v55  ;;  %v1159_v34 = vmul.f32 %v3738_v51, %v1136_v14  ;;  %v1132_v20 = vsel %vm299_vm10, %v1128_v55, %v1130_v32 }
 0x64e   :  { %v1137_v26 = vadd.f32 %v1131_v33, %v1113_v24  ;;  %1145 = vrot.lane.b32.xlu0 %v1139_v21, %s3503_s22  ;;  %v1138_v25 = vadd.f32 %v1132_v20, %v1114_v36  ;;  %v3535_v20 = vmov 36   ;;  %v3537_v36 = vmov 43  }
 0x64f   :  { %1165 = vrot.lane.b32.xlu1 %v1159_v34, %s3504_s23 }
 0x650   :  { %v1160_v5 = vmul.f32 %v1137_v26, %v3759_v1  ;;  %v1161_v35 = vmul.f32 %v3743_v56, %v1138_v25  ;;  %v1050_v27 = vpop.permute.xlu0 %1049  ;;  %v3536_v26 = vmov 44  }
 0x652   :  { %1167 = vrot.lane.b32.xlu0 %v1160_v5, %s3504_s23  ;;  %v3538_v5 = vmov 40  }
 0x653   :  { %1147 = vrot.lane.b32.xlu1 %v1140_v30, %s3503_s22  ;;  %v4037_v30 = vld [vmem:[#allocation2 + $0x40] sm:$0xf0] }
 0x654   :  { %v1071_v16 = vpop.permute.xlu0 %1070 }
 0x657   :  { %1169 = vrot.lane.b32.xlu1 %v1161_v35, %s3504_s23  ;;  %v3539_v35 = vmov 38  }
 0x65b   :  { %1216 = vperm.xlu1 %3312, %v3894_v47  }
 0x65d   :  { %v1036_v40 = vpop.permute.xlu1 %1035 }
 0x65e   :  { %v1038_v31 = vmul.f32 %v1036_v40, %v3955_v58  ;;  %v1040_v50 = vmul.f32 %v1036_v40, %v3964_v19  ;;  %v1039_v13 = vmul.f32 %v1036_v40, %v3958_v61  ;;  %v3540_v40 = vmov 37  }
 0x65f   :  { %3314 = vset.pattern.permute.xlu1 %v3534_v39 }
 0x660   :  { %v1057_v49 = vadd.f32 %v1050_v27, %v1038_v31  ;;  %v1920_v31 = vld [vmem:[#allocation2 + $0x30] sm:$0xff] }
 0x662   :  { %v1181_v8 = vpop.permute.xlu1 %1180  ;;  %v1081_v53 = vadd.f32 %v1071_v16, %v1057_v49  ;;  %v1998_v49 = vrot.slane %v1920_v31, 4 }
 0x666   :  { %v1052_v29 = vpop.permute.xlu1 %1051 }
 0x667   :  { %v1053_v42 = vsel %vm271_vm9, %v1050_v27, %v1052_v29  ;;  %v1059_v54 = vadd.f32 %v1052_v29, %v1040_v50 }
 0x668   :  { %v1058_v58 = vadd.f32 %v1053_v42, %v1039_v13 }
 0x66a   :  { %v1073_v44 = vpop.permute.xlu1 %1072 }
 0x66b   :  { %v1077_v17 = vsel %vm299_vm10, %v1073_v44, %v1075_v41  ;;  %v1076_v15 = vsel %vm299_vm10, %v1071_v16, %v1073_v44  ;;  %v1918_v44 = vld [vmem:[#allocation2 + $0x10] sm:$0xf0] }
 0x66c   :  { %v1083_v59 = vadd.f32 %v1077_v17, %v1059_v54  ;;  %v1082_v3 = vadd.f32 %v1076_v15, %v1058_v58  ;;  %v1997_v42 = vrot.slane %v1918_v44, 4 }
 0x66e   :  { %v1999_v15 = vsel %vm1993_vm0, %v1997_v42, %v1998_v49 }
 0x6bc   :  { %v1150_v48 = vpop.permute.xlu0 %1149 }
 0x6c0   :  { %v1146_v43 = vpop.permute.xlu0 %1145 }
 0x6c1   :  { %v1166_v52 = vpop.permute.xlu1 %1165  ;;  %v1156_v62 = vadd.f32 %v1146_v43, %v1081_v53 }
 0x6c4   :  { %v1168_v57 = vpop.permute.xlu0 %1167 }
 0x6c5   :  { %v1171_v22 = vsel %vm468_vm14, %v1166_v52, %v1168_v57  ;;  %v1148_v18 = vpop.permute.xlu1 %1147 }
 0x6c6   :  { %v1176_v63 = vadd.f32 %v1171_v22, %v1156_v62  ;;  %v1151_v19 = vsel %vm436_vm13, %v1146_v43, %v1148_v18  ;;  %v1152_v0 = vsel %vm436_vm13, %v1148_v18, %v1150_v48  ;;  %v1919_v48 = vld [vmem:[#allocation2 + $0x28] sm:$0xff]  ;;  %v1242_v18 = vld [vmem:[#allocation2 + $0x58] sm:$0xf0] }
 0x6c7   :  { %v1158_v10 = vadd.f32 %v1152_v0, %v1083_v59  ;;  %v1157_v21 = vadd.f32 %v1151_v19, %v1082_v3  ;;  %v1917_v43 = vld [vmem:[#allocation2 + $0x8] sm:$0xf0]  ;;  %v1995_v52 = vrot.slane %v1919_v48, 4 }
 0x6c8   :  { %v1183_v14 = vadd.f32 %v1181_v8, %v1176_v63  ;;  %v1994_v13 = vrot.slane %v1917_v43, 4 }
 0x6c9   :  { %v1170_v61 = vpop.permute.xlu1 %1169 }
 0x6ca   :  { %v1189_v23 = vrot.slane %v1183_v14, 4  ;;  %v1172_v24 = vsel %vm468_vm14, %v1168_v57, %v1170_v61  ;;  %v1178_v55 = vadd.f32 %v1170_v61, %v1158_v10  ;;  %v1996_v58 = vsel %vm1993_vm0, %v1994_v13, %v1995_v52 }
 0x6cb   :  { %v1177_v28 = vadd.f32 %v1172_v24, %v1157_v21 }
 0x6cc   :  { %v1185_v7 = vadd.f32 %v1181_v8, %v1178_v55  ;;  %1192 = vrot.lane.b32.xlu0 %v1189_v23, %s3507_s24 }
 0x6cd   :  { %v1184_v32 = vadd.f32 %v1181_v8, %v1177_v28 }
 0x6ce   :  { %v1191_v33 = vrot.slane %v1185_v7, 4 }
 0x6cf   :  { %v1190_v34 = vrot.slane %v1184_v32, 4 }
 0x6d0   :  { %1196 = vrot.lane.b32.xlu0 %v1191_v33, %s3507_s24 }
 0x6d1   :  { %1194 = vrot.lane.b32.xlu1 %v1190_v34, %s3507_s24 }
 0x6d4   :  { %1244 = vperm.xlu0 %3313, %v3894_v47  }
 0x6d5   :  { %1330 = vperm.xlu1 %3314, %v3894_v47  }
 0x6d8   :  { %3316 = vset.pattern.permute.xlu0 %v3535_v20 }
 0x6d9   :  { %1208 = vperm.xlu0 %3316, %v3894_v47   ;;  %3315 = vset.pattern.permute.xlu1 %v3536_v26 }
 0x6da   :  { %1355 = vperm.xlu1 %3315, %v3894_v47   ;;  %v1217_v25 = vpop.permute.xlu1 %1216 }
 0x6db   :  { %v1218_v38 = vrot.slane %v1217_v25, 4 }
 0x6dd   :  { %3319 = vset.pattern.permute.xlu0 %v3537_v36  ;;  %v1220_v39 = vmul.f32 %v1218_v38, %v4037_v30 }
 0x6de   :  { %1297 = vperm.xlu0 %3319, %v3894_v47   ;;  %3317 = vset.pattern.permute.xlu1 %v3538_v5 }
 0x6df   :  { %1277 = vperm.xlu1 %3317, %v3894_v47  }
 0x6e2   :  { %3320 = vset.pattern.permute.xlu0 %v3540_v40 }
 0x6e3   :  { %3318 = vset.pattern.permute.xlu1 %v3539_v35 }
 0x6e4   :  { %1322 = vperm.xlu1 %3318, %v3894_v47  }
 0x6e8   :  { %1226 = vrot.lane.b32.xlu1 %v1220_v39, %s3496_s1 }
 0x73e   :  { %v1193_v41 = vpop.permute.xlu0 %1192 }
 0x742   :  { %v1197_v8 = vpop.permute.xlu0 %1196 }
 0x743   :  { %v1195_v27 = vpop.permute.xlu1 %1194 }
 0x744   :  { %v1198_v29 = vsel %vm494_vm15, %v1193_v41, %v1195_v27  ;;  %v1199_v16 = vsel %vm494_vm15, %v1195_v27, %v1197_v8 }
 0x745   :  { %1202 = vst [vmem:[#allocation2 + $0x48] sm:$0xf0] %v1198_v29  ;;  %1203 = vst [vmem:[#allocation2 + $0x50] sm:$0xf0] %v1199_v16 }
 0x74c   :  { %v4044_v50 = vld [vmem:[#allocation2 + $0x50] sm:$0xff]  ;;  %v4047_v53 = vld [vmem:[#allocation2 + $0x48] sm:$0xff] }
 0x74d   :  { %v2002_v17 = vrot.slane %v4044_v50, 4  ;;  %v2000_v54 = vrot.slane %v4047_v53, 4  ;;  %v4058_v21 = vld [vmem:[#allocation2 + $0x48] sm:$0xf0]  ;;  %v4061_v61 = vld [vmem:[#allocation2 + $0x50] sm:$0xf0] }
 0x74e   :  { %v1221_v23 = vmul.f32 %v1218_v38, %v4058_v21  ;;  %v1222_v24 = vmul.f32 %v1218_v38, %v4061_v61  ;;  %v1240_v55 = vld [vmem:[#allocation2 + $0x48] sm:$0xf0]  ;;  %v1241_v28 = vld [vmem:[#allocation2 + $0x50] sm:$0xf0]  ;;  %v1927_v50 = vld [vmem:[%s5090_s5] sm:$0xff] }
 0x74f   :  { %v2003_v62 = vsel %vm1993_vm0, %v1998_v49, %v2002_v17  ;;  %v2001_v59 = vsel %vm1993_vm0, %v1995_v52, %v2000_v54  ;;  %v1929_v53 = vld [vmem:[%s5090_s5 + $0x10] sm:$0xff] }
 0x750   :  { %v3133_v57 = vpack.c.bf16 %v2003_v62, %v1999_v15  ;;  %v3135_v22 = vpack.c.bf16 %v2001_v59, %v1996_v58 }
 0x752   :  { %3134 = vmatprep.subr.bf16.mxu1 %v3133_v57 }
 0x753   :  { %v1245_v63 = vpop.permute.xlu0 %1244  ;;  %3136 = vmatpush1.bf16.msra.mxu1 %v3135_v22 }
 0x754   :  { %v1246_v19 = vrot.slane %v1245_v63, 4  ;;  %v1331_v0 = vpop.permute.xlu1 %1330 }
 0x755   :  { %v1332_v3 = vrot.slane %v1331_v0, 4 }
 0x756   :  { %v1250_v10 = vmul.f32 %v1246_v19, %v1242_v18  ;;  %v1248_v7 = vmul.f32 %v1246_v19, %v1240_v55  ;;  %v1249_v32 = vmul.f32 %v1246_v19, %v1241_v28 }
 0x757   :  { %v1336_v14 = vmul.f32 %v1332_v3, %v1242_v18  ;;  %v1335_v34 = vmul.f32 %v1332_v3, %v1241_v28  ;;  %v1334_v26 = vmul.f32 %v1332_v3, %v1240_v55 }
 0x758   :  { %1258 = vrot.lane.b32.xlu1 %v1250_v10, %s3497_s2  ;;  %v1209_v5 = vpop.permute.xlu0 %1208 }
 0x759   :  { %1344 = vrot.lane.b32.xlu0 %v1336_v14, %s3496_s1  ;;  %v1356_v33 = vpop.permute.xlu1 %1355 }
 0x75a   :  { %v1357_v20 = vrot.slane %v1356_v33, 4 }
 0x75c   :  { %1228 = vrot.lane.b32.xlu1 %v1221_v23, %s3496_s1  ;;  %v1359_v36 = vmul.f32 %v1357_v20, %v1240_v55  ;;  %v1360_v25 = vmul.f32 %v1357_v20, %v1241_v28  ;;  %v1361_v35 = vmul.f32 %v1357_v20, %v1242_v18 }
 0x75d   :  { %1230 = vrot.lane.b32.xlu0 %v1222_v24, %s3496_s1  ;;  %v1298_v40 = vpop.permute.xlu0 %1297 }
 0x75e   :  { %v1278_v38 = vpop.permute.xlu1 %1277  ;;  %v1299_v8 = vrot.slane %v1298_v40, 4 }
 0x75f   :  { %v1279_v39 = vrot.slane %v1278_v38, 4 }
 0x760   :  { %1254 = vrot.lane.b32.xlu1 %v1248_v7, %s3497_s2  ;;  %v1303_v27 = vmul.f32 %v1299_v8, %v1242_v18  ;;  %v1301_v16 = vmul.f32 %v1299_v8, %v1240_v55  ;;  %v1302_v31 = vmul.f32 %v1299_v8, %v1241_v28 }
 0x761   :  { %1256 = vrot.lane.b32.xlu0 %v1249_v32, %s3497_s2  ;;  %v1281_v41 = vmul.f32 %v1279_v39, %v4058_v21  ;;  %v1282_v29 = vmul.f32 %v1279_v39, %v4061_v61 }
 0x763   :  { %v1323_v48 = vpop.permute.xlu1 %1322 }
 0x764   :  { %1342 = vrot.lane.b32.xlu1 %v1335_v34, %s3496_s1  ;;  %v1324_v18 = vrot.slane %v1323_v48, 4  ;;  %v3541_v48 = vmov 51  }
 0x765   :  { %1340 = vrot.lane.b32.xlu0 %v1334_v26, %s3496_s1  ;;  %3323 = vset.pattern.permute.xlu1 %v3541_v48 }
 0x766   :  { %v1326_v3 = vmul.f32 %v1324_v18, %v4037_v30  ;;  %v1327_v32 = vmul.f32 %v1324_v18, %v4058_v21  ;;  %v1328_v39 = vmul.f32 %v1324_v18, %v4061_v61 }
 0x767   :  { %v1227_v44 = vpop.permute.xlu1 %1226 }
 0x768   :  { %1365 = vrot.lane.b32.xlu1 %v1359_v36, %s3497_s2 }
 0x769   :  { %1367 = vrot.lane.b32.xlu0 %v1360_v25, %s3497_s2 }
 0x76c   :  { %1369 = vrot.lane.b32.xlu1 %v1361_v35, %s3497_s2 }
 0x76d   :  { %1269 = vperm.xlu0 %3320, %v3894_v47  }
 0x770   :  { %1285 = vrot.lane.b32.xlu1 %v1281_v41, %s3496_s1 }
 0x771   :  { %3321 = vset.pattern.permute.xlu0 %v3494_v12  ;;  %v1210_v12 = vrot.slane %v1209_v5, 4 }
 0x772   :  { %1420 = vperm.xlu0 %3321, %v3985_v37  }
 0x773   :  { %v1212_v15 = vmul.f32 %v1210_v12, %v4037_v30  ;;  %v1214_v62 = vmul.f32 %v1210_v12, %v4061_v61  ;;  %v1213_v7 = vmul.f32 %v1210_v12, %v4058_v21 }
 0x774   :  { %1287 = vrot.lane.b32.xlu1 %v1282_v29, %s3496_s1 }
 0x776   :  { %1311 = vrot.lane.b32.xlu0 %v1303_v27, %s3497_s2 }
 0x778   :  { %1307 = vrot.lane.b32.xlu1 %v1301_v16, %s3497_s2 }
 0x77c   :  { %1309 = vrot.lane.b32.xlu1 %v1302_v31, %s3497_s2 }
 0x7ca   :  { %v1259_v49 = vpop.permute.xlu1 %1258 }
 0x7cb   :  { %v1345_v43 = vpop.permute.xlu0 %1344 }
 0x7ce   :  { %v1229_v52 = vpop.permute.xlu1 %1228 }
 0x7cf   :  { %v1231_v42 = vpop.permute.xlu0 %1230  ;;  %v1232_v13 = vsel %vm271_vm9, %v1227_v44, %v1229_v52 }
 0x7d0   :  { %v1237_v58 = vadd.f32 %v1232_v13, %v1212_v15  ;;  %v1239_v59 = vadd.f32 %v1231_v42, %v1214_v62  ;;  %v1233_v24 = vsel %vm271_vm9, %v1229_v52, %v1231_v42 }
 0x7d1   :  { %v1238_v20 = vadd.f32 %v1233_v24, %v1213_v7 }
 0x7d2   :  { %v1255_v57 = vpop.permute.xlu1 %1254 }
 0x7d3   :  { %v1257_v22 = vpop.permute.xlu0 %1256  ;;  %v1265_v10 = vadd.f32 %v1255_v57, %v1237_v58 }
 0x7d4   :  { %v1261_v63 = vsel %vm299_vm10, %v1257_v22, %v1259_v49  ;;  %v1260_v33 = vsel %vm299_vm10, %v1255_v57, %v1257_v22 }
 0x7d5   :  { %v1267_v19 = vadd.f32 %v1261_v63, %v1239_v59  ;;  %v1379_v26 = vmul.f32 %v3734_v46, %v1265_v10  ;;  %v1266_v40 = vadd.f32 %v1260_v33, %v1238_v20 }
 0x7d6   :  { %v1343_v0 = vpop.permute.xlu1 %1342 }
 0x7d7   :  { %v1381_v14 = vmul.f32 %v3732_v45, %v1267_v19  ;;  %v1341_v23 = vpop.permute.xlu0 %1340  ;;  %v1347_v38 = vsel %vm271_vm9, %v1343_v0, %v1345_v43  ;;  %v1380_v44 = vmul.f32 %v1266_v40, %v3750_v60  ;;  %v3542_v43 = vmov 48  }
 0x7d8   :  { %v1346_v55 = vsel %vm271_vm9, %v1341_v23, %v1343_v0  ;;  %v1351_v28 = vadd.f32 %v1341_v23, %v1326_v3  ;;  %v1353_v29 = vadd.f32 %v1347_v38, %v1328_v39  ;;  %3322 = vset.pattern.permute.xlu0 %v3542_v43  ;;  %v4130_v43 = vld [vmem:[%s5087_s3] sm:$0xf] }
 0x7d9   :  { %1389 = vrot.lane.b32.xlu1 %v1381_v14, %s3503_s22  ;;  %v1352_v36 = vadd.f32 %v1346_v55, %v1327_v32 }
 0x7da   :  { %v1366_v34 = vpop.permute.xlu1 %1365 }
 0x7db   :  { %v1376_v5 = vadd.f32 %v1366_v34, %v1351_v28  ;;  %v1368_v25 = vpop.permute.xlu0 %1367 }
 0x7dc   :  { %v1371_v35 = vsel %vm299_vm10, %v1366_v34, %v1368_v25 }
 0x7dd   :  { %v1399_v41 = vmul.f32 %v3738_v51, %v1376_v5  ;;  %v1377_v8 = vadd.f32 %v1371_v35, %v1352_v36  ;;  %1385 = vrot.lane.b32.xlu1 %v1379_v26, %s3503_s22 }
 0x7de   :  { %v1370_v27 = vpop.permute.xlu1 %1369 }
 0x7df   :  { %v1400_v16 = vmul.f32 %v1377_v8, %v3759_v1  ;;  %v1372_v31 = vsel %vm299_vm10, %v1368_v25, %v1370_v27  ;;  %1405 = vrot.lane.b32.xlu0 %v1399_v41, %s3504_s23 }
 0x7e0   :  { %v1378_v49 = vadd.f32 %v1372_v31, %v1353_v29 }
 0x7e1   :  { %1407 = vrot.lane.b32.xlu1 %v1400_v16, %s3504_s23 }
 0x7e2   :  { %v1401_v12 = vmul.f32 %v3743_v56, %v1378_v49  ;;  %v1286_v52 = vpop.permute.xlu1 %1285  ;;  %v3544_v49 = vmov 53  }
 0x7e3   :  { %1387 = vrot.lane.b32.xlu0 %v1380_v44, %s3503_s22  ;;  %v3543_v44 = vmov 50  }
 0x7e6   :  { %v1288_v42 = vpop.permute.xlu1 %1287 }
 0x7e7   :  { %1409 = vrot.lane.b32.xlu0 %v1401_v12, %s3504_s23  ;;  %v1289_v23 = vsel %vm271_vm9, %v1286_v52, %v1288_v42  ;;  %v3545_v12 = vmov 45  }
 0x7ea   :  { %v1308_v13 = vpop.permute.xlu1 %1307 }
 0x7ec   :  { %v1270_v15 = vpop.permute.xlu0 %1269 }
 0x7ed   :  { %v1271_v62 = vrot.slane %v1270_v15, 4 }
 0x7ee   :  { %v1310_v57 = vpop.permute.xlu1 %1309 }
 0x7ef   :  { %v1273_v59 = vmul.f32 %v1271_v62, %v4037_v30  ;;  %v1274_v19 = vmul.f32 %v1271_v62, %v4058_v21  ;;  %v1275_v0 = vmul.f32 %v1271_v62, %v4061_v61  ;;  %v1313_v21 = vsel %vm299_vm10, %v1308_v13, %v1310_v57 }
 0x7f1   :  { %v1421_v58 = vpop.permute.xlu0 %1420  ;;  %v1293_v63 = vadd.f32 %v1286_v52, %v1273_v59  ;;  %v1294_v55 = vadd.f32 %v1289_v23, %v1274_v19  ;;  %v1295_v28 = vadd.f32 %v1288_v42, %v1275_v0  ;;  %v3546_v52 = vmov 47  }
 0x7f2   :  { %v1422_v33 = vrot.slane %v1421_v58, 4  ;;  %v3547_v42 = vmov 49   ;;  %v1481_v58 = vld [vmem:[#allocation2 + $0x78] sm:$0xf] }
 0x7f3   :  { %v1318_v10 = vadd.f32 %v1308_v13, %v1293_v63  ;;  %v1319_v5 = vadd.f32 %v1313_v21, %v1294_v55  ;;  %v3549_v13 = vmov 46   ;;  %v4139_v63 = vld [vmem:[#allocation2 + $0x60] sm:$0xf] }
 0x7f5   :  { %v1312_v18 = vpop.permute.xlu0 %1311 }
 0x7f6   :  { %v1314_v24 = vsel %vm299_vm10, %v1310_v57, %v1312_v18 }
 0x7f7   :  { %v1320_v34 = vadd.f32 %v1314_v24, %v1295_v28 }
 0x84b   :  { %v1390_v22 = vpop.permute.xlu1 %1389 }
 0x84f   :  { %v1386_v3 = vpop.permute.xlu1 %1385 }
 0x850   :  { %v1396_v7 = vadd.f32 %v1386_v3, %v1318_v10 }
 0x851   :  { %v1406_v14 = vpop.permute.xlu0 %1405 }
 0x853   :  { %v1408_v32 = vpop.permute.xlu1 %1407 }
 0x854   :  { %v1411_v30 = vsel %vm468_vm14, %v1406_v14, %v1408_v32 }
 0x855   :  { %v1416_v20 = vadd.f32 %v1411_v30, %v1396_v7  ;;  %v1388_v26 = vpop.permute.xlu0 %1387 }
 0x856   :  { %v1391_v61 = vsel %vm436_vm13, %v1386_v3, %v1388_v26  ;;  %v1392_v36 = vsel %vm436_vm13, %v1388_v26, %v1390_v22 }
 0x857   :  { %v1424_v25 = vadd.f32 %v1422_v33, %v1416_v20  ;;  %v1398_v38 = vadd.f32 %v1392_v36, %v1320_v34  ;;  %v1397_v39 = vadd.f32 %v1391_v61, %v1319_v5 }
 0x859   :  { %v1430_v35 = vrot.slane %v1424_v25, 4  ;;  %v1410_v40 = vpop.permute.xlu0 %1409 }
 0x85a   :  { %v1412_v41 = vsel %vm468_vm14, %v1408_v32, %v1410_v40  ;;  %v1418_v8 = vadd.f32 %v1410_v40, %v1398_v38 }
 0x85b   :  { %v1417_v27 = vadd.f32 %v1412_v41, %v1397_v39  ;;  %1433 = vrot.lane.b32.xlu1 %v1430_v35, %s3507_s24 }
 0x85c   :  { %v1426_v16 = vadd.f32 %v1422_v33, %v1418_v8 }
 0x85d   :  { %v1425_v29 = vadd.f32 %v1422_v33, %v1417_v27 }
 0x85e   :  { %v1432_v48 = vrot.slane %v1426_v16, 4 }
 0x85f   :  { %v1431_v31 = vrot.slane %v1425_v29, 4  ;;  %1483 = vperm.xlu1 %3323, %v3894_v47  }
 0x861   :  { %1435 = vrot.lane.b32.xlu0 %v1431_v31, %s3507_s24 }
 0x863   :  { %1437 = vrot.lane.b32.xlu1 %v1432_v48, %s3507_s24 }
 0x864   :  { %3324 = vset.pattern.permute.xlu1 %v3543_v44 }
 0x865   :  { %1456 = vperm.xlu0 %3322, %v3894_v47  }
 0x867   :  { %1564 = vperm.xlu1 %3324, %v3894_v47   ;;  %v3548_v47 = vmov 52  }
 0x869   :  { %3325 = vset.pattern.permute.xlu0 %v3544_v49  ;;  %v3550_v49 = vmov 57  }
 0x86a   :  { %1588 = vperm.xlu0 %3325, %v4130_v43  }
 0x86b   :  { %3326 = vset.pattern.permute.xlu1 %v3545_v12 }
 0x86c   :  { %1449 = vperm.xlu1 %3326, %v4130_v43  }
 0x86e   :  { %3328 = vset.pattern.permute.xlu0 %v3546_v52 }
 0x86f   :  { %1557 = vperm.xlu0 %3328, %v4130_v43  }
 0x870   :  { %3327 = vset.pattern.permute.xlu1 %v3547_v42 }
 0x871   :  { %1514 = vperm.xlu1 %3327, %v4130_v43  }
 0x875   :  { %3329 = vset.pattern.permute.xlu1 %v3548_v47 }
 0x876   :  { %1533 = vperm.xlu1 %3329, %v4130_v43  }
 0x87a   :  { %3330 = vset.pattern.permute.xlu1 %v3549_v13 }
 0x8cd   :  { %v1434_v15 = vpop.permute.xlu1 %1433 }
 0x8d3   :  { %v1436_v62 = vpop.permute.xlu0 %1435 }
 0x8d4   :  { %v1439_v57 = vsel %vm494_vm15, %v1434_v15, %v1436_v62 }
 0x8d5   :  { %1443 = vst [vmem:[#allocation2 + $0x68] sm:$0xf] %v1439_v57 }
 0x8dc   :  { %v4142_v3 = vld [vmem:[#allocation2 + $0x68] sm:$0xf] }
 0x8dd   :  { %v1479_v55 = vld [vmem:[#allocation2 + $0x68] sm:$0xf] }
 0x8de   :  { %v1484_v59 = vpop.permute.xlu1 %1483 }
 0x8df   :  { %v1488_v22 = vmul.f32 %v1484_v59, %v1481_v58  ;;  %v1486_v28 = vmul.f32 %v1484_v59, %v1479_v55 }
 0x8e1   :  { %1496 = vrot.lane.b32.xlu0 %v1488_v22, %s3497_s2 }
 0x8e2   :  { %v1438_v18 = vpop.permute.xlu1 %1437 }
 0x8e3   :  { %v1440_v19 = vsel %vm494_vm15, %v1436_v62, %v1438_v18 }
 0x8e4   :  { %1444 = vst [vmem:[#allocation2 + $0x70] sm:$0xf] %v1440_v19  ;;  %v1457_v0 = vpop.permute.xlu0 %1456 }
 0x8e5   :  { %v1459_v10 = vmul.f32 %v1457_v0, %v4139_v63  ;;  %v1460_v14 = vmul.f32 %v1457_v0, %v4142_v3 }
 0x8e6   :  { %v1565_v23 = vpop.permute.xlu1 %1564 }
 0x8e7   :  { %v1569_v24 = vmul.f32 %v1565_v23, %v1481_v58  ;;  %1465 = vrot.lane.b32.xlu1 %v1459_v10, %s3496_s1  ;;  %1467 = vrot.lane.b32.xlu0 %v1460_v14, %s3496_s1  ;;  %v1567_v5 = vmul.f32 %v1565_v23, %v1479_v55 }
 0x8e9   :  { %v1589_v20 = vpop.permute.xlu0 %1588 }
 0x8ea   :  { %v1591_v21 = vmul.f32 %v1589_v20, %v1479_v55  ;;  %v1593_v36 = vmul.f32 %v1589_v20, %v1481_v58 }
 0x8eb   :  { %v4148_v7 = vld [vmem:[#allocation2 + $0x70] sm:$0xf]  ;;  %1492 = vrot.lane.b32.xlu0 %v1486_v28, %s3497_s2  ;;  %1577 = vrot.lane.b32.xlu1 %v1569_v24, %s3496_s1  ;;  %v1450_v30 = vpop.permute.xlu1 %1449 }
 0x8ec   :  { %v1480_v32 = vld [vmem:[#allocation2 + $0x70] sm:$0xf]  ;;  %v1461_v33 = vmul.f32 %v1457_v0, %v4148_v7  ;;  %v1454_v42 = vmul.f32 %v1450_v30, %v4148_v7  ;;  %v1453_v10 = vmul.f32 %v1450_v30, %v4142_v3 }
 0x8ed   :  { %v1568_v34 = vmul.f32 %v1565_v23, %v1480_v32  ;;  %v1487_v61 = vmul.f32 %v1484_v59, %v1480_v32  ;;  %v1592_v35 = vmul.f32 %v1589_v20, %v1480_v32 }
 0x8ee   :  { %v1558_v27 = vpop.permute.xlu0 %1557 }
 0x8ef   :  { %1469 = vrot.lane.b32.xlu1 %v1461_v33, %s3496_s1  ;;  %1575 = vrot.lane.b32.xlu0 %v1568_v34, %s3496_s1  ;;  %v1560_v59 = vmul.f32 %v1558_v27, %v4139_v63  ;;  %v1561_v24 = vmul.f32 %v1558_v27, %v4142_v3 }
 0x8f0   :  { %v1515_v26 = vpop.permute.xlu1 %1514 }
 0x8f1   :  { %v1517_v39 = vmul.f32 %v1515_v26, %v4142_v3  ;;  %v1518_v41 = vmul.f32 %v1515_v26, %v4148_v7 }
 0x8f3   :  { %1494 = vrot.lane.b32.xlu1 %v1487_v61, %s3497_s2  ;;  %1597 = vrot.lane.b32.xlu0 %v1591_v21, %s3497_s2  ;;  %v1562_v21 = vmul.f32 %v1558_v27, %v4148_v7 }
 0x8f5   :  { %v1534_v25 = vpop.permute.xlu1 %1533 }
 0x8f6   :  { %v1538_v38 = vmul.f32 %v1534_v25, %v1481_v58  ;;  %v1536_v40 = vmul.f32 %v1534_v25, %v1479_v55  ;;  %v1537_v8 = vmul.f32 %v1534_v25, %v1480_v32 }
 0x8f7   :  { %1601 = vrot.lane.b32.xlu0 %v1593_v36, %s3497_s2  ;;  %1573 = vrot.lane.b32.xlu1 %v1567_v5, %s3496_s1 }
 0x8fb   :  { %1599 = vrot.lane.b32.xlu1 %v1592_v35, %s3497_s2  ;;  %1546 = vrot.lane.b32.xlu0 %v1538_v38, %s3497_s2 }
 0x8ff   :  { %1507 = vperm.xlu1 %3330, %v4130_v43   ;;  %1521 = vrot.lane.b32.xlu0 %v1517_v39, %s3496_s1 }
 0x903   :  { %3331 = vset.pattern.permute.xlu1 %v3491_v9  ;;  %1542 = vrot.lane.b32.xlu0 %v1536_v40, %s3497_s2 }
 0x904   :  { %1652 = vperm.xlu1 %3331, %v3985_v37   ;;  %v1452_v37 = vmul.f32 %v1450_v30, %v4139_v63 }
 0x908   :  { %1523 = vrot.lane.b32.xlu1 %v1518_v41, %s3496_s1 }
 0x909   :  { %3332 = vset.pattern.permute.xlu1 %v3550_v49 }
 0x90c   :  { %1544 = vrot.lane.b32.xlu1 %v1537_v8, %s3497_s2  ;;  %v3551_v8 = vmov 60  }
 0x90d   :  { %3333 = vset.pattern.permute.xlu0 %v3551_v8 }
 0x953   :  { %v1497_v29 = vpop.permute.xlu0 %1496 }
 0x959   :  { %v1468_v16 = vpop.permute.xlu0 %1467  ;;  %v1466_v31 = vpop.permute.xlu1 %1465 }
 0x95a   :  { %v1471_v12 = vsel %vm271_vm9, %v1466_v31, %v1468_v16 }
 0x95b   :  { %v1476_v47 = vadd.f32 %v1471_v12, %v1452_v37 }
 0x95d   :  { %v1493_v48 = vpop.permute.xlu0 %1492  ;;  %v1578_v44 = vpop.permute.xlu1 %1577 }
 0x95e   :  { %v1503_v22 = vadd.f32 %v1493_v48, %v1476_v47 }
 0x960   :  { %v1611_v33 = vmul.f32 %v3734_v46, %v1503_v22 }
 0x961   :  { %v1470_v9 = vpop.permute.xlu1 %1469  ;;  %v1576_v52 = vpop.permute.xlu0 %1575 }
 0x962   :  { %v1478_v13 = vadd.f32 %v1470_v9, %v1454_v42  ;;  %v1472_v18 = vsel %vm271_vm9, %v1468_v16, %v1470_v9  ;;  %v1580_v34 = vsel %vm271_vm9, %v1576_v52, %v1578_v44 }
 0x963   :  { %v1477_v28 = vadd.f32 %v1472_v18, %v1453_v10  ;;  %v1586_v35 = vadd.f32 %v1580_v34, %v1562_v21 }
 0x965   :  { %v1495_v15 = vpop.permute.xlu1 %1494  ;;  %v1598_v58 = vpop.permute.xlu0 %1597 }
 0x966   :  { %v1499_v62 = vsel %vm299_vm10, %v1495_v15, %v1497_v29  ;;  %v1498_v55 = vsel %vm299_vm10, %v1493_v48, %v1495_v15  ;;  %v3552_v29 = vmov 59  }
 0x967   :  { %v1505_v57 = vadd.f32 %v1499_v62, %v1478_v13  ;;  %v1504_v30 = vadd.f32 %v1498_v55, %v1477_v28 }
 0x969   :  { %v1613_v19 = vmul.f32 %v3732_v45, %v1505_v57  ;;  %v1574_v0 = vpop.permute.xlu1 %1573  ;;  %v1602_v61 = vpop.permute.xlu0 %1601  ;;  %v1612_v40 = vmul.f32 %v1504_v30, %v3750_v60 }
 0x96a   :  { %v1579_v14 = vsel %vm271_vm9, %v1574_v0, %v1576_v52  ;;  %v1584_v23 = vadd.f32 %v1574_v0, %v1560_v59 }
 0x96b   :  { %1621 = vrot.lane.b32.xlu0 %v1613_v19, %s3503_s22  ;;  %v1585_v20 = vadd.f32 %v1579_v14, %v1561_v24 }
 0x96c   :  { %v1608_v32 = vadd.f32 %v1598_v58, %v1584_v23 }
 0x96d   :  { %v1600_v26 = vpop.permute.xlu1 %1599  ;;  %v1547_v31 = vpop.permute.xlu0 %1546 }
 0x96e   :  { %v1603_v36 = vsel %vm299_vm10, %v1598_v58, %v1600_v26  ;;  %v1631_v5 = vmul.f32 %v3738_v51, %v1608_v32  ;;  %v1604_v25 = vsel %vm299_vm10, %v1600_v26, %v1602_v61 }
 0x96f   :  { %v1609_v38 = vadd.f32 %v1603_v36, %v1585_v20  ;;  %1617 = vrot.lane.b32.xlu0 %v1611_v33, %s3503_s22  ;;  %v1610_v41 = vadd.f32 %v1604_v25, %v1586_v35  ;;  %v3554_v35 = vmov 62  }
 0x970   :  { %1637 = vrot.lane.b32.xlu1 %v1631_v5, %s3504_s23 }
 0x971   :  { %v1632_v39 = vmul.f32 %v1609_v38, %v3759_v1  ;;  %v1633_v27 = vmul.f32 %v3743_v56, %v1610_v41  ;;  %v1522_v44 = vpop.permute.xlu0 %1521  ;;  %v3553_v38 = vmov 54   ;;  %v4216_v41 = vld [vmem:[#allocation2 + $0x60] sm:$0xf0] }
 0x973   :  { %1639 = vrot.lane.b32.xlu0 %v1632_v39, %s3504_s23  ;;  %v3555_v39 = vmov 61  }
 0x974   :  { %1619 = vrot.lane.b32.xlu1 %v1612_v40, %s3503_s22  ;;  %v3556_v40 = vmov 58  }
 0x975   :  { %v1543_v9 = vpop.permute.xlu0 %1542 }
 0x978   :  { %1641 = vrot.lane.b32.xlu1 %v1633_v27, %s3504_s23 }
 0x97c   :  { %1688 = vperm.xlu1 %3332, %v4130_v43  }
 0x97e   :  { %v1508_v16 = vpop.permute.xlu1 %1507 }
 0x97f   :  { %v1510_v12 = vmul.f32 %v1508_v16, %v4139_v63  ;;  %v1512_v13 = vmul.f32 %v1508_v16, %v4148_v7  ;;  %v1511_v59 = vmul.f32 %v1508_v16, %v4142_v3 }
 0x980   :  { %3334 = vset.pattern.permute.xlu1 %v3552_v29  ;;  %v3557_v29 = vmov 56  }
 0x981   :  { %v1529_v42 = vadd.f32 %v1522_v44, %v1510_v12 }
 0x983   :  { %v1653_v48 = vpop.permute.xlu1 %1652  ;;  %v1553_v58 = vadd.f32 %v1543_v9, %v1529_v42 }
 0x987   :  { %v1524_v49 = vpop.permute.xlu1 %1523 }
 0x988   :  { %v1525_v62 = vsel %vm271_vm9, %v1522_v44, %v1524_v49  ;;  %v1531_v22 = vadd.f32 %v1524_v49, %v1512_v13 }
 0x989   :  { %v1530_v63 = vadd.f32 %v1525_v62, %v1511_v59 }
 0x98b   :  { %v1545_v37 = vpop.permute.xlu1 %1544 }
 0x98c   :  { %v1549_v57 = vsel %vm299_vm10, %v1545_v37, %v1547_v31  ;;  %v1548_v18 = vsel %vm299_vm10, %v1543_v9, %v1545_v37  ;;  %v3558_v31 = vmov 55  }
 0x98d   :  { %v1555_v10 = vadd.f32 %v1549_v57, %v1531_v22  ;;  %v1554_v28 = vadd.f32 %v1548_v18, %v1530_v63 }
 0x9dd   :  { %v1622_v52 = vpop.permute.xlu0 %1621 }
 0x9e1   :  { %v1618_v47 = vpop.permute.xlu0 %1617 }
 0x9e2   :  { %v1638_v15 = vpop.permute.xlu1 %1637  ;;  %v1628_v19 = vadd.f32 %v1618_v47, %v1553_v58 }
 0x9e5   :  { %v1640_v0 = vpop.permute.xlu0 %1639 }
 0x9e6   :  { %v1643_v14 = vsel %vm468_vm14, %v1638_v15, %v1640_v0  ;;  %v1620_v23 = vpop.permute.xlu1 %1619 }
 0x9e7   :  { %v1648_v24 = vadd.f32 %v1643_v14, %v1628_v19  ;;  %v1623_v7 = vsel %vm436_vm13, %v1618_v47, %v1620_v23  ;;  %v1624_v55 = vsel %vm436_vm13, %v1620_v23, %v1622_v52  ;;  %v1714_v52 = vld [vmem:[#allocation2 + $0x78] sm:$0xf0] }
 0x9e8   :  { %v1630_v32 = vadd.f32 %v1624_v55, %v1555_v10  ;;  %v1629_v34 = vadd.f32 %v1623_v7, %v1554_v28 }
 0x9e9   :  { %v1655_v33 = vadd.f32 %v1653_v48, %v1648_v24 }
 0x9ea   :  { %v1642_v3 = vpop.permute.xlu1 %1641 }
 0x9eb   :  { %v1661_v20 = vrot.slane %v1655_v33, 4  ;;  %v1644_v26 = vsel %vm468_vm14, %v1640_v0, %v1642_v3  ;;  %v1650_v21 = vadd.f32 %v1642_v3, %v1630_v32 }
 0x9ec   :  { %v1649_v30 = vadd.f32 %v1644_v26, %v1629_v34 }
 0x9ed   :  { %v1657_v61 = vadd.f32 %v1653_v48, %v1650_v21  ;;  %1664 = vrot.lane.b32.xlu0 %v1661_v20, %s3507_s24 }
 0x9ee   :  { %v1656_v36 = vadd.f32 %v1653_v48, %v1649_v30 }
 0x9ef   :  { %v1663_v5 = vrot.slane %v1657_v61, 4  ;;  %v3479_v61 = vld [vmem:[%s5088_s4] sm:$0xf] }
 0x9f0   :  { %v1662_v25 = vrot.slane %v1656_v36, 4 }
 0x9f1   :  { %1668 = vrot.lane.b32.xlu0 %v1663_v5, %s3507_s24 }
 0x9f2   :  { %1666 = vrot.lane.b32.xlu1 %v1662_v25, %s3507_s24 }
 0x9f5   :  { %1716 = vperm.xlu0 %3333, %v4130_v43  }
 0x9f6   :  { %1802 = vperm.xlu1 %3334, %v4130_v43  }
 0x9f9   :  { %3336 = vset.pattern.permute.xlu0 %v3553_v38 }
 0x9fa   :  { %1680 = vperm.xlu0 %3336, %v4130_v43   ;;  %3335 = vset.pattern.permute.xlu1 %v3554_v35 }
 0x9fb   :  { %1827 = vperm.xlu1 %3335, %v4130_v43   ;;  %v1689_v8 = vpop.permute.xlu1 %1688 }
 0x9fc   :  { %v1690_v27 = vrot.slane %v1689_v8, 4 }
 0x9fe   :  { %3339 = vset.pattern.permute.xlu0 %v3555_v39  ;;  %v1692_v16 = vmul.f32 %v1690_v27, %v4216_v41 }
 0x9ff   :  { %1769 = vperm.xlu0 %3339, %v4130_v43   ;;  %3337 = vset.pattern.permute.xlu1 %v3556_v40 }
 0xa00   :  { %1749 = vperm.xlu1 %3337, %v4130_v43  }
 0xa03   :  { %3340 = vset.pattern.permute.xlu0 %v3558_v31 }
 0xa04   :  { %3338 = vset.pattern.permute.xlu1 %v3557_v29 }
 0xa05   :  { %1794 = vperm.xlu1 %3338, %v4130_v43  }
 0xa09   :  { %1698 = vrot.lane.b32.xlu1 %v1692_v16, %s3496_s1 }
 0xa0a   :  { %3343 = vset.pattern.permute.xlu1 %v3488_v4 }
 0xa5f   :  { %v1665_v48 = vpop.permute.xlu0 %1664 }
 0xa63   :  { %v1669_v44 = vpop.permute.xlu0 %1668 }
 0xa64   :  { %v1667_v49 = vpop.permute.xlu1 %1666 }
 0xa65   :  { %v1670_v9 = vsel %vm494_vm15, %v1665_v48, %v1667_v49  ;;  %v1671_v12 = vsel %vm494_vm15, %v1667_v49, %v1669_v44 }
 0xa66   :  { %1674 = vst [vmem:[#allocation2 + $0x68] sm:$0xf0] %v1670_v9  ;;  %1675 = vst [vmem:[#allocation2 + $0x70] sm:$0xf0] %v1671_v12 }
 0xa6d   :  { %v4224_v57 = vld [vmem:[#allocation2 + $0x68] sm:$0xf0]  ;;  %v4227_v58 = vld [vmem:[#allocation2 + $0x70] sm:$0xf0] }
 0xa6e   :  { %v1693_v59 = vmul.f32 %v1690_v27, %v4224_v57  ;;  %v1694_v22 = vmul.f32 %v1690_v27, %v4227_v58  ;;  %v1712_v18 = vld [vmem:[#allocation2 + $0x68] sm:$0xf0]  ;;  %v1713_v19 = vld [vmem:[#allocation2 + $0x70] sm:$0xf0] }
 0xa74   :  { %v1717_v37 = vpop.permute.xlu0 %1716 }
 0xa75   :  { %v1718_v42 = vrot.slane %v1717_v37, 4  ;;  %v1803_v47 = vpop.permute.xlu1 %1802 }
 0xa76   :  { %v1804_v13 = vrot.slane %v1803_v47, 4 }
 0xa77   :  { %v1722_v15 = vmul.f32 %v1718_v42, %v1714_v52  ;;  %v1720_v0 = vmul.f32 %v1718_v42, %v1712_v18  ;;  %v1721_v63 = vmul.f32 %v1718_v42, %v1713_v19 }
 0xa78   :  { %v1808_v62 = vmul.f32 %v1804_v13, %v1714_v52  ;;  %v1807_v14 = vmul.f32 %v1804_v13, %v1713_v19  ;;  %v1806_v24 = vmul.f32 %v1804_v13, %v1712_v18 }
 0xa79   :  { %1730 = vrot.lane.b32.xlu1 %v1722_v15, %s3497_s2  ;;  %v1681_v55 = vpop.permute.xlu0 %1680 }
 0xa7a   :  { %1816 = vrot.lane.b32.xlu0 %v1808_v62, %s3496_s1  ;;  %v1828_v10 = vpop.permute.xlu1 %1827  ;;  %v1682_v35 = vrot.slane %v1681_v55, 4 }
 0xa7b   :  { %v1829_v23 = vrot.slane %v1828_v10, 4 }
 0xa7c   :  { %v1684_v29 = vmul.f32 %v1682_v35, %v4216_v41  ;;  %v1686_v16 = vmul.f32 %v1682_v35, %v4227_v58 }
 0xa7d   :  { %1700 = vrot.lane.b32.xlu1 %v1693_v59, %s3496_s1  ;;  %v1831_v7 = vmul.f32 %v1829_v23, %v1712_v18  ;;  %v1832_v28 = vmul.f32 %v1829_v23, %v1713_v19  ;;  %v1833_v33 = vmul.f32 %v1829_v23, %v1714_v52 }
 0xa7e   :  { %1702 = vrot.lane.b32.xlu0 %v1694_v22, %s3496_s1  ;;  %v1770_v3 = vpop.permute.xlu0 %1769 }
 0xa7f   :  { %v1750_v32 = vpop.permute.xlu1 %1749  ;;  %v1771_v26 = vrot.slane %v1770_v3, 4 }
 0xa80   :  { %v1751_v34 = vrot.slane %v1750_v32, 4 }
 0xa81   :  { %1726 = vrot.lane.b32.xlu1 %v1720_v0, %s3497_s2  ;;  %v1775_v21 = vmul.f32 %v1771_v26, %v1714_v52  ;;  %v1773_v36 = vmul.f32 %v1771_v26, %v1712_v18 }
 0xa82   :  { %1728 = vrot.lane.b32.xlu0 %v1721_v63, %s3497_s2  ;;  %v1753_v20 = vmul.f32 %v1751_v34, %v4224_v57  ;;  %v1754_v30 = vmul.f32 %v1751_v34, %v4227_v58 }
 0xa85   :  { %1814 = vrot.lane.b32.xlu1 %v1807_v14, %s3496_s1 }
 0xa86   :  { %1812 = vrot.lane.b32.xlu0 %v1806_v24, %s3496_s1 }
 0xa89   :  { %1837 = vrot.lane.b32.xlu1 %v1831_v7, %s3497_s2 }
 0xa8a   :  { %1839 = vrot.lane.b32.xlu0 %v1832_v28, %s3497_s2 }
 0xa8d   :  { %1841 = vrot.lane.b32.xlu1 %v1833_v33, %s3497_s2 }
 0xa8e   :  { %1741 = vperm.xlu0 %3340, %v4130_v43   ;;  %v1774_v43 = vmul.f32 %v1771_v26, %v1713_v19 }
 0xa91   :  { %1757 = vrot.lane.b32.xlu1 %v1753_v20, %s3496_s1 }
 0xa92   :  { %3341 = vset.pattern.permute.xlu0 %v3489_v6  ;;  %v1795_v6 = vpop.permute.xlu1 %1794 }
 0xa93   :  { %1892 = vperm.xlu0 %3341, %v3479_v61   ;;  %v1796_v37 = vrot.slane %v1795_v6, 4 }
 0xa95   :  { %1759 = vrot.lane.b32.xlu1 %v1754_v30, %s3496_s1  ;;  %v1798_v19 = vmul.f32 %v1796_v37, %v4216_v41  ;;  %v1799_v0 = vmul.f32 %v1796_v37, %v4224_v57 }
 0xa96   :  { %v1699_v5 = vpop.permute.xlu1 %1698 }
 0xa97   :  { %1783 = vrot.lane.b32.xlu0 %v1775_v21, %s3497_s2 }
 0xa98   :  { %3342 = vset.pattern.permute.xlu0 %v3488_v4  ;;  %v1685_v4 = vmul.f32 %v1682_v35, %v4224_v57 }
 0xa99   :  { %1779 = vrot.lane.b32.xlu1 %v1773_v36, %s3497_s2 }
 0xa9d   :  { %1781 = vrot.lane.b32.xlu1 %v1774_v43, %s3497_s2 }
 0xaeb   :  { %v1731_v25 = vpop.permute.xlu1 %1730 }
 0xaec   :  { %v1817_v38 = vpop.permute.xlu0 %1816 }
 0xaef   :  { %v1701_v39 = vpop.permute.xlu1 %1700 }
 0xaf0   :  { %v1703_v40 = vpop.permute.xlu0 %1702  ;;  %v1704_v8 = vsel %vm271_vm9, %v1699_v5, %v1701_v39 }
 0xaf1   :  { %v1705_v27 = vsel %vm271_vm9, %v1701_v39, %v1703_v40  ;;  %v1709_v48 = vadd.f32 %v1704_v8, %v1684_v29  ;;  %v1711_v49 = vadd.f32 %v1703_v40, %v1686_v16 }
 0xaf2   :  { %v1710_v44 = vadd.f32 %v1705_v27, %v1685_v4 }
 0xaf3   :  { %v1727_v31 = vpop.permute.xlu1 %1726 }
 0xaf4   :  { %v1729_v9 = vpop.permute.xlu0 %1728  ;;  %v1737_v15 = vadd.f32 %v1727_v31, %v1709_v48 }
 0xaf5   :  { %v1732_v12 = vsel %vm299_vm10, %v1727_v31, %v1729_v9  ;;  %v1733_v52 = vsel %vm299_vm10, %v1729_v9, %v1731_v25 }
 0xaf6   :  { %v1738_v42 = vadd.f32 %v1732_v12, %v1710_v44  ;;  %v1739_v47 = vadd.f32 %v1733_v52, %v1711_v49  ;;  %v1851_v10 = vmul.f32 %v3734_v46, %v1737_v15 }
 0xaf7   :  { %v1815_v13 = vpop.permute.xlu1 %1814 }
 0xaf8   :  { %v1852_v62 = vmul.f32 %v1738_v42, %v3750_v60  ;;  %v1853_v59 = vmul.f32 %v3732_v45, %v1739_v47  ;;  %v1813_v22 = vpop.permute.xlu0 %1812  ;;  %v1819_v14 = vsel %vm271_vm9, %v1815_v13, %v1817_v38  ;;  %v1800_v45 = vmul.f32 %v1796_v37, %v4227_v58 }
 0xaf9   :  { %v1818_v18 = vsel %vm271_vm9, %v1813_v22, %v1815_v13  ;;  %v1823_v23 = vadd.f32 %v1813_v22, %v1798_v19 }
 0xafa   :  { %1861 = vrot.lane.b32.xlu1 %v1853_v59, %s3503_s22  ;;  %1859 = vrot.lane.b32.xlu0 %v1852_v62, %s3503_s22  ;;  %v1824_v60 = vadd.f32 %v1818_v18, %v1799_v0  ;;  %v1825_v28 = vadd.f32 %v1819_v14, %v1800_v45  ;;  %v1935_v14 = vld [vmem:[%s5089_s6] sm:$0xff]  ;;  %v1941_v45 = vld [vmem:[%s5089_s6 + $0x30] sm:$0xff] }
 0xafb   :  { %v1838_v63 = vpop.permute.xlu1 %1837 }
 0xafc   :  { %v1840_v24 = vpop.permute.xlu0 %1839  ;;  %v1848_v33 = vadd.f32 %v1838_v63, %v1823_v23  ;;  %v1936_v23 = vld [vmem:[%s5089_s6 + $0x8] sm:$0xff] }
 0xafd   :  { %v1843_v7 = vsel %vm299_vm10, %v1838_v63, %v1840_v24 }
 0xafe   :  { %v1849_v55 = vadd.f32 %v1843_v7, %v1824_v60  ;;  %1857 = vrot.lane.b32.xlu1 %v1851_v10, %s3503_s22  ;;  %v1871_v26 = vmul.f32 %v3738_v51, %v1848_v33  ;;  %v1940_v60 = vld [vmem:[%s5089_s6 + $0x28] sm:$0xff]  ;;  %v1938_v7 = vld [vmem:[%s5089_s6 + $0x18] sm:$0xff] }
 0xaff   :  { %v1842_v32 = vpop.permute.xlu1 %1841 }
 0xb00   :  { %v1872_v34 = vmul.f32 %v1849_v55, %v3759_v1  ;;  %v1844_v3 = vsel %vm299_vm10, %v1840_v24, %v1842_v32  ;;  %v1937_v24 = vld [vmem:[%s5089_s6 + $0x10] sm:$0xff]  ;;  %v1942_v55 = vld [vmem:[%s5089_s6 + $0x38] sm:$0xff] }
 0xb01   :  { %v1850_v46 = vadd.f32 %v1844_v3, %v1825_v28  ;;  %v1939_v28 = vld [vmem:[%s5089_s6 + $0x20] sm:$0xff] }
 0xb02   :  { %1879 = vrot.lane.b32.xlu0 %v1872_v34, %s3504_s23 }
 0xb03   :  { %v1873_v20 = vmul.f32 %v3743_v56, %v1850_v46  ;;  %v1758_v21 = vpop.permute.xlu1 %1757 }
 0xb05   :  { %1881 = vrot.lane.b32.xlu1 %v1873_v20, %s3504_s23  ;;  %v1924_v20 = vld [vmem:[#allocation2 + $0x70] sm:$0xff] }
 0xb06   :  { %1877 = vrot.lane.b32.xlu0 %v1871_v26, %s3504_s23  ;;  %v2006_v26 = vrot.slane %v1924_v20, 4 }
 0xb07   :  { %v1760_v30 = vpop.permute.xlu1 %1759 }
 0xb08   :  { %v1761_v51 = vsel %vm271_vm9, %v1758_v21, %v1760_v30 }
 0xb0b   :  { %v1780_v36 = vpop.permute.xlu1 %1779 }
 0xb0d   :  { %v1742_v61 = vpop.permute.xlu0 %1741 }
 0xb0e   :  { %v1743_v1 = vrot.slane %v1742_v61, 4 }
 0xb0f   :  { %v1782_v6 = vpop.permute.xlu1 %1781 }
 0xb10   :  { %v1746_v38 = vmul.f32 %v1743_v1, %v4224_v57  ;;  %v1745_v35 = vmul.f32 %v1743_v1, %v4216_v41  ;;  %v1747_v56 = vmul.f32 %v1743_v1, %v4227_v58  ;;  %v1785_v31 = vsel %vm299_vm10, %v1780_v36, %v1782_v6 }
 0xb12   :  { %v1893_v43 = vpop.permute.xlu0 %1892  ;;  %v1766_v40 = vadd.f32 %v1761_v51, %v1746_v38  ;;  %v1767_v29 = vadd.f32 %v1760_v30, %v1747_v56  ;;  %v1765_v4 = vadd.f32 %v1758_v21, %v1745_v35  ;;  %v1923_v30 = vld [vmem:[#allocation2 + $0x68] sm:$0xff]  ;;  %v1931_v51 = vld [vmem:[%s5090_s5 + $0x20] sm:$0xff] }
 0xb13   :  { %v1894_v52 = vrot.slane %v1893_v43, 4 }
 0xb14   :  { %v1791_v41 = vadd.f32 %v1785_v31, %v1766_v40  ;;  %v1790_v58 = vadd.f32 %v1780_v36, %v1765_v4  ;;  %v2007_v36 = vsel %vm1993_vm0, %v2002_v17, %v2006_v26  ;;  %v1928_v17 = vld [vmem:[%s5090_s5 + $0x8] sm:$0xff]  ;;  %v1933_v40 = vld [vmem:[%s5090_s5 + $0x30] sm:$0xff]  ;;  %v2623_v4 = vld [vmem:[#allocation2 + $0xb8] sm:$0xff] }
 0xb15   :  { %v2626_v31 = vld [vmem:[#allocation2 + $0xd8] sm:$0xff] }
 0xb16   :  { %v1784_v5 = vpop.permute.xlu0 %1783 }
 0xb17   :  { %v1786_v8 = vsel %vm299_vm10, %v1782_v6, %v1784_v5  ;;  %v2004_v6 = vrot.slane %v1923_v30, 4 }
 0xb18   :  { %v1792_v48 = vadd.f32 %v1786_v8, %v1767_v29  ;;  %v1934_v8 = vld [vmem:[%s5090_s5 + $0x38] sm:$0xff] }
 0xb19   :  { %v2005_v38 = vsel %vm1993_vm0, %v2000_v54, %v2004_v6  ;;  %v1930_v54 = vld [vmem:[%s5090_s5 + $0x18] sm:$0xff] }
 0xb1a   :  { %v2614_v29 = vld [vmem:[#allocation2 + $0x58] sm:$0xff] }
 0xb6c   :  { %v1862_v25 = vpop.permute.xlu1 %1861  ;;  %v1860_v39 = vpop.permute.xlu0 %1859 }
 0xb6d   :  { %v1864_v16 = vsel %vm436_vm13, %v1860_v39, %v1862_v25 }
 0xb6e   :  { %v1870_v49 = vadd.f32 %v1864_v16, %v1792_v48  ;;  %v2617_v16 = vld [vmem:[#allocation2 + $0x78] sm:$0xff] }
 0xb6f   :  { %v2620_v48 = vld [vmem:[#allocation2 + $0x98] sm:$0xff] }
 0xb70   :  { %v1858_v27 = vpop.permute.xlu1 %1857 }
 0xb71   :  { %v1863_v57 = vsel %vm436_vm13, %v1858_v27, %v1860_v39  ;;  %v1868_v37 = vadd.f32 %v1858_v27, %v1790_v58  ;;  %v1932_v39 = vld [vmem:[%s5090_s5 + $0x28] sm:$0xff]  ;;  %v2608_v27 = vld [vmem:[#allocation2 + $0x18] sm:$0xff] }
 0xb72   :  { %v1869_v9 = vadd.f32 %v1863_v57, %v1791_v41 }
 0xb74   :  { %v1880_v44 = vpop.permute.xlu0 %1879 }
 0xb77   :  { %v1882_v12 = vpop.permute.xlu1 %1881 }
 0xb78   :  { %v1884_v42 = vsel %vm468_vm14, %v1880_v44, %v1882_v12  ;;  %v1890_v47 = vadd.f32 %v1882_v12, %v1870_v49  ;;  %v1878_v13 = vpop.permute.xlu0 %1877 }
 0xb79   :  { %v1889_v15 = vadd.f32 %v1884_v42, %v1869_v9  ;;  %v1883_v62 = vsel %vm468_vm14, %v1878_v13, %v1880_v44 }
 0xb7a   :  { %v1898_v59 = vadd.f32 %v1894_v52, %v1890_v47  ;;  %v1888_v22 = vadd.f32 %v1883_v62, %v1868_v37 }
 0xb7b   :  { %v1897_v18 = vadd.f32 %v1894_v52, %v1889_v15 }
 0xb7c   :  { %v1904_v19 = vrot.slane %v1898_v59, 4  ;;  %v1896_v63 = vadd.f32 %v1894_v52, %v1888_v22 }
 0xb7d   :  { %v1903_v0 = vrot.slane %v1897_v18, 4 }
 0xb7e   :  { %1909 = vrot.lane.b32.xlu0 %v1904_v19, %s3507_s24  ;;  %v1902_v10 = vrot.slane %v1896_v63, 4 }
 0xb7f   :  { %1907 = vrot.lane.b32.xlu1 %v1903_v0, %s3507_s24 }
 0xb82   :  { %1945 = vperm.xlu0 %3342, %v1935_v14  }
 0xb83   :  { %1905 = vrot.lane.b32.xlu1 %v1902_v10, %s3507_s24 }
 0xb86   :  { %1970 = vperm.xlu0 %3342, %v1940_v60  }
 0xb87   :  { %1950 = vperm.xlu1 %3343, %v1936_v23  }
 0xb8a   :  { %1975 = vperm.xlu0 %3342, %v1941_v45  }
 0xb8b   :  { %1955 = vperm.xlu1 %3343, %v1937_v24  }
 0xb8e   :  { %1980 = vperm.xlu0 %3342, %v1942_v55  }
 0xb8f   :  { %1960 = vperm.xlu1 %3343, %v1938_v7  }
 0xb92   :  { %2658 = vrot.lane.b32.xlu0 %v2608_v27, %s3504_s23 }
 0xb93   :  { %1965 = vperm.xlu1 %3343, %v1939_v28  }
 0xb96   :  { %2670 = vrot.lane.b32.xlu0 %v2614_v29, %s3504_s23 }
 0xb9a   :  { %2688 = vrot.lane.b32.xlu0 %v2623_v4, %s3504_s23 }
 0xb9e   :  { %2676 = vrot.lane.b32.xlu0 %v2617_v16, %s3504_s23 }
 0xba2   :  { %2694 = vrot.lane.b32.xlu0 %v2626_v31, %s3504_s23 }
 0xba6   :  { %2682 = vrot.lane.b32.xlu0 %v2620_v48, %s3504_s23 }
 0xbf0   :  { %v1910_v32 = vpop.permute.xlu0 %1909 }
 0xbf1   :  { %v1908_v33 = vpop.permute.xlu1 %1907 }
 0xbf2   :  { %v1912_v34 = vsel %vm494_vm15, %v1908_v33, %v1910_v32 }
 0xbf3   :  { %1916 = vst [vmem:[#allocation2 + $0x90] sm:$0xf] %v1912_v34 }
 0xbf5   :  { %v1906_v3 = vpop.permute.xlu1 %1905 }
 0xbf6   :  { %v1911_v46 = vsel %vm494_vm15, %v1906_v3, %v1908_v33 }
 0xbf7   :  { %1915 = vst [vmem:[#allocation2 + $0x88] sm:$0xf] %v1911_v46 }
 0xbfa   :  { %v1926_v21 = vld [vmem:[#allocation2 + $0x90] sm:$0xf] }
 0xbfb   :  { %v2010_v61 = vrot.slane %v1926_v21, 4 }
 0xbfd   :  { %v2011_v43 = vsel %vm1993_vm0, %v2006_v26, %v2010_v61 }
 0xbfe   :  { %v3137_v1 = vpack.c.bf16 %v2011_v43, %v2007_v36  ;;  %v1925_v5 = vld [vmem:[#allocation2 + $0x88] sm:$0xf] }
 0xbff   :  { %v2008_v25 = vrot.slane %v1925_v5, 4 }
 0xc00   :  { %3138 = vmatprep.subr.bf16.mxu1 %v3137_v1 }
 0xc01   :  { %v2009_v35 = vsel %vm1993_vm0, %v2004_v6, %v2008_v25  ;;  %v1946_v57 = vpop.permute.xlu0 %1945 }
 0xc02   :  { %v3139_v56 = vpack.c.bf16 %v2009_v35, %v2005_v38 }
 0xc04   :  { %3140 = vmatpush1.bf16.msra.mxu1 %v3139_v56 }
 0xc06   :  { %v1951_v12 = vpop.permute.xlu1 %1950 }
 0xc07   :  { %3069 = vmatmul.mubr.msk.f32.vlgmr.msra.gmra.mrb[0].mxu1 %vm2020_vm1, %v1927_v50 }
 0xc08   :  { %2115 = vmatprep.mubr.f32.mxu1 %v3487_v2 }
 0xc0a   :  { %v1956_v60 = vpop.permute.xlu1 %1955 }
 0xc0b   :  { %3070 = vmatmul.mubr.msk.f32.gmra.mrb[2].mxu1 %vm2020_vm1, %v1928_v17 }
 0xc0c   :  { %2121 = vmatprep.mubr.f32.mxu1 %v3487_v2 }
 0xc0f   :  { %3071 = vmatmul.mubr.msk.f32.gmra.mrb[4].mxu1 %vm2020_vm1, %v1929_v53 }
 0xc10   :  { %2127 = vmatprep.mubr.f32.mxu1 %v3487_v2 }
 0xc13   :  { %3072 = vmatmul.mubr.msk.f32.gmra.mrb[6].mxu1 %vm2020_vm1, %v1930_v54  ;;  %v1961_v54 = vpop.permute.xlu1 %1960 }
 0xc14   :  { %2133 = vmatprep.mubr.f32.mxu1 %v3487_v2 }
 0xc17   :  { %3073 = vmatmul.mubr.msk.f32.gmra.mrb[8].mxu1 %vm2020_vm1, %v1931_v51 }
 0xc18   :  { %2139 = vmatprep.mubr.f32.mxu1 %v3487_v2 }
 0xc1b   :  { %3074 = vmatmul.mubr.msk.f32.gmra.mrb[10].mxu1 %vm2020_vm1, %v1932_v39 }
 0xc1c   :  { %2145 = vmatprep.mubr.f32.mxu1 %v3487_v2 }
 0xc1f   :  { %3075 = vmatmul.mubr.msk.f32.gmra.mrb[12].mxu1 %vm2020_vm1, %v1933_v40 }
 0xc20   :  { %2151 = vmatprep.mubr.f32.mxu1 %v3487_v2  ;;  %v2611_v2 = vld [vmem:[#allocation2 + $0x38] sm:$0xff] }
 0xc21   :  { %2664 = vrot.lane.b32.xlu1 %v2611_v2, %s3504_s23 }
 0xc23   :  { %3076 = vmatmul.mubr.msk.f32.gmra.mrb[14].mxu1 %vm2020_vm1, %v1934_v8 }
 0xcda   :  { %v2111_v44 = vpop.f32.mrb[0].mxu1 }
 0xcdb   :  { %v2112_v41 = vadd.f32 %v2111_v44, %v1946_v57  ;;  %v2113_v49 = vpop.f32.mrb[1].mxu1 }
 0xcdc   :  { %v2114_v58 = vadd.f32 %v2113_v49, %v1946_v57 }
 0xcdd   :  { %v2174_v9 = vmul.f32 0.70710677, %v2112_v41  ;;  %v4378_v55 = vmul.f32 0.5, %v2112_v41 }
 0xcde   :  { %v2175_v52 = vmul.f32 0.70710677, %v2114_v58  ;;  %v2117_v37 = vpop.f32.mrb[2].mxu1  ;;  %v4383_v3 = vmul.f32 0.5, %v2114_v58 }
 0xcdf   :  { %v2222_v42 = vand.u32 2147483647, %v2174_v9  ;;  %v2118_v47 = vadd.f32 %v2117_v37, %v1951_v12  ;;  %v2119_v13 = vpop.f32.mrb[3].mxu1  ;;  %vm2190_vm2 = vcmp.ge.f32.partialorder %v2174_v9, 0.0 }
 0xce0   :  { %v2223_v15 = vand.u32 2147483647, %v2175_v52  ;;  %v2120_v62 = vadd.f32 %v2119_v13, %v1951_v12  ;;  %vm2191_vm3 = vcmp.ge.f32.partialorder %v2175_v52, 0.0  ;;  %v4396_v1 = vsel %vm2190_vm2, 1.0, %v3499_v11 }
 0xce1   :  { %v2238_v59 = vmul.f32 0.3275911, %v2222_v42  ;;  %v4373_v18 = vmul.f32 0.70710677, %v2118_v47  ;;  %v2430_v24 = vsub.f32 0.0, %v2222_v42  ;;  %v4402_v56 = vsel %vm2191_vm3, 1.0, %v3499_v11 }
 0xce2   :  { %v2239_v22 = vmul.f32 0.3275911, %v2223_v15  ;;  %v4375_v0 = vmul.f32 0.70710677, %v2120_v62  ;;  %v2123_v63 = vpop.f32.mrb[4].mxu1  ;;  %v2431_v28 = vsub.f32 0.0, %v2223_v15 }
 0xce3   :  { %v2254_v19 = vadd.f32 1.0, %v2238_v59  ;;  %v2224_v14 = vand.u32 2147483647, %v4373_v18  ;;  %v2125_v23 = vpop.f32.mrb[5].mxu1  ;;  %v4381_v33 = vadd.f32 %v2123_v63, %v1956_v60  ;;  %v2446_v61 = vmul.f32 %v2430_v24, %v2222_v42 }
 0xce4   :  { %v2255_v10 = vadd.f32 1.0, %v2239_v22  ;;  %v2225_v32 = vand.u32 2147483647, %v4375_v0  ;;  %v4385_v20 = vadd.f32 %v2125_v23, %v1956_v60  ;;  %v2447_v5 = vmul.f32 %v2431_v28, %v2223_v15 }
 0xce5   :  { %3412 = vrcp.f32 %v2254_v19  ;;  %v2240_v45 = vmul.f32 0.3275911, %v2224_v14  ;;  %v2432_v26 = vsub.f32 0.0, %v2224_v14  ;;  %v4388_v30 = vmul.f32 0.70710677, %v4381_v33 }
 0xce6   :  { %3414 = vrcp.f32 %v2255_v10  ;;  %v2129_v7 = vpop.f32.mrb[6].mxu1  ;;  %v2241_v21 = vmul.f32 0.3275911, %v2225_v32  ;;  %v2433_v36 = vsub.f32 0.0, %v2225_v32  ;;  %v4391_v43 = vmul.f32 0.70710677, %v4385_v20 }
 0xce7   :  { %v2131_v34 = vpop.f32.mrb[7].mxu1  ;;  %v2256_v46 = vadd.f32 1.0, %v2240_v45  ;;  %v2226_v38 = vand.u32 2147483647, %v4388_v30  ;;  %v4404_v50 = vmul.f32 0.5, %v2118_v47  ;;  %v4406_v17 = vmul.f32 0.5, %v2120_v62 }
 0xce8   :  { %v2257_v25 = vadd.f32 1.0, %v2241_v21  ;;  %v2227_v53 = vand.u32 2147483647, %v4391_v43  ;;  %v2448_v51 = vmul.f32 %v2432_v26, %v2224_v14  ;;  %v2462_v8 = vmul.f32 1.442695, %v2446_v61 }
 0xce9   :  { %3416 = vrcp.f32 %v2256_v46  ;;  %v2242_v39 = vmul.f32 0.3275911, %v2226_v38  ;;  %v2434_v40 = vsub.f32 0.0, %v2226_v38  ;;  %v2449_v27 = vmul.f32 %v2433_v36, %v2225_v32 }
 0xcea   :  { %v4393_v6 = vpop.f32.mrb[8].mxu1  ;;  %3418 = vrcp.f32 %v2257_v25  ;;  %v2243_v29 = vmul.f32 0.3275911, %v2227_v53  ;;  %v4409_v4 = vadd.f32 %v2129_v7, %v1961_v54  ;;  %v2464_v2 = vmul.f32 1.442695, %v2447_v5 }
 0xceb   :  { %v4399_v35 = vpop.f32.mrb[9].mxu1  ;;  %vm2192_vm4 = vcmp.ge.f32.partialorder %v4373_v18, 0.0  ;;  %v2258_v48 = vadd.f32 1.0, %v2242_v39  ;;  %v2435_v57 = vsub.f32 0.0, %v2227_v53  ;;  %v2450_v58 = vmul.f32 %v2434_v40, %v2226_v38 }
 0xcec   :  { %v2259_v9 = vadd.f32 1.0, %v2243_v29  ;;  %v4421_v12 = vadd.f32 %v2131_v34, %v1961_v54  ;;  %v2466_v37 = vmul.f32 1.442695, %v2448_v51  ;;  %v4425_v42 = vmul.f32 0.70710677, %v4409_v4 }
 0xced   :  { %3420 = vrcp.f32 %v2258_v48  ;;  %v4428_v13 = vsel %vm2192_vm4, 1.0, %v3499_v11  ;;  %v2468_v15 = vmul.f32 1.442695, %v2449_v27  ;;  %vm2193_vm5 = vcmp.ge.f32.partialorder %v4375_v0, 0.0 }
 0xcee   :  { %v4411_v16 = vpop.f32.mrb[10].mxu1  ;;  %3422 = vrcp.f32 %v2259_v9  ;;  %v2228_v22 = vand.u32 2147483647, %v4425_v42  ;;  %v2470_v10 = vmul.f32 1.442695, %v2450_v58  ;;  %v2451_v14 = vmul.f32 %v2435_v57, %v2227_v53 }
 0xcef   :  { %v4413_v31 = vpop.eup %3412  ;;  %v4416_v44 = vpop.f32.mrb[11].mxu1  ;;  %3424 = vpow2.f32 %v2462_v8  ;;  %v4440_v23 = vmul.f32 0.70710677, %v4421_v12  ;;  %v4445_v28 = vsel %vm2193_vm5, 1.0, %v3499_v11  ;;  %vm2194_vm6 = vcmp.ge.f32.partialorder %v4388_v30, 0.0 }
 0xcf0   :  { %v4418_v41 = vpop.eup %3414  ;;  %v2286_v49 = vmul.f32 1.0614054, %v4413_v31  ;;  %v2244_v45 = vmul.f32 0.3275911, %v2228_v22  ;;  %v2436_v7 = vsub.f32 0.0, %v2228_v22  ;;  %3426 = vpow2.f32 %v2464_v2 }
 0xcf1   :  { %v2287_v52 = vmul.f32 1.0614054, %v4418_v41  ;;  %v2229_v32 = vand.u32 2147483647, %v4440_v23  ;;  %3428 = vpow2.f32 %v2466_v37  ;;  %v2472_v38 = vmul.f32 1.442695, %v2451_v14 }
 0xcf2   :  { %v2302_v47 = vadd.f32 -1.4531521, %v2286_v49  ;;  %v4430_v62 = vpop.f32.mrb[12].mxu1  ;;  %v2260_v61 = vadd.f32 1.0, %v2244_v45  ;;  %v2452_v39 = vmul.f32 %v2436_v7, %v2228_v22  ;;  %v1966_v45 = vpop.permute.xlu1 %1965  ;;  %vm2195_vm7 = vcmp.ge.f32.partialorder %v4391_v43, 0.0 }
 0xcf3   :  { %v2303_v59 = vadd.f32 -1.4531521, %v2287_v52  ;;  %v4434_v18 = vpop.f32.mrb[13].mxu1  ;;  %v4436_v19 = vpop.eup %3416  ;;  %v2245_v53 = vmul.f32 0.3275911, %v2229_v32  ;;  %v2437_v57 = vsub.f32 0.0, %v2229_v32 }
 0xcf4   :  { %v2318_v63 = vmul.f32 %v4413_v31, %v2302_v47  ;;  %v2288_v24 = vmul.f32 1.0614054, %v4436_v19  ;;  %v4450_v46 = vpop.eup %3418  ;;  %3430 = vrcp.f32 %v2260_v61  ;;  %v2474_v22 = vmul.f32 1.442695, %v2452_v39 }
 0xcf5   :  { %v2319_v60 = vmul.f32 %v4418_v41, %v2303_v59  ;;  %v2289_v25 = vmul.f32 1.0614054, %v4450_v46  ;;  %3432 = vpow2.f32 %v2468_v15  ;;  %v2261_v27 = vadd.f32 1.0, %v2245_v53 }
 0xcf6   :  { %v2334_v0 = vadd.f32 1.4214138, %v2318_v63  ;;  %v4448_v34 = vpop.f32.mrb[14].mxu1  ;;  %v2304_v21 = vadd.f32 -1.4531521, %v2288_v24  ;;  %3434 = vpow2.f32 %v2470_v10  ;;  %v2211_v30 = vsel %vm2195_vm7, 1.0, %v3499_v11 }
 0xcf7   :  { %v2335_v26 = vadd.f32 1.4214138, %v2319_v60  ;;  %v4452_v36 = vpop.f32.mrb[15].mxu1  ;;  %v2305_v8 = vadd.f32 -1.4531521, %v2289_v25  ;;  %v4458_v29 = vpop.eup %3420  ;;  %3436 = vrcp.f32 %v2261_v27  ;;  %v4472_v25 = vadd.f32 %v4393_v6, %v1966_v45 }
 0xcf8   :  { %v2350_v5 = vmul.f32 %v4413_v31, %v2334_v0  ;;  %v2320_v51 = vmul.f32 %v4436_v19, %v2304_v21  ;;  %v4460_v49 = vpop.eup %3422  ;;  %v2290_v52 = vmul.f32 1.0614054, %v4458_v29  ;;  %3438 = vpow2.f32 %v2472_v38 }
 0xcf9   :  { %v2351_v54 = vmul.f32 %v4418_v41, %v2335_v26  ;;  %v2321_v9 = vmul.f32 %v4450_v46, %v2305_v8  ;;  %v3425_v37 = vpop.eup %3424  ;;  %v2291_v59 = vmul.f32 1.0614054, %v4460_v49  ;;  %v2453_v0 = vmul.f32 %v2437_v57, %v2229_v32 }
 0xcfa   :  { %v2366_v40 = vadd.f32 -0.28449672, %v2350_v5  ;;  %v2336_v48 = vadd.f32 1.4214138, %v2320_v51  ;;  %v2306_v14 = vadd.f32 -1.4531521, %v2290_v52  ;;  %v3427_v26 = vpop.eup %3426  ;;  %3440 = vpow2.f32 %v2474_v22 }
 0xcfb   :  { %v2367_v2 = vadd.f32 -0.28449672, %v2351_v54  ;;  %v2337_v10 = vadd.f32 1.4214138, %v2321_v9  ;;  %v2307_v7 = vadd.f32 -1.4531521, %v2291_v59  ;;  %v3429_v53 = vpop.eup %3428 }
 0xcfc   :  { %v2382_v58 = vmul.f32 %v4413_v31, %v2366_v40  ;;  %v2352_v15 = vmul.f32 %v4436_v19, %v2336_v48  ;;  %v2322_v5 = vmul.f32 %v4458_v29, %v2306_v14  ;;  %v2476_v48 = vmul.f32 1.442695, %v2453_v0 }
 0xcfd   :  { %v2383_v47 = vmul.f32 %v4418_v41, %v2367_v2  ;;  %v2353_v61 = vmul.f32 %v4450_v46, %v2337_v10  ;;  %v2323_v51 = vmul.f32 %v4460_v49, %v2307_v7  ;;  %v4489_v59 = vmul.f32 0.70710677, %v4472_v25 }
 0xcfe   :  { %v2398_v63 = vadd.f32 0.2548296, %v2382_v58  ;;  %v2368_v24 = vadd.f32 -0.28449672, %v2352_v15  ;;  %v2338_v40 = vadd.f32 1.4214138, %v2322_v5  ;;  %v4480_v8 = vpop.eup %3430  ;;  %3442 = vpow2.f32 %v2476_v48 }
 0xcff   :  { %v2399_v60 = vadd.f32 0.2548296, %v2383_v47  ;;  %v2369_v32 = vadd.f32 -0.28449672, %v2353_v61  ;;  %v2339_v6 = vadd.f32 1.4214138, %v2323_v51  ;;  %v3433_v57 = vpop.eup %3432 }
 0xd00   :  { %v2414_v21 = vmul.f32 %v4413_v31, %v2398_v63  ;;  %v2384_v38 = vmul.f32 %v4436_v19, %v2368_v24  ;;  %v4478_v31 = vadd.f32 %v4399_v35, %v1966_v45  ;;  %v2354_v9 = vmul.f32 %v4458_v29, %v2338_v40 }
 0xd01   :  { %v2415_v54 = vmul.f32 %v4418_v41, %v2399_v60  ;;  %v2385_v41 = vmul.f32 %v4450_v46, %v2369_v32  ;;  %v2292_v52 = vmul.f32 1.0614054, %v4480_v8  ;;  %v2355_v15 = vmul.f32 %v4460_v49, %v2339_v6 }
 0xd02   :  { %v2494_v39 = vmul.f32 %v3425_v37, %v2414_v21  ;;  %v2400_v2 = vadd.f32 0.2548296, %v2384_v38  ;;  %v3435_v37 = vpop.eup %3434  ;;  %v2370_v14 = vadd.f32 -0.28449672, %v2354_v9  ;;  %vm2196_vm8 = vcmp.ge.f32.partialorder %v4425_v42, 0.0 }
 0xd03   :  { %v2495_v27 = vmul.f32 %v3427_v26, %v2415_v54  ;;  %v4491_v22 = vpop.eup %3436  ;;  %v2401_v10 = vadd.f32 0.2548296, %v2385_v41  ;;  %v2308_v60 = vadd.f32 -1.4531521, %v2292_v52  ;;  %v2371_v7 = vadd.f32 -0.28449672, %v2355_v15 }
 0xd04   :  { %v2510_v58 = vsub.f32 1.0, %v2494_v39  ;;  %v2416_v35 = vmul.f32 %v4436_v19, %v2400_v2  ;;  %v2293_v19 = vmul.f32 1.0614054, %v4491_v22  ;;  %v3439_v0 = vpop.eup %3438  ;;  %v2386_v61 = vmul.f32 %v4458_v29, %v2370_v14 }
 0xd05   :  { %v2511_v47 = vsub.f32 1.0, %v2495_v27  ;;  %v2417_v21 = vmul.f32 %v4450_v46, %v2401_v10  ;;  %v2324_v5 = vmul.f32 %v4480_v8, %v2308_v60  ;;  %v2387_v38 = vmul.f32 %v4460_v49, %v2371_v7  ;;  %v3441_v40 = vpop.eup %3440 }
 0xd06   :  { %v2526_v63 = vmul.f32 %v2510_v58, %v4396_v1  ;;  %v2496_v45 = vmul.f32 %v3429_v53, %v2416_v35  ;;  %v2309_v51 = vadd.f32 -1.4531521, %v2293_v19  ;;  %v2402_v53 = vadd.f32 0.2548296, %v2386_v61 }
 0xd07   :  { %v2527_v24 = vmul.f32 %v2511_v47, %v4402_v56  ;;  %v2497_v56 = vmul.f32 %v3433_v57, %v2417_v21  ;;  %v2340_v32 = vadd.f32 1.4214138, %v2324_v5  ;;  %v2403_v2 = vadd.f32 0.2548296, %v2387_v38 }
 0xd08   :  { %v2542_v26 = vadd.f32 1.0, %v2526_v63  ;;  %v2512_v54 = vsub.f32 1.0, %v2496_v45  ;;  %v2325_v6 = vmul.f32 %v4491_v22, %v2309_v51  ;;  %v4516_v41 = vand.u32 2147483647, %v4489_v59  ;;  %v1971_v45 = vpop.permute.xlu0 %1970 }
 0xd09   :  { %v2543_v1 = vadd.f32 1.0, %v2527_v24  ;;  %v2513_v58 = vsub.f32 1.0, %v2497_v56  ;;  %v2356_v57 = vmul.f32 %v4480_v8, %v2340_v32  ;;  %v2210_v63 = vsel %vm2194_vm6, 1.0, %v3499_v11  ;;  %v4570_v32 = vld [vmem:[#allocation2 + $0xf8] sm:$0xff] }
 0xd0a   :  { %v4502_v39 = vmul.f32 %v2542_v26, %v4378_v55  ;;  %v2528_v46 = vmul.f32 %v2512_v54, %v4428_v13  ;;  %v2418_v55 = vmul.f32 %v4458_v29, %v2402_v53  ;;  %v2419_v13 = vmul.f32 %v4460_v49, %v2403_v2 }
 0xd0b   :  { %v4505_v27 = vmul.f32 %v2543_v1, %v4383_v3  ;;  %v2341_v9 = vadd.f32 1.4214138, %v2325_v6  ;;  %v2529_v29 = vmul.f32 %v2513_v58, %v4445_v28  ;;  %v2372_v47 = vadd.f32 -0.28449672, %v2356_v57 }
 0xd0c   :  { %2574 = vst [vmem:[%s5091_s8] sm:$0xff] %v4502_v39  ;;  %2654 = vrot.lane.b32.xlu1 %v4502_v39, %s3504_s23  ;;  %v2544_v3 = vadd.f32 1.0, %v2528_v46  ;;  %v2498_v52 = vmul.f32 %v3435_v37, %v2418_v55  ;;  %v2246_v35 = vmul.f32 0.3275911, %v4516_v41  ;;  %v2499_v10 = vmul.f32 %v3439_v0, %v2419_v13  ;;  %v1976_v6 = vpop.permute.xlu0 %1975 }
 0xd0d   :  { %2575 = vst [vmem:[%s5091_s8 + $0x8] sm:$0xff] %v4505_v27  ;;  %v2357_v14 = vmul.f32 %v4491_v22, %v2341_v9  ;;  %v2545_v60 = vadd.f32 1.0, %v2529_v29  ;;  %v2388_v48 = vmul.f32 %v4480_v8, %v2372_v47  ;;  %v4545_v37 = vmul.f32 0.70710677, %v4478_v31 }
 0xd0e   :  { %v4528_v15 = vmul.f32 %v2544_v3, %v4404_v50  ;;  %v2514_v49 = vsub.f32 1.0, %v2498_v52  ;;  %v2262_v24 = vadd.f32 1.0, %v2246_v35  ;;  %v2515_v50 = vsub.f32 1.0, %v2499_v10 }
 0xd0f   :  { %v2373_v28 = vadd.f32 -0.28449672, %v2357_v14  ;;  %v4550_v7 = vmul.f32 %v2545_v60, %v4406_v17  ;;  %v2404_v0 = vadd.f32 0.2548296, %v2388_v48  ;;  %v4554_v43 = vadd.f32 %v4411_v16, %v1971_v45 }
 0xd10   :  { %2656 = vrot.lane.b32.xlu1 %v4505_v27, %s3504_s23  ;;  %2576 = vst [vmem:[%s5091_s8 + $0x10] sm:$0xff] %v4528_v15  ;;  %2660 = vrot.lane.b32.xlu0 %v4528_v15, %s3504_s23  ;;  %v2530_v19 = vmul.f32 %v2514_v49, %v2210_v63  ;;  %3444 = vrcp.f32 %v2262_v24  ;;  %v2531_v26 = vmul.f32 %v2515_v50, %v2211_v30  ;;  %v2162_v61 = vmul.f32 0.5, %v4381_v33 }
 0xd11   :  { %v2389_v21 = vmul.f32 %v4491_v22, %v2373_v28  ;;  %2577 = vst [vmem:[%s5091_s8 + $0x18] sm:$0xff] %v4550_v7  ;;  %v2420_v17 = vmul.f32 %v4480_v8, %v2404_v0  ;;  %v2231_v1 = vand.u32 2147483647, %v4545_v37  ;;  %v2163_v54 = vmul.f32 0.5, %v4385_v20  ;;  %v3443_v8 = vpop.eup %3442 }
 0xd12   :  { %v2546_v5 = vadd.f32 1.0, %v2530_v19  ;;  %v2547_v38 = vadd.f32 1.0, %v2531_v26  ;;  %v2438_v53 = vsub.f32 0.0, %v4516_v41  ;;  %v4576_v2 = vmul.f32 0.70710677, %v4554_v43 }
 0xd13   :  { %v2405_v51 = vadd.f32 0.2548296, %v2389_v21  ;;  %v2500_v56 = vmul.f32 %v3441_v40, %v2420_v17  ;;  %v2247_v33 = vmul.f32 0.3275911, %v2231_v1  ;;  %v4579_v42 = vadd.f32 %v4416_v44, %v1971_v45 }
 0xd14   :  { %2662 = vrot.lane.b32.xlu0 %v4550_v7, %s3504_s23  ;;  %v4567_v16 = vmul.f32 %v2546_v5, %v2162_v61  ;;  %v4572_v46 = vmul.f32 %v2547_v38, %v2163_v54  ;;  %v2212_v40 = vsel %vm2196_vm8, 1.0, %v3499_v11  ;;  %vm2197_vm10 = vcmp.ge.f32.partialorder %v4440_v23, 0.0  ;;  %v1981_v61 = vpop.permute.xlu0 %1980 }
 0xd15   :  { %v2421_v20 = vmul.f32 %v4491_v22, %v2405_v51  ;;  %v2516_v58 = vsub.f32 1.0, %v2500_v56  ;;  %v2263_v55 = vadd.f32 1.0, %v2247_v33  ;;  %v2232_v22 = vand.u32 2147483647, %v4576_v2 }
 0xd16   :  { %2578 = vst [vmem:[%s5091_s8 + $0x20] sm:$0xff] %v4567_v16  ;;  %2666 = vrot.lane.b32.xlu1 %v4567_v16, %s3504_s23  ;;  %2579 = vst [vmem:[%s5091_s8 + $0x28] sm:$0xff] %v4572_v46  ;;  %v4595_v57 = vadd.f32 %v4430_v62, %v1976_v6  ;;  %v2454_v9 = vmul.f32 %v2438_v53, %v4516_v41  ;;  %v4601_v52 = vmul.f32 0.70710677, %v4579_v42  ;;  %v2164_v23 = vmul.f32 0.5, %v4409_v4 }
 0xd17   :  { %v2501_v44 = vmul.f32 %v3443_v8, %v2421_v20  ;;  %v2532_v3 = vmul.f32 %v2516_v58, %v2212_v40  ;;  %3446 = vrcp.f32 %v2263_v55  ;;  %v2248_v29 = vmul.f32 0.3275911, %v2232_v22 }
 0xd18   :  { %2700 = vrot.lane.b32.xlu0 %v4570_v32, %s3504_s23  ;;  %v2213_v62 = vsel %vm2197_vm10, 1.0, %v3499_v11  ;;  %v4611_v41 = vmul.f32 0.70710677, %v4595_v57  ;;  %v2165_v49 = vmul.f32 0.5, %v4421_v12  ;;  %v2439_v48 = vsub.f32 0.0, %v2231_v1 }
 0xd19   :  { %v2517_v13 = vsub.f32 1.0, %v2501_v44  ;;  %v2548_v35 = vadd.f32 1.0, %v2532_v3  ;;  %v2264_v14 = vadd.f32 1.0, %v2248_v29  ;;  %v2233_v4 = vand.u32 2147483647, %v4601_v52 }
 0xd1a   :  { %v4603_v47 = vpop.eup %3444  ;;  %2668 = vrot.lane.b32.xlu1 %v4572_v46, %s3504_s23  ;;  %v2478_v50 = vmul.f32 1.442695, %v2454_v9  ;;  %v2234_v19 = vand.u32 2147483647, %v4611_v41  ;;  %v2455_v0 = vmul.f32 %v2439_v48, %v2231_v1  ;;  %v4628_v21 = vadd.f32 %v4434_v18, %v1976_v6 }
 0xd1b   :  { %v2533_v63 = vmul.f32 %v2517_v13, %v2213_v62  ;;  %v2294_v10 = vmul.f32 1.0614054, %v4603_v47  ;;  %v4613_v60 = vmul.f32 %v2548_v35, %v2164_v23  ;;  %3448 = vrcp.f32 %v2264_v14 }
 0xd1c   :  { %v2249_v28 = vmul.f32 0.3275911, %v2233_v4  ;;  %3450 = vpow2.f32 %v2478_v50  ;;  %v2440_v17 = vsub.f32 0.0, %v2232_v22  ;;  %v2250_v54 = vmul.f32 0.3275911, %v2234_v19 }
 0xd1d   :  { %v2549_v24 = vadd.f32 1.0, %v2533_v63  ;;  %v2310_v30 = vadd.f32 -1.4531521, %v2294_v10  ;;  %2580 = vst [vmem:[%s5091_s8 + $0x30] sm:$0xff] %v4613_v60  ;;  %v4637_v51 = vmul.f32 0.70710677, %v4628_v21  ;;  %v4640_v1 = vadd.f32 %v4448_v34, %v1981_v61 }
 0xd1e   :  { %2672 = vrot.lane.b32.xlu1 %v4613_v60, %s3504_s23  ;;  %v2265_v26 = vadd.f32 1.0, %v2249_v28  ;;  %v2266_v53 = vadd.f32 1.0, %v2250_v54  ;;  %v2480_v33 = vmul.f32 1.442695, %v2455_v0  ;;  %v2456_v40 = vmul.f32 %v2440_v17, %v2232_v22 }
 0xd1f   :  { %v4623_v45 = vmul.f32 %v2549_v24, %v2165_v49  ;;  %v2326_v12 = vmul.f32 %v4603_v47, %v2310_v30  ;;  %v2235_v8 = vand.u32 2147483647, %v4637_v51  ;;  %v2441_v58 = vsub.f32 0.0, %v2233_v4 }
 0xd20   :  { %3452 = vrcp.f32 %v2265_v26  ;;  %v4648_v34 = vmul.f32 0.70710677, %v4640_v1  ;;  %v4655_v9 = vadd.f32 %v4452_v36, %v1981_v61  ;;  %vm2198_vm11 = vcmp.ge.f32.partialorder %v4489_v59, 0.0 }
 0xd21   :  { %2581 = vst [vmem:[%s5091_s8 + $0x38] sm:$0xff] %v4623_v45  ;;  %v2342_v5 = vadd.f32 1.4214138, %v2326_v12  ;;  %v4634_v38 = vpop.eup %3446  ;;  %3454 = vrcp.f32 %v2266_v53  ;;  %v2251_v55 = vmul.f32 0.3275911, %v2235_v8  ;;  %v2442_v22 = vsub.f32 0.0, %v2234_v19 }
 0xd22   :  { %2674 = vrot.lane.b32.xlu1 %v4623_v45, %s3504_s23  ;;  %v2295_v56 = vmul.f32 1.0614054, %v4634_v38  ;;  %3456 = vpow2.f32 %v2480_v33  ;;  %v2482_v63 = vmul.f32 1.442695, %v2456_v40  ;;  %v2457_v14 = vmul.f32 %v2441_v58, %v2233_v4 }
 0xd23   :  { %v2358_v18 = vmul.f32 %v4603_v47, %v2342_v5  ;;  %v2267_v23 = vadd.f32 1.0, %v2251_v55  ;;  %v4660_v49 = vand.u32 2147483647, %v4648_v34  ;;  %v2166_v36 = vmul.f32 0.5, %v4472_v25 }
 0xd24   :  { %v2311_v6 = vadd.f32 -1.4531521, %v2295_v56  ;;  %v4666_v50 = vmul.f32 0.70710677, %v4655_v9  ;;  %v2214_v4 = vsel %vm2198_vm11, 1.0, %v3499_v11  ;;  %v2458_v0 = vmul.f32 %v2442_v22, %v2234_v19 }
 0xd25   :  { %v2374_v20 = vadd.f32 -0.28449672, %v2358_v18  ;;  %v4650_v44 = vpop.eup %3448  ;;  %3458 = vrcp.f32 %v2267_v23  ;;  %v2252_v26 = vmul.f32 0.3275911, %v4660_v49  ;;  %v2484_v17 = vmul.f32 1.442695, %v2457_v14 }
 0xd26   :  { %v2327_v13 = vmul.f32 %v4634_v38, %v2311_v6  ;;  %v2296_v29 = vmul.f32 1.0614054, %v4650_v44  ;;  %v3451_v48 = vpop.eup %3450  ;;  %3460 = vpow2.f32 %v2482_v63  ;;  %v2443_v54 = vsub.f32 0.0, %v2235_v8 }
 0xd27   :  { %v2390_v3 = vmul.f32 %v4603_v47, %v2374_v20  ;;  %v2268_v18 = vadd.f32 1.0, %v2252_v26  ;;  %v4680_v20 = vand.u32 2147483647, %v4666_v50  ;;  %v2486_v40 = vmul.f32 1.442695, %v2458_v0 }
 0xd28   :  { %v2343_v62 = vadd.f32 1.4214138, %v2327_v13  ;;  %v2312_v10 = vadd.f32 -1.4531521, %v2296_v29  ;;  %v2459_v23 = vmul.f32 %v2443_v54, %v2235_v8  ;;  %vm2199_vm12 = vcmp.ge.f32.partialorder %v4545_v37, 0.0 }
 0xd29   :  { %v2406_v35 = vadd.f32 0.2548296, %v2390_v3  ;;  %3462 = vrcp.f32 %v2268_v18  ;;  %v2253_v13 = vmul.f32 0.3275911, %v4680_v20  ;;  %v2215_v54 = vsel %vm2199_vm12, 1.0, %v3499_v11 }
 0xd2a   :  { %v2359_v30 = vmul.f32 %v4634_v38, %v2343_v62  ;;  %v4668_v28 = vpop.eup %3452  ;;  %v2328_v12 = vmul.f32 %v4650_v44, %v2312_v10  ;;  %3464 = vpow2.f32 %v2484_v17  ;;  %vm2200_vm13 = vcmp.ge.f32.partialorder %v4576_v2, 0.0 }
 0xd2b   :  { %v2422_v24 = vmul.f32 %v4603_v47, %v2406_v35  ;;  %v2297_v47 = vmul.f32 1.0614054, %v4668_v28  ;;  %v4676_v56 = vpop.eup %3454  ;;  %v2269_v14 = vadd.f32 1.0, %v2253_v13  ;;  %3466 = vpow2.f32 %v2486_v40 }
 0xd2c   :  { %v2375_v25 = vadd.f32 -0.28449672, %v2359_v30  ;;  %v2344_v5 = vadd.f32 1.4214138, %v2328_v12  ;;  %v2298_v6 = vmul.f32 1.0614054, %v4676_v56  ;;  %v3457_v35 = vpop.eup %3456 }
 0xd2d   :  { %v2502_v61 = vmul.f32 %v3451_v48, %v2422_v24  ;;  %v2313_v33 = vadd.f32 -1.4531521, %v2297_v47  ;;  %3468 = vrcp.f32 %v2269_v14  ;;  %v2216_v2 = vsel %vm2200_vm13, 1.0, %v3499_v11 }
 0xd2e   :  { %v2391_v59 = vmul.f32 %v4634_v38, %v2375_v25  ;;  %v2360_v19 = vmul.f32 %v4650_v44, %v2344_v5  ;;  %v2314_v22 = vadd.f32 -1.4531521, %v2298_v6  ;;  %vm2201_vm15 = vcmp.ge.f32.partialorder %v4601_v52, 0.0 }
 0xd2f   :  { %v2518_v53 = vsub.f32 1.0, %v2502_v61  ;;  %v2329_v3 = vmul.f32 %v4668_v28, %v2313_v33  ;;  %v4687_v48 = vpop.eup %3458  ;;  %v2488_v61 = vmul.f32 1.442695, %v2459_v23  ;;  %vm2202_vm0 = vcmp.ge.f32.partialorder %v4611_v41, 0.0 }
 0xd30   :  { %v2407_v55 = vadd.f32 0.2548296, %v2391_v59  ;;  %v2376_v29 = vadd.f32 -0.28449672, %v2360_v19  ;;  %v2330_v30 = vmul.f32 %v4676_v56, %v2314_v22  ;;  %v2299_v0 = vmul.f32 1.0614054, %v4687_v48  ;;  %v3461_v25 = vpop.eup %3460 }
 0xd31   :  { %v2534_v58 = vmul.f32 %v2518_v53, %v2214_v4  ;;  %v2345_v10 = vadd.f32 1.4214138, %v2329_v3  ;;  %v2167_v59 = vmul.f32 0.5, %v4478_v31  ;;  %3470 = vpow2.f32 %v2488_v61 }
 0xd32   :  { %v2423_v63 = vmul.f32 %v4634_v38, %v2407_v55  ;;  %v2392_v24 = vmul.f32 %v4650_v44, %v2376_v29  ;;  %v2346_v38 = vadd.f32 1.4214138, %v2330_v30  ;;  %v2315_v17 = vadd.f32 -1.4531521, %v2299_v0 }
 0xd33   :  { %v2550_v62 = vadd.f32 1.0, %v2534_v58  ;;  %v2361_v8 = vmul.f32 %v4668_v28, %v2345_v10  ;;  %v4709_v40 = vpop.eup %3462  ;;  %vm2203_vm1 = vcmp.ge.f32.partialorder %v4637_v51, 0.0  ;;  %vm2204_vm2 = vcmp.ge.f32.partialorder %v4648_v34, 0.0 }
 0xd34   :  { %v2503_v12 = vmul.f32 %v3457_v35, %v2423_v63  ;;  %v2408_v26 = vadd.f32 0.2548296, %v2392_v24  ;;  %v2362_v53 = vmul.f32 %v4676_v56, %v2346_v38  ;;  %v2331_v6 = vmul.f32 %v4687_v48, %v2315_v17  ;;  %v3465_v29 = vpop.eup %3464 }
 0xd35   :  { %v4692_v4 = vmul.f32 %v2550_v62, %v2166_v36  ;;  %v2377_v5 = vadd.f32 -0.28449672, %v2361_v8  ;;  %v2444_v36 = vsub.f32 0.0, %v4660_v49  ;;  %v2300_v23 = vmul.f32 1.0614054, %v4709_v40  ;;  %v3467_v14 = vpop.eup %3466 }
 0xd36   :  { %v2519_v47 = vsub.f32 1.0, %v2503_v12  ;;  %v2424_v18 = vmul.f32 %v4650_v44, %v2408_v26  ;;  %v2378_v55 = vadd.f32 -0.28449672, %v2362_v53  ;;  %v2347_v13 = vadd.f32 1.4214138, %v2331_v6 }
 0xd37   :  { %2582 = vst [vmem:[%s5091_s8 + $0x40] sm:$0xff] %v4692_v4  ;;  %v2393_v19 = vmul.f32 %v4668_v28, %v2377_v5  ;;  %v2460_v44 = vmul.f32 %v2444_v36, %v4660_v49  ;;  %v2445_v35 = vsub.f32 0.0, %v4680_v20  ;;  %v2168_v24 = vmul.f32 0.5, %v4554_v43 }
 0xd38   :  { %v2535_v33 = vmul.f32 %v2519_v47, %v2215_v54  ;;  %v2504_v58 = vmul.f32 %v3461_v25, %v2424_v18  ;;  %v2394_v31 = vmul.f32 %v4676_v56, %v2378_v55  ;;  %v2363_v10 = vmul.f32 %v4687_v48, %v2347_v13 }
 0xd39   :  { %v2409_v3 = vadd.f32 0.2548296, %v2393_v19  ;;  %v2316_v12 = vadd.f32 -1.4531521, %v2300_v23  ;;  %v2490_v26 = vmul.f32 1.442695, %v2460_v44  ;;  %v2461_v25 = vmul.f32 %v2445_v35, %v4680_v20 }
 0xd3a   :  { %v2551_v37 = vadd.f32 1.0, %v2535_v33  ;;  %v2520_v22 = vsub.f32 1.0, %v2504_v58  ;;  %v2410_v30 = vadd.f32 0.2548296, %v2394_v31  ;;  %v2379_v0 = vadd.f32 -0.28449672, %v2363_v10 }
 0xd3b   :  { %v2425_v63 = vmul.f32 %v4668_v28, %v2409_v3  ;;  %v3469_v28 = vpop.eup %3468  ;;  %v2332_v61 = vmul.f32 %v4709_v40, %v2316_v12  ;;  %v2217_v36 = vsel %vm2201_vm15, 1.0, %v3499_v11  ;;  %3472 = vpow2.f32 %v2490_v26 }
 0xd3c   :  { %v4716_v62 = vmul.f32 %v2551_v37, %v2167_v59  ;;  %v2536_v49 = vmul.f32 %v2520_v22, %v2216_v2  ;;  %v2426_v43 = vmul.f32 %v4676_v56, %v2410_v30  ;;  %v2395_v5 = vmul.f32 %v4687_v48, %v2379_v0  ;;  %v3471_v33 = vpop.eup %3470 }
 0xd3d   :  { %v2505_v8 = vmul.f32 %v3465_v29, %v2425_v63  ;;  %v2301_v52 = vmul.f32 1.0614054, %v3469_v28  ;;  %v2348_v18 = vadd.f32 1.4214138, %v2332_v61  ;;  %v2169_v20 = vmul.f32 0.5, %v4579_v42 }
 0xd3e   :  { %2583 = vst [vmem:[%s5091_s8 + $0x48] sm:$0xff] %v4716_v62  ;;  %2680 = vrot.lane.b32.xlu1 %v4716_v62, %s3504_s23  ;;  %v2552_v38 = vadd.f32 1.0, %v2536_v49  ;;  %v2506_v54 = vmul.f32 %v3467_v14, %v2426_v43  ;;  %v2411_v59 = vadd.f32 0.2548296, %v2395_v5  ;;  %v2492_v58 = vmul.f32 1.442695, %v2461_v25 }
 0xd3f   :  { %v2521_v47 = vsub.f32 1.0, %v2505_v8  ;;  %v2317_v56 = vadd.f32 -1.4531521, %v2301_v52  ;;  %v2364_v6 = vmul.f32 %v4709_v40, %v2348_v18  ;;  %v2218_v37 = vsel %vm2202_vm0, 1.0, %v3499_v11 }
 0xd40   :  { %v4734_v17 = vmul.f32 %v2552_v38, %v2168_v24  ;;  %v2522_v19 = vsub.f32 1.0, %v2506_v54  ;;  %v2427_v3 = vmul.f32 %v4687_v48, %v2411_v59  ;;  %v2170_v23 = vmul.f32 0.5, %v4595_v57 }
 0xd41   :  { %v2537_v53 = vmul.f32 %v2521_v47, %v2217_v36  ;;  %v2333_v13 = vmul.f32 %v3469_v28, %v2317_v56  ;;  %v2380_v29 = vadd.f32 -0.28449672, %v2364_v6  ;;  %3474 = vpow2.f32 %v2492_v58  ;;  %v2912_v58 = vld [vmem:[%s5092_s7 + $0x10] sm:$0xff] }
 0xd42   :  { %2584 = vst [vmem:[%s5091_s8 + $0x50] sm:$0xff] %v4734_v17  ;;  %2684 = vrot.lane.b32.xlu0 %v4734_v17, %s3504_s23  ;;  %v2538_v44 = vmul.f32 %v2522_v19, %v2218_v37  ;;  %v2507_v42 = vmul.f32 %v3471_v33, %v2427_v3  ;;  %v2219_v51 = vsel %vm2203_vm1, 1.0, %v3499_v11  ;;  %v2171_v30 = vmul.f32 0.5, %v4628_v21  ;;  %v2928_v33 = vld [vmem:[%s5092_s7 + $0x90] sm:$0xff]  ;;  %v2930_v37 = vld [vmem:[%s5092_s7 + $0xa0] sm:$0xff]  ;;  %v4828_v3 = vpop.permute.xlu0 %2658 }
 0xd43   :  { %v2553_v55 = vadd.f32 1.0, %v2537_v53  ;;  %v2349_v31 = vadd.f32 1.4214138, %v2333_v13  ;;  %v2396_v2 = vmul.f32 %v4709_v40, %v2380_v29  ;;  %vm2205_vm3 = vcmp.ge.f32.partialorder %v4666_v50, 0.0  ;;  %v2910_v53 = vld [vmem:[%s5092_s7] sm:$0xff]  ;;  %v2931_v13 = vld [vmem:[%s5092_s7 + $0xa8] sm:$0xff] }
 0xd44   :  { %v2554_v35 = vadd.f32 1.0, %v2538_v44  ;;  %v2523_v41 = vsub.f32 1.0, %v2507_v42  ;;  %v2172_v47 = vmul.f32 0.5, %v4640_v1  ;;  %v2221_v54 = vsel %vm2205_vm3, 1.0, %v3499_v11  ;;  %v2926_v1 = vld [vmem:[%s5092_s7 + $0x80] sm:$0xff] }
 0xd45   :  { %v4749_v22 = vmul.f32 %v2553_v55, %v2169_v20  ;;  %v2365_v48 = vmul.f32 %v3469_v28, %v2349_v31  ;;  %v2412_v10 = vadd.f32 0.2548296, %v2396_v2  ;;  %v3473_v49 = vpop.eup %3472  ;;  %v2173_v50 = vmul.f32 0.5, %v4655_v9  ;;  %v2911_v9 = vld [vmem:[%s5092_s7 + $0x8] sm:$0xff]  ;;  %v2929_v20 = vld [vmem:[%s5092_s7 + $0x98] sm:$0xff]  ;;  %v2914_v42 = vld [vmem:[%s5092_s7 + $0x20] sm:$0xff] }
 0xd46   :  { %v4760_v63 = vmul.f32 %v2554_v35, %v2170_v23  ;;  %v2539_v57 = vmul.f32 %v2523_v41, %v2219_v51  ;;  %v3143_v19 = vpack.c.bf16 %v2911_v9, %v2910_v53  ;;  %v3145_v6 = vpack.c.bf16 %v2929_v20, %v2928_v33  ;;  %v2913_v55 = vld [vmem:[%s5092_s7 + $0x18] sm:$0xff]  ;;  %v2915_v31 = vld [vmem:[%s5092_s7 + $0x28] sm:$0xff]  ;;  %v2932_v23 = vld [vmem:[%s5092_s7 + $0xb0] sm:$0xff]  ;;  %v4847_v41 = vpop.permute.xlu0 %2670 }
 0xd47   :  { %2585 = vst [vmem:[%s5091_s8 + $0x58] sm:$0xff] %v4749_v22  ;;  %2686 = vrot.lane.b32.xlu1 %v4749_v22, %s3504_s23  ;;  %v2381_v14 = vadd.f32 -0.28449672, %v2365_v48  ;;  %v2428_v24 = vmul.f32 %v4709_v40, %v2412_v10  ;;  %v2220_v40 = vsel %vm2204_vm2, 1.0, %v3499_v11  ;;  %v2927_v11 = vld [vmem:[%s5092_s7 + $0x88] sm:$0xff]  ;;  %v3147_v44 = vpack.c.bf16 %v2913_v55, %v2912_v58  ;;  %v2933_v35 = vld [vmem:[%s5092_s7 + $0xb8] sm:$0xff] }
 0xd48   :  { %2586 = vst [vmem:[%s5091_s8 + $0x60] sm:$0xff] %v4760_v63  ;;  %2690 = vrot.lane.b32.xlu0 %v4760_v63, %s3504_s23  ;;  %v2555_v12 = vadd.f32 1.0, %v2539_v57  ;;  %v3141_v56 = vpack.c.bf16 %v2927_v11, %v2926_v1  ;;  %v3149_v29 = vpack.c.bf16 %v2931_v13, %v2930_v37  ;;  %v3151_v2 = vpack.c.bf16 %v2915_v31, %v2914_v42  ;;  %v2916_v51 = vld [vmem:[%s5092_s7 + $0x30] sm:$0xff]  ;;  %v2917_v10 = vld [vmem:[%s5092_s7 + $0x38] sm:$0xff] }
 0xd49   :  { %v2397_v8 = vmul.f32 %v3469_v28, %v2381_v14  ;;  %v2508_v0 = vmul.f32 %v3473_v49, %v2428_v24  ;;  %v3153_v48 = vpack.c.bf16 %v2933_v35, %v2932_v23  ;;  %v2934_v57 = vld [vmem:[%s5092_s7 + $0xc0] sm:$0xff]  ;;  %v2935_v14 = vld [vmem:[%s5092_s7 + $0xc8] sm:$0xff]  ;;  %v3155_v24 = vpack.c.bf16 %v2917_v10, %v2916_v51  ;;  %v2924_v58 = vld [vmem:[%s5092_s7 + $0x70] sm:$0xff] }
 0xd4a   :  { %v4772_v26 = vmul.f32 %v2555_v12, %v2171_v30  ;;  %3142 = vmatprep.subr.bf16.mxu0 %v3141_v56  ;;  %3173 = vmatprep.subr.bf16.mxu1 %v3141_v56  ;;  %v3157_v49 = vpack.c.bf16 %v2935_v14, %v2934_v57  ;;  %v2918_v30 = vld [vmem:[%s5092_s7 + $0x40] sm:$0xff]  ;;  %v2919_v12 = vld [vmem:[%s5092_s7 + $0x48] sm:$0xff] }
 0xd4b   :  { %v2413_v38 = vadd.f32 0.2548296, %v2397_v8  ;;  %v2524_v43 = vsub.f32 1.0, %v2508_v0  ;;  %v3475_v21 = vpop.eup %3474  ;;  %3144 = vmatpush3.bf16.msra.mxu0 %v3143_v19  ;;  %3181 = vmatpush3.bf16.msra.mxu1 %v3143_v19  ;;  %v2936_v8 = vld [vmem:[%s5092_s7 + $0xd0] sm:$0xff]  ;;  %v2937_v0 = vld [vmem:[%s5092_s7 + $0xd8] sm:$0xff] }
 0xd4c   :  { %2587 = vst [vmem:[%s5091_s8 + $0x68] sm:$0xff] %v4772_v26  ;;  %2692 = vrot.lane.b32.xlu1 %v4772_v26, %s3504_s23  ;;  %3146 = vmatprep.subr.bf16.mxu0 %v3145_v6  ;;  %v2940_v19 = vld [vmem:[%s5092_s7 + $0xf0] sm:$0xff] }
 0xd4d   :  { %v2429_v61 = vmul.f32 %v3469_v28, %v2413_v38  ;;  %v2540_v25 = vmul.f32 %v2524_v43, %v2220_v40  ;;  %3174 = vmatprep.subr.bf16.mxu1 %v3145_v6  ;;  %v4873_v38 = vpop.permute.xlu0 %2688  ;;  %v3159_v43 = vpack.c.bf16 %v2919_v12, %v2918_v30  ;;  %v3161_v40 = vpack.c.bf16 %v2937_v0, %v2936_v8  ;;  %v2941_v6 = vld [vmem:[%s5092_s7 + $0xf8] sm:$0xff] }
 0xd4e   :  { %v3169_v13 = vpack.c.bf16 %v2941_v6, %v2940_v19  ;;  %v3482_v30 = vld [vmem:[#allocation2 + $0x58] sm:$0xff] }
 0xd4f   :  { %v2509_v34 = vmul.f32 %v3475_v21, %v2429_v61  ;;  %v2556_v5 = vadd.f32 1.0, %v2540_v25  ;;  %3148 = vmatpush3.bf16.msra.mxu0 %v3147_v44  ;;  %3182 = vmatpush3.bf16.msra.mxu1 %v3147_v44  ;;  %v2920_v61 = vld [vmem:[%s5092_s7 + $0x50] sm:$0xff]  ;;  %v2921_v21 = vld [vmem:[%s5092_s7 + $0x58] sm:$0xff] }
 0xd50   :  { %3150 = vmatprep.subr.bf16.mxu0 %v3149_v29  ;;  %3175 = vmatprep.subr.bf16.mxu1 %v3149_v29  ;;  %v3163_v25 = vpack.c.bf16 %v2921_v21, %v2920_v61  ;;  %v3480_v29 = vld [vmem:[#allocation2 + $0x18] sm:$0xff] }
 0xd51   :  { %v2525_v52 = vsub.f32 1.0, %v2509_v34  ;;  %v4783_v36 = vmul.f32 %v2556_v5, %v2172_v47  ;;  %v4881_v34 = vpop.permute.xlu0 %2676  ;;  %v2665_v5 = vpop.permute.xlu1 %2664 }
 0xd53   :  { %v2541_v18 = vmul.f32 %v2525_v52, %v2221_v54  ;;  %2588 = vst [vmem:[%s5091_s8 + $0x70] sm:$0xff] %v4783_v36  ;;  %2696 = vrot.lane.b32.xlu0 %v4783_v36, %s3504_s23  ;;  %3152 = vmatpush3.bf16.msra.mxu0 %v3151_v2  ;;  %v2938_v52 = vld [vmem:[%s5092_s7 + $0xe0] sm:$0xff]  ;;  %v2939_v54 = vld [vmem:[%s5092_s7 + $0xe8] sm:$0xff] }
 0xd54   :  { %3154 = vmatprep.subr.bf16.mxu0 %v3153_v48  ;;  %3183 = vmatpush3.bf16.msra.mxu1 %v3151_v2 }
 0xd55   :  { %v2557_v28 = vadd.f32 1.0, %v2541_v18  ;;  %3176 = vmatprep.subr.bf16.mxu1 %v3153_v48  ;;  %v4883_v47 = vpop.permute.xlu0 %2694  ;;  %v2922_v18 = vld [vmem:[%s5092_s7 + $0x60] sm:$0xff]  ;;  %v3481_v48 = vld [vmem:[#allocation2 + $0x38] sm:$0xff] }
 0xd57   :  { %v4802_v59 = vmul.f32 %v2557_v28, %v2173_v50  ;;  %3156 = vmatpush3.bf16.msra.mxu0 %v3155_v24  ;;  %v3165_v50 = vpack.c.bf16 %v2939_v54, %v2938_v52  ;;  %v2923_v28 = vld [vmem:[%s5092_s7 + $0x68] sm:$0xff] }
 0xd58   :  { %3158 = vmatprep.subr.bf16.mxu0 %v3157_v49  ;;  %3184 = vmatpush3.bf16.msra.mxu1 %v3155_v24  ;;  %v3167_v11 = vpack.c.bf16 %v2923_v28, %v2922_v18 }
 0xd59   :  { %2589 = vst [vmem:[%s5091_s8 + $0x78] sm:$0xff] %v4802_v59  ;;  %2698 = vrot.lane.b32.xlu1 %v4802_v59, %s3504_s23  ;;  %3177 = vmatprep.subr.bf16.mxu1 %v3157_v49  ;;  %v4897_v1 = vpop.permute.xlu0 %2682 }
 0xd5b   :  { %3160 = vmatpush3.bf16.msra.mxu0 %v3159_v43 }
 0xd5c   :  { %3162 = vmatprep.subr.bf16.mxu0 %v3161_v40  ;;  %3185 = vmatpush3.bf16.msra.mxu1 %v3159_v43  ;;  %v3483_v43 = vld [vmem:[#allocation2 + $0x78] sm:$0xff] }
 0xd5d   :  { %2678 = vrot.lane.b32.xlu1 %v4692_v4, %s3504_s23  ;;  %3178 = vmatprep.subr.bf16.mxu1 %v3161_v40 }
 0xd5f   :  { %3164 = vmatpush3.bf16.msra.mxu0 %v3163_v25 }
 0xd60   :  { %3186 = vmatpush3.bf16.msra.mxu1 %v3163_v25  ;;  %3166 = vmatprep.subr.bf16.mxu0 %v3165_v50 }
 0xd61   :  { %3179 = vmatprep.subr.bf16.mxu1 %v3165_v50  ;;  %v3484_v50 = vld [vmem:[#allocation2 + $0xb8] sm:$0xff] }
 0xd63   :  { %3168 = vmatpush3.bf16.msra.mxu0 %v3167_v11 }
 0xd64   :  { %3187 = vmatpush3.bf16.msra.mxu1 %v3167_v11  ;;  %3170 = vmatprep.subr.bf16.mxu0 %v3169_v13 }
 0xd65   :  { %3180 = vmatprep.subr.bf16.mxu1 %v3169_v13 }
 0xd7e   :  { %v2655_v53 = vpop.permute.xlu1 %2654 }
 0xd82   :  { %v2657_v56 = vpop.permute.xlu1 %2656  ;;  %v2661_v9 = vpop.permute.xlu0 %2660 }
 0xd83   :  { %v2702_v33 = vsel %vm468_vm14, %v2655_v53, %v2657_v56  ;;  %v2703_v20 = vsel %vm468_vm14, %v2657_v56, %v4828_v3  ;;  %v2925_v3 = vld [vmem:[%s5092_s7 + $0x78] sm:$0xff] }
 0xd84   :  { %v4912_v55 = vmax.f32 %v4502_v39, %v2702_v33  ;;  %v4915_v37 = vmax.f32 %v4505_v27, %v2703_v20  ;;  %v3171_v44 = vpack.c.bf16 %v2925_v3, %v2924_v58  ;;  %v3485_v56 = vld [vmem:[#allocation2 + $0xd8] sm:$0xff] }
 0xd85   :  { %v3486_v20 = vld [vmem:[#allocation2 + $0x98] sm:$0xff] }
 0xd86   :  { %2750 = vst [vmem:[#allocation2 + $0x8] sm:$0xff] %v4912_v55  ;;  %2751 = vst [vmem:[#allocation2 + $0x10] sm:$0xff] %v4915_v37  ;;  %v3344_v42 = vpack.i.bf16 %v3480_v29, %v4915_v37  ;;  %v2663_v39 = vpop.permute.xlu0 %2662  ;;  %3172 = vmatpush3.bf16.msra.mxu0 %v3171_v44  ;;  %3188 = vmatpush3.bf16.msra.mxu1 %v3171_v44 }
 0xd87   :  { %v2704_v27 = vsel %vm468_vm14, %v2661_v9, %v2663_v39  ;;  %v2705_v31 = vsel %vm468_vm14, %v2663_v39, %v2665_v5 }
 0xd88   :  { %3345 = vrot.lane.b32.xlu1 %v3344_v42, %s3496_s1  ;;  %v4927_v23 = vmax.f32 %v4528_v15, %v2704_v27  ;;  %v4930_v35 = vmax.f32 %v4550_v7, %v2705_v31  ;;  %v2667_v2 = vpop.permute.xlu1 %2666 }
 0xd8a   :  { %2752 = vst [vmem:[#allocation2 + $0x28] sm:$0xff] %v4927_v23  ;;  %2753 = vst [vmem:[#allocation2 + $0x30] sm:$0xff] %v4930_v35  ;;  %v3354_v51 = vpack.i.bf16 %v4927_v23, %v3481_v48  ;;  %v3349_v10 = vpack.i.bf16 %v4930_v35, %v4912_v55 }
 0xd8c   :  { %3355 = vrot.lane.b32.xlu1 %v3354_v51, %s3496_s1  ;;  %3350 = vrot.lane.b32.xlu0 %v3349_v10, %s3496_s1  ;;  %v2669_v15 = vpop.permute.xlu1 %2668 }
 0xd8d   :  { %v2706_v57 = vsel %vm468_vm14, %v2667_v2, %v2669_v15  ;;  %v2707_v7 = vsel %vm468_vm14, %v2669_v15, %v4847_v41 }
 0xd8e   :  { %v4943_v14 = vmax.f32 %v4567_v16, %v2706_v57  ;;  %v4946_v24 = vmax.f32 %v4572_v46, %v2707_v7 }
 0xd90   :  { %2754 = vst [vmem:[#allocation2 + $0x48] sm:$0xff] %v4943_v14  ;;  %2755 = vst [vmem:[#allocation2 + $0x50] sm:$0xff] %v4946_v24  ;;  %v2673_v49 = vpop.permute.xlu1 %2672  ;;  %v3359_v12 = vpack.i.bf16 %v3482_v30, %v4946_v24 }
 0xd92   :  { %3360 = vrot.lane.b32.xlu0 %v3359_v12, %s3496_s1 }
 0xd94   :  { %v2675_v8 = vpop.permute.xlu1 %2674 }
 0xd95   :  { %v2708_v0 = vsel %vm468_vm14, %v2673_v49, %v2675_v8  ;;  %v2709_v16 = vsel %vm468_vm14, %v2675_v8, %v4881_v34 }
 0xd96   :  { %v4956_v41 = vmax.f32 %v4613_v60, %v2708_v0  ;;  %v4959_v46 = vmax.f32 %v4623_v45, %v2709_v16  ;;  %v2701_v60 = vpop.permute.xlu0 %2700 }
 0xd98   :  { %2756 = vst [vmem:[#allocation2 + $0x68] sm:$0xff] %v4956_v41  ;;  %2757 = vst [vmem:[#allocation2 + $0x70] sm:$0xff] %v4959_v46  ;;  %v3364_v40 = vpack.i.bf16 %v3483_v43, %v4959_v46 }
 0xd9a   :  { %3365 = vrot.lane.b32.xlu1 %v3364_v40, %s3496_s1 }
 0xdb0   :  { %v2681_v61 = vpop.permute.xlu1 %2680 }
 0xdb1   :  { %v2711_v21 = vsel %vm468_vm14, %v2681_v61, %v4897_v1 }
 0xdb2   :  { %v4968_v25 = vmax.f32 %v4716_v62, %v2711_v21 }
 0xdb4   :  { %2759 = vst [vmem:[#allocation2 + $0x90] sm:$0xff] %v4968_v25  ;;  %v2685_v45 = vpop.permute.xlu0 %2684  ;;  %v3384_v19 = vpack.i.bf16 %v3486_v20, %v4968_v25 }
 0xdb9   :  { %v2687_v34 = vpop.permute.xlu1 %2686 }
 0xdba   :  { %v2712_v5 = vsel %vm468_vm14, %v2685_v45, %v2687_v34  ;;  %v2713_v52 = vsel %vm468_vm14, %v2687_v34, %v4873_v38  ;;  %v2691_v1 = vpop.permute.xlu0 %2690 }
 0xdbb   :  { %v4975_v54 = vmax.f32 %v4734_v17, %v2712_v5  ;;  %v4978_v18 = vmax.f32 %v4749_v22, %v2713_v52 }
 0xdbd   :  { %v3369_v62 = vpack.i.bf16 %v3484_v50, %v4978_v18  ;;  %v3374_v28 = vpack.i.bf16 %v4975_v54, %v4943_v14 }
 0xdbe   :  { %v2693_v11 = vpop.permute.xlu1 %2692 }
 0xdbf   :  { %3370 = vrot.lane.b32.xlu1 %v3369_v62, %s3496_s1  ;;  %3375 = vrot.lane.b32.xlu0 %v3374_v28, %s3496_s1  ;;  %v2714_v38 = vsel %vm468_vm14, %v2691_v1, %v2693_v11  ;;  %v2715_v17 = vsel %vm468_vm14, %v2693_v11, %v4883_v47 }
 0xdc0   :  { %v4989_v22 = vmax.f32 %v4760_v63, %v2714_v38  ;;  %v4992_v53 = vmax.f32 %v4772_v26, %v2715_v17 }
 0xdc2   :  { %v3379_v9 = vpack.i.bf16 %v3485_v56, %v4992_v53  ;;  %v3389_v33 = vpack.i.bf16 %v4989_v22, %v4956_v41 }
 0xdc4   :  { %3380 = vrot.lane.b32.xlu0 %v3379_v9, %s3496_s1  ;;  %3390 = vrot.lane.b32.xlu1 %v3389_v33, %s3496_s1 }
 0xdc5   :  { %v2697_v63 = vpop.permute.xlu0 %2696 }
 0xdc8   :  { %3385 = vrot.lane.b32.xlu0 %v3384_v19, %s3496_s1 }
 0xdcb   :  { %v2699_v47 = vpop.permute.xlu1 %2698 }
 0xdcc   :  { %v2716_v26 = vsel %vm468_vm14, %v2697_v63, %v2699_v47  ;;  %v2717_v6 = vsel %vm468_vm14, %v2699_v47, %v2701_v60 }
 0xdcd   :  { %v5004_v58 = vmax.f32 %v4783_v36, %v2716_v26  ;;  %v5007_v13 = vmax.f32 %v4802_v59, %v2717_v6 }
 0xdcf   :  { %v2679_v3 = vpop.permute.xlu1 %2678  ;;  %v3394_v44 = vpack.i.bf16 %v4570_v32, %v5007_v13 }
 0xdd0   :  { %v2710_v29 = vsel %vm468_vm14, %v2679_v3, %v2681_v61  ;;  %vm3047_vm14 = vcmask 523264  }
 0xdd1   :  { %v5013_v42 = vmax.f32 %v4692_v4, %v2710_v29  ;;  %3395 = vrot.lane.b32.xlu1 %v3394_v44, %s3496_s1 }
 0xdd3   :  { %2758 = vst [vmem:[#allocation2 + $0x88] sm:$0xff] %v5013_v42  ;;  %v3399_v36 = vpack.i.bf16 %v5004_v58, %v5013_v42 }
 0xdd5   :  { %3400 = vrot.lane.b32.xlu0 %v3399_v36, %s3496_s1 }
 0xdfa   :  { %v3346_v59 = vpop.permute.xlu1 %3345 }
 0xdfb   :  { %v3348_v39 = vunpack.i.h.bf16 %v3346_v59  ;;  %v3347_v27 = vunpack.i.l.bf16 %v3346_v59 }
 0xdfd   :  { %v2863_v31 = vsel %vm271_vm9, %v3347_v27, %v3348_v39 }
 0xdfe   :  { %v2895_v32 = vmax.f32 %v4915_v37, %v2863_v31  ;;  %v3351_v2 = vpop.permute.xlu0 %3350  ;;  %v3356_v48 = vpop.permute.xlu1 %3355 }
 0xdff   :  { %v3353_v4 = vunpack.i.h.bf16 %v3351_v2  ;;  %v3352_v51 = vunpack.i.l.bf16 %v3351_v2  ;;  %v3358_v10 = vunpack.i.h.bf16 %v3356_v48  ;;  %v3357_v15 = vunpack.i.l.bf16 %v3356_v48 }
 0xe00   :  { %3006 = vmatprep.mubr.f32.mxu0 %v2895_v32 }
 0xe01   :  { %v2862_v57 = vsel %vm271_vm9, %v3352_v51, %v3347_v27  ;;  %v2865_v7 = vsel %vm271_vm9, %v3353_v4, %v3357_v15  ;;  %v2864_v12 = vsel %vm271_vm9, %v3358_v10, %v3353_v4 }
 0xe02   :  { %v2894_v49 = vmax.f32 %v4912_v55, %v2862_v57  ;;  %v2897_v30 = vmax.f32 %v4930_v35, %v2865_v7  ;;  %v2896_v16 = vmax.f32 %v4927_v23, %v2864_v12 }
 0xe04   :  { %3007 = vmatmul.mubr.f32.vlgmr.msra.gmra.mrb[2].mxu0 %v2894_v49  ;;  %v3361_v8 = vpop.permute.xlu0 %3360 }
 0xe05   :  { %3011 = vmatprep.mubr.f32.mxu0 %v2897_v30  ;;  %v3363_v37 = vunpack.i.h.bf16 %v3361_v8  ;;  %v3362_v0 = vunpack.i.l.bf16 %v3361_v8 }
 0xe07   :  { %v2867_v43 = vsel %vm271_vm9, %v3362_v0, %v3363_v37 }
 0xe08   :  { %3012 = vmatmul.mubr.f32.gmra.mrb[4].mxu0 %v2896_v16  ;;  %v2899_v40 = vmax.f32 %v4946_v24, %v2867_v43 }
 0xe0a   :  { %3016 = vmatprep.mubr.f32.mxu0 %v2899_v40 }
 0xe0c   :  { %v3366_v61 = vpop.permute.xlu1 %3365 }
 0xe0d   :  { %v3368_v21 = vunpack.i.h.bf16 %v3366_v61  ;;  %v3367_v55 = vunpack.i.l.bf16 %v3366_v61 }
 0xe0f   :  { %v2869_v50 = vsel %vm271_vm9, %v3367_v55, %v3368_v21 }
 0xe10   :  { %v2901_v38 = vmax.f32 %v4959_v46, %v2869_v50 }
 0xe31   :  { %v3376_v60 = vpop.permute.xlu0 %3375  ;;  %v3371_v35 = vpop.permute.xlu1 %3370 }
 0xe32   :  { %v3378_v45 = vunpack.i.h.bf16 %v3376_v60  ;;  %v3377_v34 = vunpack.i.l.bf16 %v3376_v60  ;;  %v3373_v5 = vunpack.i.h.bf16 %v3371_v35  ;;  %v3372_v52 = vunpack.i.l.bf16 %v3371_v35 }
 0xe34   :  { %v2872_v62 = vsel %vm271_vm9, %v3378_v45, %v3372_v52  ;;  %v2866_v23 = vsel %vm271_vm9, %v3377_v34, %v3362_v0  ;;  %v2873_v28 = vsel %vm271_vm9, %v3372_v52, %v3373_v5 }
 0xe35   :  { %v2904_v24 = vmax.f32 %v4975_v54, %v2872_v62  ;;  %v2898_v1 = vmax.f32 %v4943_v14, %v2866_v23  ;;  %v2905_v11 = vmax.f32 %v4978_v18, %v2873_v28 }
 0xe36   :  { %v3381_v17 = vpop.permute.xlu0 %3380  ;;  %v3391_v56 = vpop.permute.xlu1 %3390 }
 0xe37   :  { %3017 = vmatmul.mubr.f32.gmra.mrb[6].mxu0 %v2898_v1  ;;  %3031 = vmatprep.mubr.f32.mxu1 %v2905_v11  ;;  %v3383_v9 = vunpack.i.h.bf16 %v3381_v17  ;;  %v3382_v33 = vunpack.i.l.bf16 %v3381_v17  ;;  %v3393_v20 = vunpack.i.h.bf16 %v3391_v56  ;;  %v3392_v19 = vunpack.i.l.bf16 %v3391_v56 }
 0xe38   :  { %3021 = vmatprep.mubr.f32.mxu0 %v2901_v38  ;;  %3032 = vmatmul.mubr.f32.vlgmr.msra.gmra.mrb[16].mxu1 %v2904_v24 }
 0xe39   :  { %v2868_v63 = vsel %vm271_vm9, %v3392_v19, %v3367_v55  ;;  %v2875_v54 = vsel %vm271_vm9, %v3382_v33, %v3383_v9  ;;  %v2874_v14 = vsel %vm271_vm9, %v3393_v20, %v3382_v33 }
 0xe3a   :  { %v3386_v47 = vpop.permute.xlu0 %3385  ;;  %v2900_v18 = vmax.f32 %v4956_v41, %v2868_v63  ;;  %v2907_v46 = vmax.f32 %v4992_v53, %v2875_v54  ;;  %v2906_v26 = vmax.f32 %v4989_v22, %v2874_v14 }
 0xe3b   :  { %v3388_v6 = vunpack.i.h.bf16 %v3386_v47  ;;  %v3387_v3 = vunpack.i.l.bf16 %v3386_v47 }
 0xe3c   :  { %3022 = vmatmul.mubr.f32.gmra.mrb[8].mxu0 %v2900_v18  ;;  %3036 = vmatprep.mubr.f32.mxu1 %v2907_v46 }
 0xe3d   :  { %3037 = vmatmul.mubr.f32.gmra.mrb[18].mxu1 %v2906_v26  ;;  %v2871_v44 = vsel %vm271_vm9, %v3387_v3, %v3388_v6 }
 0xe3e   :  { %v2903_v29 = vmax.f32 %v4968_v25, %v2871_v44 }
 0xe40   :  { %3026 = vmatprep.mubr.f32.mxu0 %v2903_v29 }
 0xe43   :  { %v3396_v36 = vpop.permute.xlu1 %3395 }
 0xe44   :  { %v3398_v59 = vunpack.i.h.bf16 %v3396_v36  ;;  %v3397_v39 = vunpack.i.l.bf16 %v3396_v36 }
 0xe46   :  { %v2877_v27 = vsel %vm271_vm9, %v3397_v39, %v3398_v59 }
 0xe47   :  { %v3401_v41 = vpop.permute.xlu0 %3400  ;;  %v2909_v53 = vmax.f32 %v5007_v13, %v2877_v27 }
 0xe48   :  { %v3403_v31 = vunpack.i.h.bf16 %v3401_v41  ;;  %v3402_v22 = vunpack.i.l.bf16 %v3401_v41 }
 0xe49   :  { %3041 = vmatprep.mubr.f32.mxu1 %v2909_v53 }
 0xe4a   :  { %v2870_v32 = vsel %vm271_vm9, %v3402_v22, %v3387_v3  ;;  %v2876_v2 = vsel %vm271_vm9, %v3403_v31, %v3397_v39 }
 0xe4b   :  { %v2902_v48 = vmax.f32 %v5013_v42, %v2870_v32  ;;  %v2908_v25 = vmax.f32 %v5004_v58, %v2876_v2 }
 0xe4d   :  { %3027 = vmatmul.mubr.f32.gmra.mrb[10].mxu0 %v2902_v48  ;;  %3042 = vmatmul.mubr.f32.gmra.mrb[20].mxu1 %v2908_v25 }
 0xed7   :  { %v3109_v4 = vpop.f32.mrb[2].mxu0 }
 0xed8   :  { %v3110_v51 = vpop.f32.mrb[3].mxu0 }
 0xed9   :  { %v3111_v10 = vadd.f32 %v3110_v51, %v3109_v4 }
 0xedb   :  { %3048 = vst.msk [vmem:[%s5093_s9] sm:$0xff] %vm3047_vm14, %v3111_v10  ;;  %v3112_v13 = vpop.f32.mrb[4].mxu0 }
 0xedc   :  { %v3113_v15 = vpop.f32.mrb[5].mxu0 }
 0xedd   :  { %v3114_v57 = vadd.f32 %v3113_v15, %v3112_v13 }
 0xedf   :  { %3049 = vst.msk [vmem:[%s5093_s9 + $0x8] sm:$0xff] %vm3047_vm14, %v3114_v57 }
 0xf0a   :  { %v3115_v58 = vpop.f32.mrb[6].mxu0 }
 0xf0b   :  { %v3116_v42 = vpop.f32.mrb[7].mxu0  ;;  %v3124_v7 = vpop.f32.mrb[16].mxu1 }
 0xf0c   :  { %v3117_v49 = vadd.f32 %v3116_v42, %v3115_v58  ;;  %v3125_v30 = vpop.f32.mrb[17].mxu1 }
 0xf0d   :  { %v3126_v12 = vadd.f32 %v3125_v30, %v3124_v7 }
 0xf0e   :  { %3050 = vst.msk [vmem:[%s5093_s9 + $0x10] sm:$0xff] %vm3047_vm14, %v3117_v49 }
 0xf0f   :  { %3053 = vst.msk [vmem:[%s5093_s9 + $0x28] sm:$0xff] %vm3047_vm14, %v3126_v12  ;;  %v3118_v8 = vpop.f32.mrb[8].mxu0 }
 0xf10   :  { %v3119_v37 = vpop.f32.mrb[9].mxu0  ;;  %v3127_v0 = vpop.f32.mrb[18].mxu1 }
 0xf11   :  { %v3120_v16 = vadd.f32 %v3119_v37, %v3118_v8  ;;  %v3128_v43 = vpop.f32.mrb[19].mxu1 }
 0xf12   :  { %v3129_v40 = vadd.f32 %v3128_v43, %v3127_v0 }
 0xf13   :  { %3051 = vst.msk [vmem:[%s5093_s9 + $0x18] sm:$0xff] %vm3047_vm14, %v3120_v16 }
 0xf14   :  { %3054 = vst.msk [vmem:[%s5093_s9 + $0x30] sm:$0xff] %vm3047_vm14, %v3129_v40 }
 0xf20   :  { %v3121_v61 = vpop.f32.mrb[10].mxu0  ;;  %v3130_v21 = vpop.f32.mrb[20].mxu1 }
 0xf21   :  { %v3122_v55 = vpop.f32.mrb[11].mxu0  ;;  %v3131_v60 = vpop.f32.mrb[21].mxu1 }
 0xf22   :  { %v3123_v35 = vadd.f32 %v3122_v55, %v3121_v61  ;;  %v3132_v45 = vadd.f32 %v3131_v60, %v3130_v21 }
 0xf24   :  { %3052 = vst.msk [vmem:[%s5093_s9 + $0x20] sm:$0xff] %vm3047_vm14, %v3123_v35  ;;  %3055 = vst.msk [vmem:[%s5093_s9 + $0x38] sm:$0xff] %vm3047_vm14, %v3132_v45 }

</bundles_post_ra>
